<compile_context>
chip_gen: v7x
topology: tpu7x:2x2x1
jax: 0.10.0
libtpu: 0.0.40
codegen_flags: <defaults>
</compile_context>

<pallas_src>
import math
import jax
import jax.numpy as jnp
from jax.experimental import pallas as pl
from jax.experimental.pallas import tpu as pltpu  # noqa: F401  (TPU backend)


CFG = dict(vocab=128, d_model=32, d_ff=64, num_heads=4, d_kv=8,
           num_layers=2, rel_buckets=8, rel_max_dist=16)
NEG = -1e9


# ---------------------------------------------------------------------------
# Relative-position bias + mask precompute (tiny index arithmetic, plain JAX)
# ---------------------------------------------------------------------------

def _relative_position_bucket(rel_pos, bidirectional, num_buckets, max_distance):
    rel_buckets = jnp.zeros_like(rel_pos)
    if bidirectional:
        num_buckets //= 2
        rel_buckets += (rel_pos > 0).astype(jnp.int32) * num_buckets
        rel_pos = jnp.abs(rel_pos)
    else:
        rel_pos = -jnp.minimum(rel_pos, 0)
    max_exact = num_buckets // 2
    is_small = rel_pos < max_exact
    rp = jnp.maximum(rel_pos, max_exact).astype(jnp.float32)
    large = max_exact + (jnp.log(rp / max_exact)
                         / math.log(max_distance / max_exact)
                         * (num_buckets - max_exact)).astype(jnp.int32)
    large = jnp.minimum(large, num_buckets - 1)
    return rel_buckets + jnp.where(is_small, rel_pos, large)


def compute_rel_bias(rel_emb, q_len, k_len, bidirectional):
    ctx = jnp.arange(q_len)[:, None]
    mem = jnp.arange(k_len)[None, :]
    buckets = _relative_position_bucket(
        mem - ctx, bidirectional, CFG["rel_buckets"], CFG["rel_max_dist"])
    vals = rel_emb[buckets]                      # [q, k, H]
    return jnp.transpose(vals, (2, 0, 1))        # [H, q, k]


def block_diag_bias(per_batch):
    """[B, H, Tq, Tk] per-batch additive biases -> [H, B*Tq, B*Tk] with NEG
    in the off-diagonal (cross-batch) blocks, so batch-stacked attention
    never mixes tokens across batch elements."""
    B, H, Tq, Tk = per_batch.shape
    out = jnp.full((H, B * Tq, B * Tk), NEG, jnp.float32)
    for b in range(B):
        out = out.at[:, b * Tq:(b + 1) * Tq, b * Tk:(b + 1) * Tk].set(per_batch[b])
    return out


# ---------------------------------------------------------------------------
# Fused whole-model Pallas kernel (single invocation, whole batch)
# ---------------------------------------------------------------------------

def _t5_fused_kernel(enc_in_ref, dec_in_ref,
                     enc_bias_ref, dec_bias_ref, cross_bias_ref,
                     e_ln1, e_qkv, e_o, e_ln2, e_wi, e_wo, e_fln,
                     d_ln1, d_qkv, d_so, d_ln2, d_cq, d_ckv, d_co,
                     d_ln3, d_wi, d_wo, d_fln,
                     lm_w_ref, lm_b_ref,
                     out_ref):
    c = CFG
    H, Dh, L = c["num_heads"], c["d_kv"], c["num_layers"]
    inner = H * Dh
    f32 = jnp.float32

    def dotf(a, w):
        return jnp.dot(a, w, preferred_element_type=f32)

    def rms(x, w):                       # T5 "LayerNorm": RMSNorm, no mean-sub
        var = jnp.mean(x * x, axis=-1, keepdims=True)
        return x * jax.lax.rsqrt(var + 1e-6) * w

    def attention(q, k, v, w_o, bias, per_head_bias):
        # q:[Nq,inner]  k,v:[Nk,inner]  w_o:[inner,D]
        # bias: [H,Nq,Nk] if per_head_bias else [Nq,Nk] (additive, incl. masks)
        acc = jnp.zeros((q.shape[0], w_o.shape[1]), f32)
        for h in range(H):
            sl = slice(h * Dh, (h + 1) * Dh)
            s = jax.lax.dot_general(q[:, sl], k[:, sl],
                                    (((1,), (1,)), ((), ())),
                                    preferred_element_type=f32)
            s = s + (bias[h] if per_head_bias else bias)   # T5: no 1/sqrt(d)
            s = s - jnp.max(s, axis=-1, keepdims=True)
            p = jnp.exp(s)
            p = p * pl.reciprocal(jnp.sum(p, axis=-1, keepdims=True), approx=True)
            # output projection folded into the head loop (no head concat)
            acc = acc + dotf(dotf(p, v[:, sl]), w_o[sl, :])
        return acc

    enc_bias = enc_bias_ref[...]         # [H, Ne, Ne]  rel + key-mask + block-diag
    dec_bias = dec_bias_ref[...]         # [H, Nd, Nd]  rel + causal + block-diag
    cross_bias = cross_bias_ref[...]     # [Nd, Ne]     key-mask + block-diag

    # ------------------------------ encoder ------------------------------
    x = enc_in_ref[...]                                  # [B*Te, D]
    for l in range(L):
        n = rms(x, e_ln1[l:l + 1, :])
        qkv = dotf(n, e_qkv[l])                          # [B*Te, 3*inner]
        x = x + attention(qkv[:, :inner], qkv[:, inner:2 * inner],
                          qkv[:, 2 * inner:], e_o[l], enc_bias, True)
        n = rms(x, e_ln2[l:l + 1, :])
        x = x + dotf(jnp.maximum(dotf(n, e_wi[l]), 0.0), e_wo[l])
    enc_out = rms(x, e_fln[...])                         # [B*Te, D]

    # ------------------------------ decoder ------------------------------
    y = dec_in_ref[...]                                  # [B*Td, D]
    for l in range(L):
        n = rms(y, d_ln1[l:l + 1, :])
        qkv = dotf(n, d_qkv[l])
        y = y + attention(qkv[:, :inner], qkv[:, inner:2 * inner],
                          qkv[:, 2 * inner:], d_so[l], dec_bias, True)

        n = rms(y, d_ln2[l:l + 1, :])
        cq = dotf(n, d_cq[l])                            # [B*Td, inner]
        ckv = dotf(enc_out, d_ckv[l])                    # [B*Te, 2*inner]
        y = y + attention(cq, ckv[:, :inner], ckv[:, inner:],
                          d_co[l], cross_bias, False)

        n = rms(y, d_ln3[l:l + 1, :])
        y = y + dotf(jnp.maximum(dotf(n, d_wi[l]), 0.0), d_wo[l])
    dec_out = rms(y, d_fln[...])                         # [B*Td, D]

    # ------------------------- lm_head (Linear + bias) -------------------
    out_ref[...] = dotf(dec_out, lm_w_ref[...]) + lm_b_ref[...]


# ---------------------------------------------------------------------------
# Parameters & wrapper
# ---------------------------------------------------------------------------

def init_params(key):
    c = CFG
    D, F, H, Dh, V, L = (c["d_model"], c["d_ff"], c["num_heads"],
                         c["d_kv"], c["vocab"], c["num_layers"])
    inner = H * Dh
    keys = iter(jax.random.split(key, 64))

    def nrm(shape):
        return jax.random.normal(next(keys), shape, jnp.float32) * 0.02

    def ones(shape):
        return jnp.ones(shape, jnp.float32)

    return dict(
        shared=nrm((V, D)),
        enc_rel=nrm((c["rel_buckets"], H)),
        dec_rel=nrm((c["rel_buckets"], H)),
        # encoder (stacked over layers, QKV fused)
        enc_ln1=ones((L, D)), enc_qkv=nrm((L, D, 3 * inner)),
        enc_o=nrm((L, inner, D)), enc_ln2=ones((L, D)),
        enc_wi=nrm((L, D, F)), enc_wo=nrm((L, F, D)),
        enc_final_ln=ones((1, D)),
        # decoder (self QKV fused, cross K/V fused)
        dec_ln1=ones((L, D)), dec_qkv=nrm((L, D, 3 * inner)),
        dec_so=nrm((L, inner, D)), dec_ln2=ones((L, D)),
        dec_cq=nrm((L, D, inner)), dec_ckv=nrm((L, D, 2 * inner)),
        dec_co=nrm((L, inner, D)), dec_ln3=ones((L, D)),
        dec_wi=nrm((L, D, F)), dec_wo=nrm((L, F, D)),
        dec_final_ln=ones((1, D)),
        # lm_head (stored as [D, V]; x @ W)
        lm_w=nrm((D, V)), lm_b=jnp.zeros((1, V), jnp.float32),
    )


def t5_forward(params, input_ids, attention_mask, decoder_input_ids):
    c = CFG
    B, Te = input_ids.shape
    Td = decoder_input_ids.shape[1]
    D, F, H, Dh, V, L = (c["d_model"], c["d_ff"], c["num_heads"],
                         c["d_kv"], c["vocab"], c["num_layers"])
    inner = H * Dh
    Ne, Nd = B * Te, B * Td

    # Embedding gather hoisted out of the kernel (tiny XLA gather).
    enc_in = params["shared"][input_ids].reshape(Ne, D)
    dec_in = params["shared"][decoder_input_ids].reshape(Nd, D)

    # Additive attention biases with all masks folded in, block-diagonal over batch.
    key_bias = (1.0 - attention_mask.astype(jnp.float32)) * NEG          # [B, Te]

    enc_rel = compute_rel_bias(params["enc_rel"], Te, Te, True)          # [H, Te, Te]
    enc_pb = enc_rel[None, :, :, :] + key_bias[:, None, None, :]         # [B, H, Te, Te]
    enc_bias = block_diag_bias(enc_pb)                                   # [H, Ne, Ne]

    causal = jnp.where(jnp.arange(Td)[:, None] >= jnp.arange(Td)[None, :],
                       0.0, NEG)
    dec_rel = compute_rel_bias(params["dec_rel"], Td, Td, False) + causal
    dec_bias = block_diag_bias(jnp.broadcast_to(dec_rel[None], (B, H, Td, Td)))

    cross_pb = jnp.broadcast_to(key_bias[:, None, None, :], (B, 1, Td, Te))
    cross_bias = block_diag_bias(cross_pb)[0]                            # [Nd, Ne]

    # Advisory cost estimate so XLA schedules the tiny custom call sensibly.
    def mm(m, k, n):
        return 2 * m * k * n
    attn_fl = lambda nq, nk: H * (mm(nq, Dh, nk) + mm(nq, nk, Dh) + mm(nq, Dh, D))
    flops = (L * (mm(Ne, D, 3 * inner) + attn_fl(Ne, Ne) + mm(Ne, D, F) + mm(Ne, F, D))
             + L * (mm(Nd, D, 3 * inner) + attn_fl(Nd, Nd)
                    + mm(Nd, D, inner) + mm(Ne, D, 2 * inner) + attn_fl(Nd, Ne)
                    + mm(Nd, D, F) + mm(Nd, F, D))
             + mm(Nd, D, V))
    transcendentals = L * H * (Ne * Ne + Nd * Nd + Nd * Ne) + (2 * L + 1) * (Ne + Nd)

    operands = (
        enc_in, dec_in, enc_bias, dec_bias, cross_bias,
        params["enc_ln1"], params["enc_qkv"], params["enc_o"],
        params["enc_ln2"], params["enc_wi"], params["enc_wo"],
        params["enc_final_ln"],
        params["dec_ln1"], params["dec_qkv"], params["dec_so"],
        params["dec_ln2"], params["dec_cq"], params["dec_ckv"],
        params["dec_co"], params["dec_ln3"], params["dec_wi"],
        params["dec_wo"], params["dec_final_ln"],
        params["lm_w"], params["lm_b"],
    )
    bytes_accessed = sum(int(a.size) * 4 for a in operands) + Nd * V * 4

    # Single invocation (no grid): every operand is a full-array VMEM block.
    logits = pl.pallas_call(
        _t5_fused_kernel,
        out_shape=jax.ShapeDtypeStruct((Nd, V), jnp.float32),
        cost_estimate=pl.CostEstimate(flops=int(flops),
                                      transcendentals=int(transcendentals),
                                      bytes_accessed=int(bytes_accessed)),
    )(*operands)
    return logits.reshape(B, Td, V)


# ---------------------------------------------------------------------------
if __name__ == "__main__":
    key = jax.random.PRNGKey(0)
    pkey, ikey, dkey = jax.random.split(key, 3)

    params = init_params(pkey)

    B, Te, Td = 2, 8, 8
    input_ids = jax.random.randint(ikey, (B, Te), 0, CFG["vocab"], jnp.int32)
    decoder_input_ids = jax.random.randint(dkey, (B, Td), 0, CFG["vocab"], jnp.int32)
    # pad the last two encoder positions of batch element 1 to exercise masking
    attention_mask = jnp.ones((B, Te), jnp.int32).at[1, -2:].set(0)

    logits = jax.jit(t5_forward)(params, input_ids, attention_mask,
                                 decoder_input_ids)
    logits = jax.block_until_ready(logits)

    assert logits.shape == (B, Td, CFG["vocab"])
    assert bool(jnp.all(jnp.isfinite(logits)))
    print("KERNEL_OK")
</pallas_src>

<mosaic_0001>
module attributes {stable_mosaic.version = 11 : i64} {
  func.func @_t5_fused_kernel(%arg0: memref<16x32xf32, #tpu.memory_space<vmem>>, %arg1: memref<16x32xf32, #tpu.memory_space<vmem>>, %arg2: memref<4x16x16xf32, #tpu.memory_space<vmem>>, %arg3: memref<4x16x16xf32, #tpu.memory_space<vmem>>, %arg4: memref<16x16xf32, #tpu.memory_space<vmem>>, %arg5: memref<2x32xf32, #tpu.memory_space<vmem>>, %arg6: memref<2x32x96xf32, #tpu.memory_space<vmem>>, %arg7: memref<2x32x32xf32, #tpu.memory_space<vmem>>, %arg8: memref<2x32xf32, #tpu.memory_space<vmem>>, %arg9: memref<2x32x64xf32, #tpu.memory_space<vmem>>, %arg10: memref<2x64x32xf32, #tpu.memory_space<vmem>>, %arg11: memref<1x32xf32, #tpu.memory_space<vmem>>, %arg12: memref<2x32xf32, #tpu.memory_space<vmem>>, %arg13: memref<2x32x96xf32, #tpu.memory_space<vmem>>, %arg14: memref<2x32x32xf32, #tpu.memory_space<vmem>>, %arg15: memref<2x32xf32, #tpu.memory_space<vmem>>, %arg16: memref<2x32x32xf32, #tpu.memory_space<vmem>>, %arg17: memref<2x32x64xf32, #tpu.memory_space<vmem>>, %arg18: memref<2x32x32xf32, #tpu.memory_space<vmem>>, %arg19: memref<2x32xf32, #tpu.memory_space<vmem>>, %arg20: memref<2x32x64xf32, #tpu.memory_space<vmem>>, %arg21: memref<2x64x32xf32, #tpu.memory_space<vmem>>, %arg22: memref<1x32xf32, #tpu.memory_space<vmem>>, %arg23: memref<32x128xf32, #tpu.memory_space<vmem>>, %arg24: memref<1x128xf32, #tpu.memory_space<vmem>>, %arg25: memref<16x128xf32, #tpu.memory_space<vmem>>) attributes {dimension_semantics = [], scalar_prefetch = 0 : i64, scratch_operands = 0 : i64, tpu.core_type = #tpu.core_type<tc>} {
    %c0 = arith.constant 0 : index
    %c0_0 = arith.constant 0 : index
    %c0_1 = arith.constant 0 : index
    %0 = vector.load %arg2[%c0, %c0_0, %c0_1] : memref<4x16x16xf32, #tpu.memory_space<vmem>>, vector<4x16x16xf32>
    %c0_2 = arith.constant 0 : index
    %c0_3 = arith.constant 0 : index
    %c0_4 = arith.constant 0 : index
    %1 = vector.load %arg3[%c0_2, %c0_3, %c0_4] : memref<4x16x16xf32, #tpu.memory_space<vmem>>, vector<4x16x16xf32>
    %c0_5 = arith.constant 0 : index
    %c0_6 = arith.constant 0 : index
    %2 = vector.load %arg4[%c0_5, %c0_6] : memref<16x16xf32, #tpu.memory_space<vmem>>, vector<16x16xf32>
    %c0_7 = arith.constant 0 : index
    %c0_8 = arith.constant 0 : index
    %3 = vector.load %arg0[%c0_7, %c0_8] : memref<16x32xf32, #tpu.memory_space<vmem>>, vector<16x32xf32>
    %c0_9 = arith.constant 0 : index
    %c0_10 = arith.constant 0 : index
    %4 = vector.load %arg5[%c0_9, %c0_10] : memref<2x32xf32, #tpu.memory_space<vmem>>, vector<1x32xf32>
    %5 = arith.mulf %3, %3 : vector<16x32xf32>
    %cst = arith.constant dense<0.000000e+00> : vector<16xf32>
    %6 = vector.multi_reduction <add>, %5, %cst [1] : vector<16x32xf32> to vector<16xf32>
    %7 = vector.shape_cast %6 : vector<16xf32> to vector<16x1xf32>
    %cst_11 = arith.constant 3.200000e+01 : f32
    %8 = vector.broadcast %cst_11 : f32 to vector<16x1xf32>
    %9 = arith.divf %7, %8 : vector<16x1xf32>
    %cst_12 = arith.constant 9.99999997E-7 : f32
    %10 = vector.broadcast %cst_12 : f32 to vector<16x1xf32>
    %11 = arith.addf %9, %10 : vector<16x1xf32>
    %12 = math.rsqrt %11 : vector<16x1xf32>
    %13 = vector.broadcast %12 : vector<16x1xf32> to vector<16x32xf32>
    %14 = arith.mulf %3, %13 : vector<16x32xf32>
    %15 = vector.broadcast %4 : vector<1x32xf32> to vector<16x32xf32>
    %16 = arith.mulf %14, %15 : vector<16x32xf32>
    %c0_13 = arith.constant 0 : index
    %c0_14 = arith.constant 0 : index
    %c0_15 = arith.constant 0 : index
    %17 = vector.load %arg6[%c0_13, %c0_14, %c0_15] : memref<2x32x96xf32, #tpu.memory_space<vmem>>, vector<1x32x96xf32>
    %18 = vector.shape_cast %17 : vector<1x32x96xf32> to vector<32x96xf32>
    %cst_16 = arith.constant dense<0.000000e+00> : vector<16x96xf32>
    %19 = tpu.matmul %16, %18, %cst_16 {dimension_numbers = #tpu.dot_dimension_numbers<[1], [0], [0], [1], [0, 0, 1, 1], [], []>} : vector<16x32xf32>, vector<32x96xf32>, vector<16x96xf32> -> vector<16x96xf32>
    %20 = vector.extract_strided_slice %19 {offsets = [0, 0], sizes = [16, 32], strides = [1, 1]} : vector<16x96xf32> to vector<16x32xf32>
    %21 = vector.extract_strided_slice %19 {offsets = [0, 32], sizes = [16, 32], strides = [1, 1]} : vector<16x96xf32> to vector<16x32xf32>
    %22 = vector.extract_strided_slice %19 {offsets = [0, 64], sizes = [16, 32], strides = [1, 1]} : vector<16x96xf32> to vector<16x32xf32>
    %c0_17 = arith.constant 0 : index
    %c0_18 = arith.constant 0 : index
    %c0_19 = arith.constant 0 : index
    %23 = vector.load %arg7[%c0_17, %c0_18, %c0_19] : memref<2x32x32xf32, #tpu.memory_space<vmem>>, vector<1x32x32xf32>
    %24 = vector.shape_cast %23 : vector<1x32x32xf32> to vector<32x32xf32>
    %cst_20 = arith.constant 0.000000e+00 : f32
    %25 = vector.broadcast %cst_20 : f32 to vector<16x32xf32>
    %26 = vector.extract_strided_slice %20 {offsets = [0, 0], sizes = [16, 8], strides = [1, 1]} : vector<16x32xf32> to vector<16x8xf32>
    %27 = vector.extract_strided_slice %21 {offsets = [0, 0], sizes = [16, 8], strides = [1, 1]} : vector<16x32xf32> to vector<16x8xf32>
    %cst_21 = arith.constant dense<0.000000e+00> : vector<16x16xf32>
    %28 = tpu.matmul %26, %27, %cst_21 {dimension_numbers = #tpu.dot_dimension_numbers<[1], [1], [0], [0], [0, 0, 1, 0], [], []>} : vector<16x8xf32>, vector<16x8xf32>, vector<16x16xf32> -> vector<16x16xf32>
    %29 = vector.extract_strided_slice %0 {offsets = [0, 0, 0], sizes = [1, 16, 16], strides = [1, 1, 1]} : vector<4x16x16xf32> to vector<1x16x16xf32>
    %30 = vector.shape_cast %29 : vector<1x16x16xf32> to vector<16x16xf32>
    %31 = arith.addf %28, %30 : vector<16x16xf32>
    %cst_22 = arith.constant dense<0xFF800000> : vector<16xf32>
    %32 = vector.multi_reduction <maximumf>, %31, %cst_22 [1] : vector<16x16xf32> to vector<16xf32>
    %33 = vector.shape_cast %32 : vector<16xf32> to vector<16x1xf32>
    %34 = vector.broadcast %33 : vector<16x1xf32> to vector<16x16xf32>
    %35 = arith.subf %31, %34 : vector<16x16xf32>
    %36 = math.exp %35 : vector<16x16xf32>
    %cst_23 = arith.constant dense<0.000000e+00> : vector<16xf32>
    %37 = vector.multi_reduction <add>, %36, %cst_23 [1] : vector<16x16xf32> to vector<16xf32>
    %38 = vector.shape_cast %37 : vector<16xf32> to vector<16x1xf32>
    %39 = tpu.reciprocal %38 {approx = true} : vector<16x1xf32> -> vector<16x1xf32>
    %40 = vector.broadcast %39 : vector<16x1xf32> to vector<16x16xf32>
    %41 = arith.mulf %36, %40 : vector<16x16xf32>
    %42 = vector.extract_strided_slice %22 {offsets = [0, 0], sizes = [16, 8], strides = [1, 1]} : vector<16x32xf32> to vector<16x8xf32>
    %cst_24 = arith.constant dense<0.000000e+00> : vector<16x8xf32>
    %43 = tpu.matmul %41, %42, %cst_24 {dimension_numbers = #tpu.dot_dimension_numbers<[1], [0], [0], [1], [0, 0, 1, 1], [], []>} : vector<16x16xf32>, vector<16x8xf32>, vector<16x8xf32> -> vector<16x8xf32>
    %44 = vector.extract_strided_slice %24 {offsets = [0, 0], sizes = [8, 32], strides = [1, 1]} : vector<32x32xf32> to vector<8x32xf32>
    %cst_25 = arith.constant dense<0.000000e+00> : vector<16x32xf32>
    %45 = tpu.matmul %43, %44, %cst_25 {dimension_numbers = #tpu.dot_dimension_numbers<[1], [0], [0], [1], [0, 0, 1, 1], [], []>} : vector<16x8xf32>, vector<8x32xf32>, vector<16x32xf32> -> vector<16x32xf32>
    %46 = arith.addf %25, %45 : vector<16x32xf32>
    %47 = vector.extract_strided_slice %20 {offsets = [0, 8], sizes = [16, 8], strides = [1, 1]} : vector<16x32xf32> to vector<16x8xf32>
    %48 = vector.extract_strided_slice %21 {offsets = [0, 8], sizes = [16, 8], strides = [1, 1]} : vector<16x32xf32> to vector<16x8xf32>
    %cst_26 = arith.constant dense<0.000000e+00> : vector<16x16xf32>
    %49 = tpu.matmul %47, %48, %cst_26 {dimension_numbers = #tpu.dot_dimension_numbers<[1], [1], [0], [0], [0, 0, 1, 0], [], []>} : vector<16x8xf32>, vector<16x8xf32>, vector<16x16xf32> -> vector<16x16xf32>
    %50 = vector.extract_strided_slice %0 {offsets = [1, 0, 0], sizes = [1, 16, 16], strides = [1, 1, 1]} : vector<4x16x16xf32> to vector<1x16x16xf32>
    %51 = vector.shape_cast %50 : vector<1x16x16xf32> to vector<16x16xf32>
    %52 = arith.addf %49, %51 : vector<16x16xf32>
    %cst_27 = arith.constant dense<0xFF800000> : vector<16xf32>
    %53 = vector.multi_reduction <maximumf>, %52, %cst_27 [1] : vector<16x16xf32> to vector<16xf32>
    %54 = vector.shape_cast %53 : vector<16xf32> to vector<16x1xf32>
    %55 = vector.broadcast %54 : vector<16x1xf32> to vector<16x16xf32>
    %56 = arith.subf %52, %55 : vector<16x16xf32>
    %57 = math.exp %56 : vector<16x16xf32>
    %cst_28 = arith.constant dense<0.000000e+00> : vector<16xf32>
    %58 = vector.multi_reduction <add>, %57, %cst_28 [1] : vector<16x16xf32> to vector<16xf32>
    %59 = vector.shape_cast %58 : vector<16xf32> to vector<16x1xf32>
    %60 = tpu.reciprocal %59 {approx = true} : vector<16x1xf32> -> vector<16x1xf32>
    %61 = vector.broadcast %60 : vector<16x1xf32> to vector<16x16xf32>
    %62 = arith.mulf %57, %61 : vector<16x16xf32>
    %63 = vector.extract_strided_slice %22 {offsets = [0, 8], sizes = [16, 8], strides = [1, 1]} : vector<16x32xf32> to vector<16x8xf32>
    %cst_29 = arith.constant dense<0.000000e+00> : vector<16x8xf32>
    %64 = tpu.matmul %62, %63, %cst_29 {dimension_numbers = #tpu.dot_dimension_numbers<[1], [0], [0], [1], [0, 0, 1, 1], [], []>} : vector<16x16xf32>, vector<16x8xf32>, vector<16x8xf32> -> vector<16x8xf32>
    %65 = vector.extract_strided_slice %24 {offsets = [8, 0], sizes = [8, 32], strides = [1, 1]} : vector<32x32xf32> to vector<8x32xf32>
    %cst_30 = arith.constant dense<0.000000e+00> : vector<16x32xf32>
    %66 = tpu.matmul %64, %65, %cst_30 {dimension_numbers = #tpu.dot_dimension_numbers<[1], [0], [0], [1], [0, 0, 1, 1], [], []>} : vector<16x8xf32>, vector<8x32xf32>, vector<16x32xf32> -> vector<16x32xf32>
    %67 = arith.addf %46, %66 : vector<16x32xf32>
    %68 = vector.extract_strided_slice %20 {offsets = [0, 16], sizes = [16, 8], strides = [1, 1]} : vector<16x32xf32> to vector<16x8xf32>
    %69 = vector.extract_strided_slice %21 {offsets = [0, 16], sizes = [16, 8], strides = [1, 1]} : vector<16x32xf32> to vector<16x8xf32>
    %cst_31 = arith.constant dense<0.000000e+00> : vector<16x16xf32>
    %70 = tpu.matmul %68, %69, %cst_31 {dimension_numbers = #tpu.dot_dimension_numbers<[1], [1], [0], [0], [0, 0, 1, 0], [], []>} : vector<16x8xf32>, vector<16x8xf32>, vector<16x16xf32> -> vector<16x16xf32>
    %71 = vector.extract_strided_slice %0 {offsets = [2, 0, 0], sizes = [1, 16, 16], strides = [1, 1, 1]} : vector<4x16x16xf32> to vector<1x16x16xf32>
    %72 = vector.shape_cast %71 : vector<1x16x16xf32> to vector<16x16xf32>
    %73 = arith.addf %70, %72 : vector<16x16xf32>
    %cst_32 = arith.constant dense<0xFF800000> : vector<16xf32>
    %74 = vector.multi_reduction <maximumf>, %73, %cst_32 [1] : vector<16x16xf32> to vector<16xf32>
    %75 = vector.shape_cast %74 : vector<16xf32> to vector<16x1xf32>
    %76 = vector.broadcast %75 : vector<16x1xf32> to vector<16x16xf32>
    %77 = arith.subf %73, %76 : vector<16x16xf32>
    %78 = math.exp %77 : vector<16x16xf32>
    %cst_33 = arith.constant dense<0.000000e+00> : vector<16xf32>
    %79 = vector.multi_reduction <add>, %78, %cst_33 [1] : vector<16x16xf32> to vector<16xf32>
    %80 = vector.shape_cast %79 : vector<16xf32> to vector<16x1xf32>
    %81 = tpu.reciprocal %80 {approx = true} : vector<16x1xf32> -> vector<16x1xf32>
    %82 = vector.broadcast %81 : vector<16x1xf32> to vector<16x16xf32>
    %83 = arith.mulf %78, %82 : vector<16x16xf32>
    %84 = vector.extract_strided_slice %22 {offsets = [0, 16], sizes = [16, 8], strides = [1, 1]} : vector<16x32xf32> to vector<16x8xf32>
    %cst_34 = arith.constant dense<0.000000e+00> : vector<16x8xf32>
    %85 = tpu.matmul %83, %84, %cst_34 {dimension_numbers = #tpu.dot_dimension_numbers<[1], [0], [0], [1], [0, 0, 1, 1], [], []>} : vector<16x16xf32>, vector<16x8xf32>, vector<16x8xf32> -> vector<16x8xf32>
    %86 = vector.extract_strided_slice %24 {offsets = [16, 0], sizes = [8, 32], strides = [1, 1]} : vector<32x32xf32> to vector<8x32xf32>
    %cst_35 = arith.constant dense<0.000000e+00> : vector<16x32xf32>
    %87 = tpu.matmul %85, %86, %cst_35 {dimension_numbers = #tpu.dot_dimension_numbers<[1], [0], [0], [1], [0, 0, 1, 1], [], []>} : vector<16x8xf32>, vector<8x32xf32>, vector<16x32xf32> -> vector<16x32xf32>
    %88 = arith.addf %67, %87 : vector<16x32xf32>
    %89 = vector.extract_strided_slice %20 {offsets = [0, 24], sizes = [16, 8], strides = [1, 1]} : vector<16x32xf32> to vector<16x8xf32>
    %90 = vector.extract_strided_slice %21 {offsets = [0, 24], sizes = [16, 8], strides = [1, 1]} : vector<16x32xf32> to vector<16x8xf32>
    %cst_36 = arith.constant dense<0.000000e+00> : vector<16x16xf32>
    %91 = tpu.matmul %89, %90, %cst_36 {dimension_numbers = #tpu.dot_dimension_numbers<[1], [1], [0], [0], [0, 0, 1, 0], [], []>} : vector<16x8xf32>, vector<16x8xf32>, vector<16x16xf32> -> vector<16x16xf32>
    %92 = vector.extract_strided_slice %0 {offsets = [3, 0, 0], sizes = [1, 16, 16], strides = [1, 1, 1]} : vector<4x16x16xf32> to vector<1x16x16xf32>
    %93 = vector.shape_cast %92 : vector<1x16x16xf32> to vector<16x16xf32>
    %94 = arith.addf %91, %93 : vector<16x16xf32>
    %cst_37 = arith.constant dense<0xFF800000> : vector<16xf32>
    %95 = vector.multi_reduction <maximumf>, %94, %cst_37 [1] : vector<16x16xf32> to vector<16xf32>
    %96 = vector.shape_cast %95 : vector<16xf32> to vector<16x1xf32>
    %97 = vector.broadcast %96 : vector<16x1xf32> to vector<16x16xf32>
    %98 = arith.subf %94, %97 : vector<16x16xf32>
    %99 = math.exp %98 : vector<16x16xf32>
    %cst_38 = arith.constant dense<0.000000e+00> : vector<16xf32>
    %100 = vector.multi_reduction <add>, %99, %cst_38 [1] : vector<16x16xf32> to vector<16xf32>
    %101 = vector.shape_cast %100 : vector<16xf32> to vector<16x1xf32>
    %102 = tpu.reciprocal %101 {approx = true} : vector<16x1xf32> -> vector<16x1xf32>
    %103 = vector.broadcast %102 : vector<16x1xf32> to vector<16x16xf32>
    %104 = arith.mulf %99, %103 : vector<16x16xf32>
    %105 = vector.extract_strided_slice %22 {offsets = [0, 24], sizes = [16, 8], strides = [1, 1]} : vector<16x32xf32> to vector<16x8xf32>
    %cst_39 = arith.constant dense<0.000000e+00> : vector<16x8xf32>
    %106 = tpu.matmul %104, %105, %cst_39 {dimension_numbers = #tpu.dot_dimension_numbers<[1], [0], [0], [1], [0, 0, 1, 1], [], []>} : vector<16x16xf32>, vector<16x8xf32>, vector<16x8xf32> -> vector<16x8xf32>
    %107 = vector.extract_strided_slice %24 {offsets = [24, 0], sizes = [8, 32], strides = [1, 1]} : vector<32x32xf32> to vector<8x32xf32>
    %cst_40 = arith.constant dense<0.000000e+00> : vector<16x32xf32>
    %108 = tpu.matmul %106, %107, %cst_40 {dimension_numbers = #tpu.dot_dimension_numbers<[1], [0], [0], [1], [0, 0, 1, 1], [], []>} : vector<16x8xf32>, vector<8x32xf32>, vector<16x32xf32> -> vector<16x32xf32>
    %109 = arith.addf %88, %108 : vector<16x32xf32>
    %110 = arith.addf %3, %109 : vector<16x32xf32>
    %c0_41 = arith.constant 0 : index
    %c0_42 = arith.constant 0 : index
    %111 = vector.load %arg8[%c0_41, %c0_42] : memref<2x32xf32, #tpu.memory_space<vmem>>, vector<1x32xf32>
    %112 = arith.mulf %110, %110 : vector<16x32xf32>
    %cst_43 = arith.constant dense<0.000000e+00> : vector<16xf32>
    %113 = vector.multi_reduction <add>, %112, %cst_43 [1] : vector<16x32xf32> to vector<16xf32>
    %114 = vector.shape_cast %113 : vector<16xf32> to vector<16x1xf32>
    %cst_44 = arith.constant 3.200000e+01 : f32
    %115 = vector.broadcast %cst_44 : f32 to vector<16x1xf32>
    %116 = arith.divf %114, %115 : vector<16x1xf32>
    %cst_45 = arith.constant 9.99999997E-7 : f32
    %117 = vector.broadcast %cst_45 : f32 to vector<16x1xf32>
    %118 = arith.addf %116, %117 : vector<16x1xf32>
    %119 = math.rsqrt %118 : vector<16x1xf32>
    %120 = vector.broadcast %119 : vector<16x1xf32> to vector<16x32xf32>
    %121 = arith.mulf %110, %120 : vector<16x32xf32>
    %122 = vector.broadcast %111 : vector<1x32xf32> to vector<16x32xf32>
    %123 = arith.mulf %121, %122 : vector<16x32xf32>
    %c0_46 = arith.constant 0 : index
    %c0_47 = arith.constant 0 : index
    %c0_48 = arith.constant 0 : index
    %124 = vector.load %arg9[%c0_46, %c0_47, %c0_48] : memref<2x32x64xf32, #tpu.memory_space<vmem>>, vector<1x32x64xf32>
    %125 = vector.shape_cast %124 : vector<1x32x64xf32> to vector<32x64xf32>
    %cst_49 = arith.constant dense<0.000000e+00> : vector<16x64xf32>
    %126 = tpu.matmul %123, %125, %cst_49 {dimension_numbers = #tpu.dot_dimension_numbers<[1], [0], [0], [1], [0, 0, 1, 1], [], []>} : vector<16x32xf32>, vector<32x64xf32>, vector<16x64xf32> -> vector<16x64xf32>
    %cst_50 = arith.constant 0.000000e+00 : f32
    %127 = vector.broadcast %cst_50 : f32 to vector<16x64xf32>
    %128 = arith.maximumf %126, %127 : vector<16x64xf32>
    %c0_51 = arith.constant 0 : index
    %c0_52 = arith.constant 0 : index
    %c0_53 = arith.constant 0 : index
    %129 = vector.load %arg10[%c0_51, %c0_52, %c0_53] : memref<2x64x32xf32, #tpu.memory_space<vmem>>, vector<1x64x32xf32>
    %130 = vector.shape_cast %129 : vector<1x64x32xf32> to vector<64x32xf32>
    %cst_54 = arith.constant dense<0.000000e+00> : vector<16x32xf32>
    %131 = tpu.matmul %128, %130, %cst_54 {dimension_numbers = #tpu.dot_dimension_numbers<[1], [0], [0], [1], [0, 0, 1, 1], [], []>} : vector<16x64xf32>, vector<64x32xf32>, vector<16x32xf32> -> vector<16x32xf32>
    %132 = arith.addf %110, %131 : vector<16x32xf32>
    %c1 = arith.constant 1 : index
    %c0_55 = arith.constant 0 : index
    %133 = vector.load %arg5[%c1, %c0_55] : memref<2x32xf32, #tpu.memory_space<vmem>>, vector<1x32xf32>
    %134 = arith.mulf %132, %132 : vector<16x32xf32>
    %cst_56 = arith.constant dense<0.000000e+00> : vector<16xf32>
    %135 = vector.multi_reduction <add>, %134, %cst_56 [1] : vector<16x32xf32> to vector<16xf32>
    %136 = vector.shape_cast %135 : vector<16xf32> to vector<16x1xf32>
    %cst_57 = arith.constant 3.200000e+01 : f32
    %137 = vector.broadcast %cst_57 : f32 to vector<16x1xf32>
    %138 = arith.divf %136, %137 : vector<16x1xf32>
    %cst_58 = arith.constant 9.99999997E-7 : f32
    %139 = vector.broadcast %cst_58 : f32 to vector<16x1xf32>
    %140 = arith.addf %138, %139 : vector<16x1xf32>
    %141 = math.rsqrt %140 : vector<16x1xf32>
    %142 = vector.broadcast %141 : vector<16x1xf32> to vector<16x32xf32>
    %143 = arith.mulf %132, %142 : vector<16x32xf32>
    %144 = vector.broadcast %133 : vector<1x32xf32> to vector<16x32xf32>
    %145 = arith.mulf %143, %144 : vector<16x32xf32>
    %c1_59 = arith.constant 1 : index
    %c0_60 = arith.constant 0 : index
    %c0_61 = arith.constant 0 : index
    %146 = vector.load %arg6[%c1_59, %c0_60, %c0_61] : memref<2x32x96xf32, #tpu.memory_space<vmem>>, vector<1x32x96xf32>
    %147 = vector.shape_cast %146 : vector<1x32x96xf32> to vector<32x96xf32>
    %cst_62 = arith.constant dense<0.000000e+00> : vector<16x96xf32>
    %148 = tpu.matmul %145, %147, %cst_62 {dimension_numbers = #tpu.dot_dimension_numbers<[1], [0], [0], [1], [0, 0, 1, 1], [], []>} : vector<16x32xf32>, vector<32x96xf32>, vector<16x96xf32> -> vector<16x96xf32>
    %149 = vector.extract_strided_slice %148 {offsets = [0, 0], sizes = [16, 32], strides = [1, 1]} : vector<16x96xf32> to vector<16x32xf32>
    %150 = vector.extract_strided_slice %148 {offsets = [0, 32], sizes = [16, 32], strides = [1, 1]} : vector<16x96xf32> to vector<16x32xf32>
    %151 = vector.extract_strided_slice %148 {offsets = [0, 64], sizes = [16, 32], strides = [1, 1]} : vector<16x96xf32> to vector<16x32xf32>
    %c1_63 = arith.constant 1 : index
    %c0_64 = arith.constant 0 : index
    %c0_65 = arith.constant 0 : index
    %152 = vector.load %arg7[%c1_63, %c0_64, %c0_65] : memref<2x32x32xf32, #tpu.memory_space<vmem>>, vector<1x32x32xf32>
    %153 = vector.shape_cast %152 : vector<1x32x32xf32> to vector<32x32xf32>
    %cst_66 = arith.constant 0.000000e+00 : f32
    %154 = vector.broadcast %cst_66 : f32 to vector<16x32xf32>
    %155 = vector.extract_strided_slice %149 {offsets = [0, 0], sizes = [16, 8], strides = [1, 1]} : vector<16x32xf32> to vector<16x8xf32>
    %156 = vector.extract_strided_slice %150 {offsets = [0, 0], sizes = [16, 8], strides = [1, 1]} : vector<16x32xf32> to vector<16x8xf32>
    %cst_67 = arith.constant dense<0.000000e+00> : vector<16x16xf32>
    %157 = tpu.matmul %155, %156, %cst_67 {dimension_numbers = #tpu.dot_dimension_numbers<[1], [1], [0], [0], [0, 0, 1, 0], [], []>} : vector<16x8xf32>, vector<16x8xf32>, vector<16x16xf32> -> vector<16x16xf32>
    %158 = vector.extract_strided_slice %0 {offsets = [0, 0, 0], sizes = [1, 16, 16], strides = [1, 1, 1]} : vector<4x16x16xf32> to vector<1x16x16xf32>
    %159 = vector.shape_cast %158 : vector<1x16x16xf32> to vector<16x16xf32>
    %160 = arith.addf %157, %159 : vector<16x16xf32>
    %cst_68 = arith.constant dense<0xFF800000> : vector<16xf32>
    %161 = vector.multi_reduction <maximumf>, %160, %cst_68 [1] : vector<16x16xf32> to vector<16xf32>
    %162 = vector.shape_cast %161 : vector<16xf32> to vector<16x1xf32>
    %163 = vector.broadcast %162 : vector<16x1xf32> to vector<16x16xf32>
    %164 = arith.subf %160, %163 : vector<16x16xf32>
    %165 = math.exp %164 : vector<16x16xf32>
    %cst_69 = arith.constant dense<0.000000e+00> : vector<16xf32>
    %166 = vector.multi_reduction <add>, %165, %cst_69 [1] : vector<16x16xf32> to vector<16xf32>
    %167 = vector.shape_cast %166 : vector<16xf32> to vector<16x1xf32>
    %168 = tpu.reciprocal %167 {approx = true} : vector<16x1xf32> -> vector<16x1xf32>
    %169 = vector.broadcast %168 : vector<16x1xf32> to vector<16x16xf32>
    %170 = arith.mulf %165, %169 : vector<16x16xf32>
    %171 = vector.extract_strided_slice %151 {offsets = [0, 0], sizes = [16, 8], strides = [1, 1]} : vector<16x32xf32> to vector<16x8xf32>
    %cst_70 = arith.constant dense<0.000000e+00> : vector<16x8xf32>
    %172 = tpu.matmul %170, %171, %cst_70 {dimension_numbers = #tpu.dot_dimension_numbers<[1], [0], [0], [1], [0, 0, 1, 1], [], []>} : vector<16x16xf32>, vector<16x8xf32>, vector<16x8xf32> -> vector<16x8xf32>
    %173 = vector.extract_strided_slice %153 {offsets = [0, 0], sizes = [8, 32], strides = [1, 1]} : vector<32x32xf32> to vector<8x32xf32>
    %cst_71 = arith.constant dense<0.000000e+00> : vector<16x32xf32>
    %174 = tpu.matmul %172, %173, %cst_71 {dimension_numbers = #tpu.dot_dimension_numbers<[1], [0], [0], [1], [0, 0, 1, 1], [], []>} : vector<16x8xf32>, vector<8x32xf32>, vector<16x32xf32> -> vector<16x32xf32>
    %175 = arith.addf %154, %174 : vector<16x32xf32>
    %176 = vector.extract_strided_slice %149 {offsets = [0, 8], sizes = [16, 8], strides = [1, 1]} : vector<16x32xf32> to vector<16x8xf32>
    %177 = vector.extract_strided_slice %150 {offsets = [0, 8], sizes = [16, 8], strides = [1, 1]} : vector<16x32xf32> to vector<16x8xf32>
    %cst_72 = arith.constant dense<0.000000e+00> : vector<16x16xf32>
    %178 = tpu.matmul %176, %177, %cst_72 {dimension_numbers = #tpu.dot_dimension_numbers<[1], [1], [0], [0], [0, 0, 1, 0], [], []>} : vector<16x8xf32>, vector<16x8xf32>, vector<16x16xf32> -> vector<16x16xf32>
    %179 = vector.extract_strided_slice %0 {offsets = [1, 0, 0], sizes = [1, 16, 16], strides = [1, 1, 1]} : vector<4x16x16xf32> to vector<1x16x16xf32>
    %180 = vector.shape_cast %179 : vector<1x16x16xf32> to vector<16x16xf32>
    %181 = arith.addf %178, %180 : vector<16x16xf32>
    %cst_73 = arith.constant dense<0xFF800000> : vector<16xf32>
    %182 = vector.multi_reduction <maximumf>, %181, %cst_73 [1] : vector<16x16xf32> to vector<16xf32>
    %183 = vector.shape_cast %182 : vector<16xf32> to vector<16x1xf32>
    %184 = vector.broadcast %183 : vector<16x1xf32> to vector<16x16xf32>
    %185 = arith.subf %181, %184 : vector<16x16xf32>
    %186 = math.exp %185 : vector<16x16xf32>
    %cst_74 = arith.constant dense<0.000000e+00> : vector<16xf32>
    %187 = vector.multi_reduction <add>, %186, %cst_74 [1] : vector<16x16xf32> to vector<16xf32>
    %188 = vector.shape_cast %187 : vector<16xf32> to vector<16x1xf32>
    %189 = tpu.reciprocal %188 {approx = true} : vector<16x1xf32> -> vector<16x1xf32>
    %190 = vector.broadcast %189 : vector<16x1xf32> to vector<16x16xf32>
    %191 = arith.mulf %186, %190 : vector<16x16xf32>
    %192 = vector.extract_strided_slice %151 {offsets = [0, 8], sizes = [16, 8], strides = [1, 1]} : vector<16x32xf32> to vector<16x8xf32>
    %cst_75 = arith.constant dense<0.000000e+00> : vector<16x8xf32>
    %193 = tpu.matmul %191, %192, %cst_75 {dimension_numbers = #tpu.dot_dimension_numbers<[1], [0], [0], [1], [0, 0, 1, 1], [], []>} : vector<16x16xf32>, vector<16x8xf32>, vector<16x8xf32> -> vector<16x8xf32>
    %194 = vector.extract_strided_slice %153 {offsets = [8, 0], sizes = [8, 32], strides = [1, 1]} : vector<32x32xf32> to vector<8x32xf32>
    %cst_76 = arith.constant dense<0.000000e+00> : vector<16x32xf32>
    %195 = tpu.matmul %193, %194, %cst_76 {dimension_numbers = #tpu.dot_dimension_numbers<[1], [0], [0], [1], [0, 0, 1, 1], [], []>} : vector<16x8xf32>, vector<8x32xf32>, vector<16x32xf32> -> vector<16x32xf32>
    %196 = arith.addf %175, %195 : vector<16x32xf32>
    %197 = vector.extract_strided_slice %149 {offsets = [0, 16], sizes = [16, 8], strides = [1, 1]} : vector<16x32xf32> to vector<16x8xf32>
    %198 = vector.extract_strided_slice %150 {offsets = [0, 16], sizes = [16, 8], strides = [1, 1]} : vector<16x32xf32> to vector<16x8xf32>
    %cst_77 = arith.constant dense<0.000000e+00> : vector<16x16xf32>
    %199 = tpu.matmul %197, %198, %cst_77 {dimension_numbers = #tpu.dot_dimension_numbers<[1], [1], [0], [0], [0, 0, 1, 0], [], []>} : vector<16x8xf32>, vector<16x8xf32>, vector<16x16xf32> -> vector<16x16xf32>
    %200 = vector.extract_strided_slice %0 {offsets = [2, 0, 0], sizes = [1, 16, 16], strides = [1, 1, 1]} : vector<4x16x16xf32> to vector<1x16x16xf32>
    %201 = vector.shape_cast %200 : vector<1x16x16xf32> to vector<16x16xf32>
    %202 = arith.addf %199, %201 : vector<16x16xf32>
    %cst_78 = arith.constant dense<0xFF800000> : vector<16xf32>
    %203 = vector.multi_reduction <maximumf>, %202, %cst_78 [1] : vector<16x16xf32> to vector<16xf32>
    %204 = vector.shape_cast %203 : vector<16xf32> to vector<16x1xf32>
    %205 = vector.broadcast %204 : vector<16x1xf32> to vector<16x16xf32>
    %206 = arith.subf %202, %205 : vector<16x16xf32>
    %207 = math.exp %206 : vector<16x16xf32>
    %cst_79 = arith.constant dense<0.000000e+00> : vector<16xf32>
    %208 = vector.multi_reduction <add>, %207, %cst_79 [1] : vector<16x16xf32> to vector<16xf32>
    %209 = vector.shape_cast %208 : vector<16xf32> to vector<16x1xf32>
    %210 = tpu.reciprocal %209 {approx = true} : vector<16x1xf32> -> vector<16x1xf32>
    %211 = vector.broadcast %210 : vector<16x1xf32> to vector<16x16xf32>
    %212 = arith.mulf %207, %211 : vector<16x16xf32>
    %213 = vector.extract_strided_slice %151 {offsets = [0, 16], sizes = [16, 8], strides = [1, 1]} : vector<16x32xf32> to vector<16x8xf32>
    %cst_80 = arith.constant dense<0.000000e+00> : vector<16x8xf32>
    %214 = tpu.matmul %212, %213, %cst_80 {dimension_numbers = #tpu.dot_dimension_numbers<[1], [0], [0], [1], [0, 0, 1, 1], [], []>} : vector<16x16xf32>, vector<16x8xf32>, vector<16x8xf32> -> vector<16x8xf32>
    %215 = vector.extract_strided_slice %153 {offsets = [16, 0], sizes = [8, 32], strides = [1, 1]} : vector<32x32xf32> to vector<8x32xf32>
    %cst_81 = arith.constant dense<0.000000e+00> : vector<16x32xf32>
    %216 = tpu.matmul %214, %215, %cst_81 {dimension_numbers = #tpu.dot_dimension_numbers<[1], [0], [0], [1], [0, 0, 1, 1], [], []>} : vector<16x8xf32>, vector<8x32xf32>, vector<16x32xf32> -> vector<16x32xf32>
    %217 = arith.addf %196, %216 : vector<16x32xf32>
    %218 = vector.extract_strided_slice %149 {offsets = [0, 24], sizes = [16, 8], strides = [1, 1]} : vector<16x32xf32> to vector<16x8xf32>
    %219 = vector.extract_strided_slice %150 {offsets = [0, 24], sizes = [16, 8], strides = [1, 1]} : vector<16x32xf32> to vector<16x8xf32>
    %cst_82 = arith.constant dense<0.000000e+00> : vector<16x16xf32>
    %220 = tpu.matmul %218, %219, %cst_82 {dimension_numbers = #tpu.dot_dimension_numbers<[1], [1], [0], [0], [0, 0, 1, 0], [], []>} : vector<16x8xf32>, vector<16x8xf32>, vector<16x16xf32> -> vector<16x16xf32>
    %221 = vector.extract_strided_slice %0 {offsets = [3, 0, 0], sizes = [1, 16, 16], strides = [1, 1, 1]} : vector<4x16x16xf32> to vector<1x16x16xf32>
    %222 = vector.shape_cast %221 : vector<1x16x16xf32> to vector<16x16xf32>
    %223 = arith.addf %220, %222 : vector<16x16xf32>
    %cst_83 = arith.constant dense<0xFF800000> : vector<16xf32>
    %224 = vector.multi_reduction <maximumf>, %223, %cst_83 [1] : vector<16x16xf32> to vector<16xf32>
    %225 = vector.shape_cast %224 : vector<16xf32> to vector<16x1xf32>
    %226 = vector.broadcast %225 : vector<16x1xf32> to vector<16x16xf32>
    %227 = arith.subf %223, %226 : vector<16x16xf32>
    %228 = math.exp %227 : vector<16x16xf32>
    %cst_84 = arith.constant dense<0.000000e+00> : vector<16xf32>
    %229 = vector.multi_reduction <add>, %228, %cst_84 [1] : vector<16x16xf32> to vector<16xf32>
    %230 = vector.shape_cast %229 : vector<16xf32> to vector<16x1xf32>
    %231 = tpu.reciprocal %230 {approx = true} : vector<16x1xf32> -> vector<16x1xf32>
    %232 = vector.broadcast %231 : vector<16x1xf32> to vector<16x16xf32>
    %233 = arith.mulf %228, %232 : vector<16x16xf32>
    %234 = vector.extract_strided_slice %151 {offsets = [0, 24], sizes = [16, 8], strides = [1, 1]} : vector<16x32xf32> to vector<16x8xf32>
    %cst_85 = arith.constant dense<0.000000e+00> : vector<16x8xf32>
    %235 = tpu.matmul %233, %234, %cst_85 {dimension_numbers = #tpu.dot_dimension_numbers<[1], [0], [0], [1], [0, 0, 1, 1], [], []>} : vector<16x16xf32>, vector<16x8xf32>, vector<16x8xf32> -> vector<16x8xf32>
    %236 = vector.extract_strided_slice %153 {offsets = [24, 0], sizes = [8, 32], strides = [1, 1]} : vector<32x32xf32> to vector<8x32xf32>
    %cst_86 = arith.constant dense<0.000000e+00> : vector<16x32xf32>
    %237 = tpu.matmul %235, %236, %cst_86 {dimension_numbers = #tpu.dot_dimension_numbers<[1], [0], [0], [1], [0, 0, 1, 1], [], []>} : vector<16x8xf32>, vector<8x32xf32>, vector<16x32xf32> -> vector<16x32xf32>
    %238 = arith.addf %217, %237 : vector<16x32xf32>
    %239 = arith.addf %132, %238 : vector<16x32xf32>
    %c1_87 = arith.constant 1 : index
    %c0_88 = arith.constant 0 : index
    %240 = vector.load %arg8[%c1_87, %c0_88] : memref<2x32xf32, #tpu.memory_space<vmem>>, vector<1x32xf32>
    %241 = arith.mulf %239, %239 : vector<16x32xf32>
    %cst_89 = arith.constant dense<0.000000e+00> : vector<16xf32>
    %242 = vector.multi_reduction <add>, %241, %cst_89 [1] : vector<16x32xf32> to vector<16xf32>
    %243 = vector.shape_cast %242 : vector<16xf32> to vector<16x1xf32>
    %cst_90 = arith.constant 3.200000e+01 : f32
    %244 = vector.broadcast %cst_90 : f32 to vector<16x1xf32>
    %245 = arith.divf %243, %244 : vector<16x1xf32>
    %cst_91 = arith.constant 9.99999997E-7 : f32
    %246 = vector.broadcast %cst_91 : f32 to vector<16x1xf32>
    %247 = arith.addf %245, %246 : vector<16x1xf32>
    %248 = math.rsqrt %247 : vector<16x1xf32>
    %249 = vector.broadcast %248 : vector<16x1xf32> to vector<16x32xf32>
    %250 = arith.mulf %239, %249 : vector<16x32xf32>
    %251 = vector.broadcast %240 : vector<1x32xf32> to vector<16x32xf32>
    %252 = arith.mulf %250, %251 : vector<16x32xf32>
    %c1_92 = arith.constant 1 : index
    %c0_93 = arith.constant 0 : index
    %c0_94 = arith.constant 0 : index
    %253 = vector.load %arg9[%c1_92, %c0_93, %c0_94] : memref<2x32x64xf32, #tpu.memory_space<vmem>>, vector<1x32x64xf32>
    %254 = vector.shape_cast %253 : vector<1x32x64xf32> to vector<32x64xf32>
    %cst_95 = arith.constant dense<0.000000e+00> : vector<16x64xf32>
    %255 = tpu.matmul %252, %254, %cst_95 {dimension_numbers = #tpu.dot_dimension_numbers<[1], [0], [0], [1], [0, 0, 1, 1], [], []>} : vector<16x32xf32>, vector<32x64xf32>, vector<16x64xf32> -> vector<16x64xf32>
    %cst_96 = arith.constant 0.000000e+00 : f32
    %256 = vector.broadcast %cst_96 : f32 to vector<16x64xf32>
    %257 = arith.maximumf %255, %256 : vector<16x64xf32>
    %c1_97 = arith.constant 1 : index
    %c0_98 = arith.constant 0 : index
    %c0_99 = arith.constant 0 : index
    %258 = vector.load %arg10[%c1_97, %c0_98, %c0_99] : memref<2x64x32xf32, #tpu.memory_space<vmem>>, vector<1x64x32xf32>
    %259 = vector.shape_cast %258 : vector<1x64x32xf32> to vector<64x32xf32>
    %cst_100 = arith.constant dense<0.000000e+00> : vector<16x32xf32>
    %260 = tpu.matmul %257, %259, %cst_100 {dimension_numbers = #tpu.dot_dimension_numbers<[1], [0], [0], [1], [0, 0, 1, 1], [], []>} : vector<16x64xf32>, vector<64x32xf32>, vector<16x32xf32> -> vector<16x32xf32>
    %261 = arith.addf %239, %260 : vector<16x32xf32>
    %c0_101 = arith.constant 0 : index
    %c0_102 = arith.constant 0 : index
    %262 = vector.load %arg11[%c0_101, %c0_102] : memref<1x32xf32, #tpu.memory_space<vmem>>, vector<1x32xf32>
    %263 = arith.mulf %261, %261 : vector<16x32xf32>
    %cst_103 = arith.constant dense<0.000000e+00> : vector<16xf32>
    %264 = vector.multi_reduction <add>, %263, %cst_103 [1] : vector<16x32xf32> to vector<16xf32>
    %265 = vector.shape_cast %264 : vector<16xf32> to vector<16x1xf32>
    %cst_104 = arith.constant 3.200000e+01 : f32
    %266 = vector.broadcast %cst_104 : f32 to vector<16x1xf32>
    %267 = arith.divf %265, %266 : vector<16x1xf32>
    %cst_105 = arith.constant 9.99999997E-7 : f32
    %268 = vector.broadcast %cst_105 : f32 to vector<16x1xf32>
    %269 = arith.addf %267, %268 : vector<16x1xf32>
    %270 = math.rsqrt %269 : vector<16x1xf32>
    %271 = vector.broadcast %270 : vector<16x1xf32> to vector<16x32xf32>
    %272 = arith.mulf %261, %271 : vector<16x32xf32>
    %273 = vector.broadcast %262 : vector<1x32xf32> to vector<16x32xf32>
    %274 = arith.mulf %272, %273 : vector<16x32xf32>
    %c0_106 = arith.constant 0 : index
    %c0_107 = arith.constant 0 : index
    %275 = vector.load %arg1[%c0_106, %c0_107] : memref<16x32xf32, #tpu.memory_space<vmem>>, vector<16x32xf32>
    %c0_108 = arith.constant 0 : index
    %c0_109 = arith.constant 0 : index
    %276 = vector.load %arg12[%c0_108, %c0_109] : memref<2x32xf32, #tpu.memory_space<vmem>>, vector<1x32xf32>
    %277 = arith.mulf %275, %275 : vector<16x32xf32>
    %cst_110 = arith.constant dense<0.000000e+00> : vector<16xf32>
    %278 = vector.multi_reduction <add>, %277, %cst_110 [1] : vector<16x32xf32> to vector<16xf32>
    %279 = vector.shape_cast %278 : vector<16xf32> to vector<16x1xf32>
    %cst_111 = arith.constant 3.200000e+01 : f32
    %280 = vector.broadcast %cst_111 : f32 to vector<16x1xf32>
    %281 = arith.divf %279, %280 : vector<16x1xf32>
    %cst_112 = arith.constant 9.99999997E-7 : f32
    %282 = vector.broadcast %cst_112 : f32 to vector<16x1xf32>
    %283 = arith.addf %281, %282 : vector<16x1xf32>
    %284 = math.rsqrt %283 : vector<16x1xf32>
    %285 = vector.broadcast %284 : vector<16x1xf32> to vector<16x32xf32>
    %286 = arith.mulf %275, %285 : vector<16x32xf32>
    %287 = vector.broadcast %276 : vector<1x32xf32> to vector<16x32xf32>
    %288 = arith.mulf %286, %287 : vector<16x32xf32>
    %c0_113 = arith.constant 0 : index
    %c0_114 = arith.constant 0 : index
    %c0_115 = arith.constant 0 : index
    %289 = vector.load %arg13[%c0_113, %c0_114, %c0_115] : memref<2x32x96xf32, #tpu.memory_space<vmem>>, vector<1x32x96xf32>
    %290 = vector.shape_cast %289 : vector<1x32x96xf32> to vector<32x96xf32>
    %cst_116 = arith.constant dense<0.000000e+00> : vector<16x96xf32>
    %291 = tpu.matmul %288, %290, %cst_116 {dimension_numbers = #tpu.dot_dimension_numbers<[1], [0], [0], [1], [0, 0, 1, 1], [], []>} : vector<16x32xf32>, vector<32x96xf32>, vector<16x96xf32> -> vector<16x96xf32>
    %292 = vector.extract_strided_slice %291 {offsets = [0, 0], sizes = [16, 32], strides = [1, 1]} : vector<16x96xf32> to vector<16x32xf32>
    %293 = vector.extract_strided_slice %291 {offsets = [0, 32], sizes = [16, 32], strides = [1, 1]} : vector<16x96xf32> to vector<16x32xf32>
    %294 = vector.extract_strided_slice %291 {offsets = [0, 64], sizes = [16, 32], strides = [1, 1]} : vector<16x96xf32> to vector<16x32xf32>
    %c0_117 = arith.constant 0 : index
    %c0_118 = arith.constant 0 : index
    %c0_119 = arith.constant 0 : index
    %295 = vector.load %arg14[%c0_117, %c0_118, %c0_119] : memref<2x32x32xf32, #tpu.memory_space<vmem>>, vector<1x32x32xf32>
    %296 = vector.shape_cast %295 : vector<1x32x32xf32> to vector<32x32xf32>
    %cst_120 = arith.constant 0.000000e+00 : f32
    %297 = vector.broadcast %cst_120 : f32 to vector<16x32xf32>
    %298 = vector.extract_strided_slice %292 {offsets = [0, 0], sizes = [16, 8], strides = [1, 1]} : vector<16x32xf32> to vector<16x8xf32>
    %299 = vector.extract_strided_slice %293 {offsets = [0, 0], sizes = [16, 8], strides = [1, 1]} : vector<16x32xf32> to vector<16x8xf32>
    %cst_121 = arith.constant dense<0.000000e+00> : vector<16x16xf32>
    %300 = tpu.matmul %298, %299, %cst_121 {dimension_numbers = #tpu.dot_dimension_numbers<[1], [1], [0], [0], [0, 0, 1, 0], [], []>} : vector<16x8xf32>, vector<16x8xf32>, vector<16x16xf32> -> vector<16x16xf32>
    %301 = vector.extract_strided_slice %1 {offsets = [0, 0, 0], sizes = [1, 16, 16], strides = [1, 1, 1]} : vector<4x16x16xf32> to vector<1x16x16xf32>
    %302 = vector.shape_cast %301 : vector<1x16x16xf32> to vector<16x16xf32>
    %303 = arith.addf %300, %302 : vector<16x16xf32>
    %cst_122 = arith.constant dense<0xFF800000> : vector<16xf32>
    %304 = vector.multi_reduction <maximumf>, %303, %cst_122 [1] : vector<16x16xf32> to vector<16xf32>
    %305 = vector.shape_cast %304 : vector<16xf32> to vector<16x1xf32>
    %306 = vector.broadcast %305 : vector<16x1xf32> to vector<16x16xf32>
    %307 = arith.subf %303, %306 : vector<16x16xf32>
    %308 = math.exp %307 : vector<16x16xf32>
    %cst_123 = arith.constant dense<0.000000e+00> : vector<16xf32>
    %309 = vector.multi_reduction <add>, %308, %cst_123 [1] : vector<16x16xf32> to vector<16xf32>
    %310 = vector.shape_cast %309 : vector<16xf32> to vector<16x1xf32>
    %311 = tpu.reciprocal %310 {approx = true} : vector<16x1xf32> -> vector<16x1xf32>
    %312 = vector.broadcast %311 : vector<16x1xf32> to vector<16x16xf32>
    %313 = arith.mulf %308, %312 : vector<16x16xf32>
    %314 = vector.extract_strided_slice %294 {offsets = [0, 0], sizes = [16, 8], strides = [1, 1]} : vector<16x32xf32> to vector<16x8xf32>
    %cst_124 = arith.constant dense<0.000000e+00> : vector<16x8xf32>
    %315 = tpu.matmul %313, %314, %cst_124 {dimension_numbers = #tpu.dot_dimension_numbers<[1], [0], [0], [1], [0, 0, 1, 1], [], []>} : vector<16x16xf32>, vector<16x8xf32>, vector<16x8xf32> -> vector<16x8xf32>
    %316 = vector.extract_strided_slice %296 {offsets = [0, 0], sizes = [8, 32], strides = [1, 1]} : vector<32x32xf32> to vector<8x32xf32>
    %cst_125 = arith.constant dense<0.000000e+00> : vector<16x32xf32>
    %317 = tpu.matmul %315, %316, %cst_125 {dimension_numbers = #tpu.dot_dimension_numbers<[1], [0], [0], [1], [0, 0, 1, 1], [], []>} : vector<16x8xf32>, vector<8x32xf32>, vector<16x32xf32> -> vector<16x32xf32>
    %318 = arith.addf %297, %317 : vector<16x32xf32>
    %319 = vector.extract_strided_slice %292 {offsets = [0, 8], sizes = [16, 8], strides = [1, 1]} : vector<16x32xf32> to vector<16x8xf32>
    %320 = vector.extract_strided_slice %293 {offsets = [0, 8], sizes = [16, 8], strides = [1, 1]} : vector<16x32xf32> to vector<16x8xf32>
    %cst_126 = arith.constant dense<0.000000e+00> : vector<16x16xf32>
    %321 = tpu.matmul %319, %320, %cst_126 {dimension_numbers = #tpu.dot_dimension_numbers<[1], [1], [0], [0], [0, 0, 1, 0], [], []>} : vector<16x8xf32>, vector<16x8xf32>, vector<16x16xf32> -> vector<16x16xf32>
    %322 = vector.extract_strided_slice %1 {offsets = [1, 0, 0], sizes = [1, 16, 16], strides = [1, 1, 1]} : vector<4x16x16xf32> to vector<1x16x16xf32>
    %323 = vector.shape_cast %322 : vector<1x16x16xf32> to vector<16x16xf32>
    %324 = arith.addf %321, %323 : vector<16x16xf32>
    %cst_127 = arith.constant dense<0xFF800000> : vector<16xf32>
    %325 = vector.multi_reduction <maximumf>, %324, %cst_127 [1] : vector<16x16xf32> to vector<16xf32>
    %326 = vector.shape_cast %325 : vector<16xf32> to vector<16x1xf32>
    %327 = vector.broadcast %326 : vector<16x1xf32> to vector<16x16xf32>
    %328 = arith.subf %324, %327 : vector<16x16xf32>
    %329 = math.exp %328 : vector<16x16xf32>
    %cst_128 = arith.constant dense<0.000000e+00> : vector<16xf32>
    %330 = vector.multi_reduction <add>, %329, %cst_128 [1] : vector<16x16xf32> to vector<16xf32>
    %331 = vector.shape_cast %330 : vector<16xf32> to vector<16x1xf32>
    %332 = tpu.reciprocal %331 {approx = true} : vector<16x1xf32> -> vector<16x1xf32>
    %333 = vector.broadcast %332 : vector<16x1xf32> to vector<16x16xf32>
    %334 = arith.mulf %329, %333 : vector<16x16xf32>
    %335 = vector.extract_strided_slice %294 {offsets = [0, 8], sizes = [16, 8], strides = [1, 1]} : vector<16x32xf32> to vector<16x8xf32>
    %cst_129 = arith.constant dense<0.000000e+00> : vector<16x8xf32>
    %336 = tpu.matmul %334, %335, %cst_129 {dimension_numbers = #tpu.dot_dimension_numbers<[1], [0], [0], [1], [0, 0, 1, 1], [], []>} : vector<16x16xf32>, vector<16x8xf32>, vector<16x8xf32> -> vector<16x8xf32>
    %337 = vector.extract_strided_slice %296 {offsets = [8, 0], sizes = [8, 32], strides = [1, 1]} : vector<32x32xf32> to vector<8x32xf32>
    %cst_130 = arith.constant dense<0.000000e+00> : vector<16x32xf32>
    %338 = tpu.matmul %336, %337, %cst_130 {dimension_numbers = #tpu.dot_dimension_numbers<[1], [0], [0], [1], [0, 0, 1, 1], [], []>} : vector<16x8xf32>, vector<8x32xf32>, vector<16x32xf32> -> vector<16x32xf32>
    %339 = arith.addf %318, %338 : vector<16x32xf32>
    %340 = vector.extract_strided_slice %292 {offsets = [0, 16], sizes = [16, 8], strides = [1, 1]} : vector<16x32xf32> to vector<16x8xf32>
    %341 = vector.extract_strided_slice %293 {offsets = [0, 16], sizes = [16, 8], strides = [1, 1]} : vector<16x32xf32> to vector<16x8xf32>
    %cst_131 = arith.constant dense<0.000000e+00> : vector<16x16xf32>
    %342 = tpu.matmul %340, %341, %cst_131 {dimension_numbers = #tpu.dot_dimension_numbers<[1], [1], [0], [0], [0, 0, 1, 0], [], []>} : vector<16x8xf32>, vector<16x8xf32>, vector<16x16xf32> -> vector<16x16xf32>
    %343 = vector.extract_strided_slice %1 {offsets = [2, 0, 0], sizes = [1, 16, 16], strides = [1, 1, 1]} : vector<4x16x16xf32> to vector<1x16x16xf32>
    %344 = vector.shape_cast %343 : vector<1x16x16xf32> to vector<16x16xf32>
    %345 = arith.addf %342, %344 : vector<16x16xf32>
    %cst_132 = arith.constant dense<0xFF800000> : vector<16xf32>
    %346 = vector.multi_reduction <maximumf>, %345, %cst_132 [1] : vector<16x16xf32> to vector<16xf32>
    %347 = vector.shape_cast %346 : vector<16xf32> to vector<16x1xf32>
    %348 = vector.broadcast %347 : vector<16x1xf32> to vector<16x16xf32>
    %349 = arith.subf %345, %348 : vector<16x16xf32>
    %350 = math.exp %349 : vector<16x16xf32>
    %cst_133 = arith.constant dense<0.000000e+00> : vector<16xf32>
    %351 = vector.multi_reduction <add>, %350, %cst_133 [1] : vector<16x16xf32> to vector<16xf32>
    %352 = vector.shape_cast %351 : vector<16xf32> to vector<16x1xf32>
    %353 = tpu.reciprocal %352 {approx = true} : vector<16x1xf32> -> vector<16x1xf32>
    %354 = vector.broadcast %353 : vector<16x1xf32> to vector<16x16xf32>
    %355 = arith.mulf %350, %354 : vector<16x16xf32>
    %356 = vector.extract_strided_slice %294 {offsets = [0, 16], sizes = [16, 8], strides = [1, 1]} : vector<16x32xf32> to vector<16x8xf32>
    %cst_134 = arith.constant dense<0.000000e+00> : vector<16x8xf32>
    %357 = tpu.matmul %355, %356, %cst_134 {dimension_numbers = #tpu.dot_dimension_numbers<[1], [0], [0], [1], [0, 0, 1, 1], [], []>} : vector<16x16xf32>, vector<16x8xf32>, vector<16x8xf32> -> vector<16x8xf32>
    %358 = vector.extract_strided_slice %296 {offsets = [16, 0], sizes = [8, 32], strides = [1, 1]} : vector<32x32xf32> to vector<8x32xf32>
    %cst_135 = arith.constant dense<0.000000e+00> : vector<16x32xf32>
    %359 = tpu.matmul %357, %358, %cst_135 {dimension_numbers = #tpu.dot_dimension_numbers<[1], [0], [0], [1], [0, 0, 1, 1], [], []>} : vector<16x8xf32>, vector<8x32xf32>, vector<16x32xf32> -> vector<16x32xf32>
    %360 = arith.addf %339, %359 : vector<16x32xf32>
    %361 = vector.extract_strided_slice %292 {offsets = [0, 24], sizes = [16, 8], strides = [1, 1]} : vector<16x32xf32> to vector<16x8xf32>
    %362 = vector.extract_strided_slice %293 {offsets = [0, 24], sizes = [16, 8], strides = [1, 1]} : vector<16x32xf32> to vector<16x8xf32>
    %cst_136 = arith.constant dense<0.000000e+00> : vector<16x16xf32>
    %363 = tpu.matmul %361, %362, %cst_136 {dimension_numbers = #tpu.dot_dimension_numbers<[1], [1], [0], [0], [0, 0, 1, 0], [], []>} : vector<16x8xf32>, vector<16x8xf32>, vector<16x16xf32> -> vector<16x16xf32>
    %364 = vector.extract_strided_slice %1 {offsets = [3, 0, 0], sizes = [1, 16, 16], strides = [1, 1, 1]} : vector<4x16x16xf32> to vector<1x16x16xf32>
    %365 = vector.shape_cast %364 : vector<1x16x16xf32> to vector<16x16xf32>
    %366 = arith.addf %363, %365 : vector<16x16xf32>
    %cst_137 = arith.constant dense<0xFF800000> : vector<16xf32>
    %367 = vector.multi_reduction <maximumf>, %366, %cst_137 [1] : vector<16x16xf32> to vector<16xf32>
    %368 = vector.shape_cast %367 : vector<16xf32> to vector<16x1xf32>
    %369 = vector.broadcast %368 : vector<16x1xf32> to vector<16x16xf32>
    %370 = arith.subf %366, %369 : vector<16x16xf32>
    %371 = math.exp %370 : vector<16x16xf32>
    %cst_138 = arith.constant dense<0.000000e+00> : vector<16xf32>
    %372 = vector.multi_reduction <add>, %371, %cst_138 [1] : vector<16x16xf32> to vector<16xf32>
    %373 = vector.shape_cast %372 : vector<16xf32> to vector<16x1xf32>
    %374 = tpu.reciprocal %373 {approx = true} : vector<16x1xf32> -> vector<16x1xf32>
    %375 = vector.broadcast %374 : vector<16x1xf32> to vector<16x16xf32>
    %376 = arith.mulf %371, %375 : vector<16x16xf32>
    %377 = vector.extract_strided_slice %294 {offsets = [0, 24], sizes = [16, 8], strides = [1, 1]} : vector<16x32xf32> to vector<16x8xf32>
    %cst_139 = arith.constant dense<0.000000e+00> : vector<16x8xf32>
    %378 = tpu.matmul %376, %377, %cst_139 {dimension_numbers = #tpu.dot_dimension_numbers<[1], [0], [0], [1], [0, 0, 1, 1], [], []>} : vector<16x16xf32>, vector<16x8xf32>, vector<16x8xf32> -> vector<16x8xf32>
    %379 = vector.extract_strided_slice %296 {offsets = [24, 0], sizes = [8, 32], strides = [1, 1]} : vector<32x32xf32> to vector<8x32xf32>
    %cst_140 = arith.constant dense<0.000000e+00> : vector<16x32xf32>
    %380 = tpu.matmul %378, %379, %cst_140 {dimension_numbers = #tpu.dot_dimension_numbers<[1], [0], [0], [1], [0, 0, 1, 1], [], []>} : vector<16x8xf32>, vector<8x32xf32>, vector<16x32xf32> -> vector<16x32xf32>
    %381 = arith.addf %360, %380 : vector<16x32xf32>
    %382 = arith.addf %275, %381 : vector<16x32xf32>
    %c0_141 = arith.constant 0 : index
    %c0_142 = arith.constant 0 : index
    %383 = vector.load %arg15[%c0_141, %c0_142] : memref<2x32xf32, #tpu.memory_space<vmem>>, vector<1x32xf32>
    %384 = arith.mulf %382, %382 : vector<16x32xf32>
    %cst_143 = arith.constant dense<0.000000e+00> : vector<16xf32>
    %385 = vector.multi_reduction <add>, %384, %cst_143 [1] : vector<16x32xf32> to vector<16xf32>
    %386 = vector.shape_cast %385 : vector<16xf32> to vector<16x1xf32>
    %cst_144 = arith.constant 3.200000e+01 : f32
    %387 = vector.broadcast %cst_144 : f32 to vector<16x1xf32>
    %388 = arith.divf %386, %387 : vector<16x1xf32>
    %cst_145 = arith.constant 9.99999997E-7 : f32
    %389 = vector.broadcast %cst_145 : f32 to vector<16x1xf32>
    %390 = arith.addf %388, %389 : vector<16x1xf32>
    %391 = math.rsqrt %390 : vector<16x1xf32>
    %392 = vector.broadcast %391 : vector<16x1xf32> to vector<16x32xf32>
    %393 = arith.mulf %382, %392 : vector<16x32xf32>
    %394 = vector.broadcast %383 : vector<1x32xf32> to vector<16x32xf32>
    %395 = arith.mulf %393, %394 : vector<16x32xf32>
    %c0_146 = arith.constant 0 : index
    %c0_147 = arith.constant 0 : index
    %c0_148 = arith.constant 0 : index
    %396 = vector.load %arg16[%c0_146, %c0_147, %c0_148] : memref<2x32x32xf32, #tpu.memory_space<vmem>>, vector<1x32x32xf32>
    %397 = vector.shape_cast %396 : vector<1x32x32xf32> to vector<32x32xf32>
    %cst_149 = arith.constant dense<0.000000e+00> : vector<16x32xf32>
    %398 = tpu.matmul %395, %397, %cst_149 {dimension_numbers = #tpu.dot_dimension_numbers<[1], [0], [0], [1], [0, 0, 1, 1], [], []>} : vector<16x32xf32>, vector<32x32xf32>, vector<16x32xf32> -> vector<16x32xf32>
    %c0_150 = arith.constant 0 : index
    %c0_151 = arith.constant 0 : index
    %c0_152 = arith.constant 0 : index
    %399 = vector.load %arg17[%c0_150, %c0_151, %c0_152] : memref<2x32x64xf32, #tpu.memory_space<vmem>>, vector<1x32x64xf32>
    %400 = vector.shape_cast %399 : vector<1x32x64xf32> to vector<32x64xf32>
    %cst_153 = arith.constant dense<0.000000e+00> : vector<16x64xf32>
    %401 = tpu.matmul %274, %400, %cst_153 {dimension_numbers = #tpu.dot_dimension_numbers<[1], [0], [0], [1], [0, 0, 1, 1], [], []>} : vector<16x32xf32>, vector<32x64xf32>, vector<16x64xf32> -> vector<16x64xf32>
    %402 = vector.extract_strided_slice %401 {offsets = [0, 0], sizes = [16, 32], strides = [1, 1]} : vector<16x64xf32> to vector<16x32xf32>
    %403 = vector.extract_strided_slice %401 {offsets = [0, 32], sizes = [16, 32], strides = [1, 1]} : vector<16x64xf32> to vector<16x32xf32>
    %c0_154 = arith.constant 0 : index
    %c0_155 = arith.constant 0 : index
    %c0_156 = arith.constant 0 : index
    %404 = vector.load %arg18[%c0_154, %c0_155, %c0_156] : memref<2x32x32xf32, #tpu.memory_space<vmem>>, vector<1x32x32xf32>
    %405 = vector.shape_cast %404 : vector<1x32x32xf32> to vector<32x32xf32>
    %cst_157 = arith.constant 0.000000e+00 : f32
    %406 = vector.broadcast %cst_157 : f32 to vector<16x32xf32>
    %407 = vector.extract_strided_slice %398 {offsets = [0, 0], sizes = [16, 8], strides = [1, 1]} : vector<16x32xf32> to vector<16x8xf32>
    %408 = vector.extract_strided_slice %402 {offsets = [0, 0], sizes = [16, 8], strides = [1, 1]} : vector<16x32xf32> to vector<16x8xf32>
    %cst_158 = arith.constant dense<0.000000e+00> : vector<16x16xf32>
    %409 = tpu.matmul %407, %408, %cst_158 {dimension_numbers = #tpu.dot_dimension_numbers<[1], [1], [0], [0], [0, 0, 1, 0], [], []>} : vector<16x8xf32>, vector<16x8xf32>, vector<16x16xf32> -> vector<16x16xf32>
    %410 = arith.addf %409, %2 : vector<16x16xf32>
    %cst_159 = arith.constant dense<0xFF800000> : vector<16xf32>
    %411 = vector.multi_reduction <maximumf>, %410, %cst_159 [1] : vector<16x16xf32> to vector<16xf32>
    %412 = vector.shape_cast %411 : vector<16xf32> to vector<16x1xf32>
    %413 = vector.broadcast %412 : vector<16x1xf32> to vector<16x16xf32>
    %414 = arith.subf %410, %413 : vector<16x16xf32>
    %415 = math.exp %414 : vector<16x16xf32>
    %cst_160 = arith.constant dense<0.000000e+00> : vector<16xf32>
    %416 = vector.multi_reduction <add>, %415, %cst_160 [1] : vector<16x16xf32> to vector<16xf32>
    %417 = vector.shape_cast %416 : vector<16xf32> to vector<16x1xf32>
    %418 = tpu.reciprocal %417 {approx = true} : vector<16x1xf32> -> vector<16x1xf32>
    %419 = vector.broadcast %418 : vector<16x1xf32> to vector<16x16xf32>
    %420 = arith.mulf %415, %419 : vector<16x16xf32>
    %421 = vector.extract_strided_slice %403 {offsets = [0, 0], sizes = [16, 8], strides = [1, 1]} : vector<16x32xf32> to vector<16x8xf32>
    %cst_161 = arith.constant dense<0.000000e+00> : vector<16x8xf32>
    %422 = tpu.matmul %420, %421, %cst_161 {dimension_numbers = #tpu.dot_dimension_numbers<[1], [0], [0], [1], [0, 0, 1, 1], [], []>} : vector<16x16xf32>, vector<16x8xf32>, vector<16x8xf32> -> vector<16x8xf32>
    %423 = vector.extract_strided_slice %405 {offsets = [0, 0], sizes = [8, 32], strides = [1, 1]} : vector<32x32xf32> to vector<8x32xf32>
    %cst_162 = arith.constant dense<0.000000e+00> : vector<16x32xf32>
    %424 = tpu.matmul %422, %423, %cst_162 {dimension_numbers = #tpu.dot_dimension_numbers<[1], [0], [0], [1], [0, 0, 1, 1], [], []>} : vector<16x8xf32>, vector<8x32xf32>, vector<16x32xf32> -> vector<16x32xf32>
    %425 = arith.addf %406, %424 : vector<16x32xf32>
    %426 = vector.extract_strided_slice %398 {offsets = [0, 8], sizes = [16, 8], strides = [1, 1]} : vector<16x32xf32> to vector<16x8xf32>
    %427 = vector.extract_strided_slice %402 {offsets = [0, 8], sizes = [16, 8], strides = [1, 1]} : vector<16x32xf32> to vector<16x8xf32>
    %cst_163 = arith.constant dense<0.000000e+00> : vector<16x16xf32>
    %428 = tpu.matmul %426, %427, %cst_163 {dimension_numbers = #tpu.dot_dimension_numbers<[1], [1], [0], [0], [0, 0, 1, 0], [], []>} : vector<16x8xf32>, vector<16x8xf32>, vector<16x16xf32> -> vector<16x16xf32>
    %429 = arith.addf %428, %2 : vector<16x16xf32>
    %cst_164 = arith.constant dense<0xFF800000> : vector<16xf32>
    %430 = vector.multi_reduction <maximumf>, %429, %cst_164 [1] : vector<16x16xf32> to vector<16xf32>
    %431 = vector.shape_cast %430 : vector<16xf32> to vector<16x1xf32>
    %432 = vector.broadcast %431 : vector<16x1xf32> to vector<16x16xf32>
    %433 = arith.subf %429, %432 : vector<16x16xf32>
    %434 = math.exp %433 : vector<16x16xf32>
    %cst_165 = arith.constant dense<0.000000e+00> : vector<16xf32>
    %435 = vector.multi_reduction <add>, %434, %cst_165 [1] : vector<16x16xf32> to vector<16xf32>
    %436 = vector.shape_cast %435 : vector<16xf32> to vector<16x1xf32>
    %437 = tpu.reciprocal %436 {approx = true} : vector<16x1xf32> -> vector<16x1xf32>
    %438 = vector.broadcast %437 : vector<16x1xf32> to vector<16x16xf32>
    %439 = arith.mulf %434, %438 : vector<16x16xf32>
    %440 = vector.extract_strided_slice %403 {offsets = [0, 8], sizes = [16, 8], strides = [1, 1]} : vector<16x32xf32> to vector<16x8xf32>
    %cst_166 = arith.constant dense<0.000000e+00> : vector<16x8xf32>
    %441 = tpu.matmul %439, %440, %cst_166 {dimension_numbers = #tpu.dot_dimension_numbers<[1], [0], [0], [1], [0, 0, 1, 1], [], []>} : vector<16x16xf32>, vector<16x8xf32>, vector<16x8xf32> -> vector<16x8xf32>
    %442 = vector.extract_strided_slice %405 {offsets = [8, 0], sizes = [8, 32], strides = [1, 1]} : vector<32x32xf32> to vector<8x32xf32>
    %cst_167 = arith.constant dense<0.000000e+00> : vector<16x32xf32>
    %443 = tpu.matmul %441, %442, %cst_167 {dimension_numbers = #tpu.dot_dimension_numbers<[1], [0], [0], [1], [0, 0, 1, 1], [], []>} : vector<16x8xf32>, vector<8x32xf32>, vector<16x32xf32> -> vector<16x32xf32>
    %444 = arith.addf %425, %443 : vector<16x32xf32>
    %445 = vector.extract_strided_slice %398 {offsets = [0, 16], sizes = [16, 8], strides = [1, 1]} : vector<16x32xf32> to vector<16x8xf32>
    %446 = vector.extract_strided_slice %402 {offsets = [0, 16], sizes = [16, 8], strides = [1, 1]} : vector<16x32xf32> to vector<16x8xf32>
    %cst_168 = arith.constant dense<0.000000e+00> : vector<16x16xf32>
    %447 = tpu.matmul %445, %446, %cst_168 {dimension_numbers = #tpu.dot_dimension_numbers<[1], [1], [0], [0], [0, 0, 1, 0], [], []>} : vector<16x8xf32>, vector<16x8xf32>, vector<16x16xf32> -> vector<16x16xf32>
    %448 = arith.addf %447, %2 : vector<16x16xf32>
    %cst_169 = arith.constant dense<0xFF800000> : vector<16xf32>
    %449 = vector.multi_reduction <maximumf>, %448, %cst_169 [1] : vector<16x16xf32> to vector<16xf32>
    %450 = vector.shape_cast %449 : vector<16xf32> to vector<16x1xf32>
    %451 = vector.broadcast %450 : vector<16x1xf32> to vector<16x16xf32>
    %452 = arith.subf %448, %451 : vector<16x16xf32>
    %453 = math.exp %452 : vector<16x16xf32>
    %cst_170 = arith.constant dense<0.000000e+00> : vector<16xf32>
    %454 = vector.multi_reduction <add>, %453, %cst_170 [1] : vector<16x16xf32> to vector<16xf32>
    %455 = vector.shape_cast %454 : vector<16xf32> to vector<16x1xf32>
    %456 = tpu.reciprocal %455 {approx = true} : vector<16x1xf32> -> vector<16x1xf32>
    %457 = vector.broadcast %456 : vector<16x1xf32> to vector<16x16xf32>
    %458 = arith.mulf %453, %457 : vector<16x16xf32>
    %459 = vector.extract_strided_slice %403 {offsets = [0, 16], sizes = [16, 8], strides = [1, 1]} : vector<16x32xf32> to vector<16x8xf32>
    %cst_171 = arith.constant dense<0.000000e+00> : vector<16x8xf32>
    %460 = tpu.matmul %458, %459, %cst_171 {dimension_numbers = #tpu.dot_dimension_numbers<[1], [0], [0], [1], [0, 0, 1, 1], [], []>} : vector<16x16xf32>, vector<16x8xf32>, vector<16x8xf32> -> vector<16x8xf32>
    %461 = vector.extract_strided_slice %405 {offsets = [16, 0], sizes = [8, 32], strides = [1, 1]} : vector<32x32xf32> to vector<8x32xf32>
    %cst_172 = arith.constant dense<0.000000e+00> : vector<16x32xf32>
    %462 = tpu.matmul %460, %461, %cst_172 {dimension_numbers = #tpu.dot_dimension_numbers<[1], [0], [0], [1], [0, 0, 1, 1], [], []>} : vector<16x8xf32>, vector<8x32xf32>, vector<16x32xf32> -> vector<16x32xf32>
    %463 = arith.addf %444, %462 : vector<16x32xf32>
    %464 = vector.extract_strided_slice %398 {offsets = [0, 24], sizes = [16, 8], strides = [1, 1]} : vector<16x32xf32> to vector<16x8xf32>
    %465 = vector.extract_strided_slice %402 {offsets = [0, 24], sizes = [16, 8], strides = [1, 1]} : vector<16x32xf32> to vector<16x8xf32>
    %cst_173 = arith.constant dense<0.000000e+00> : vector<16x16xf32>
    %466 = tpu.matmul %464, %465, %cst_173 {dimension_numbers = #tpu.dot_dimension_numbers<[1], [1], [0], [0], [0, 0, 1, 0], [], []>} : vector<16x8xf32>, vector<16x8xf32>, vector<16x16xf32> -> vector<16x16xf32>
    %467 = arith.addf %466, %2 : vector<16x16xf32>
    %cst_174 = arith.constant dense<0xFF800000> : vector<16xf32>
    %468 = vector.multi_reduction <maximumf>, %467, %cst_174 [1] : vector<16x16xf32> to vector<16xf32>
    %469 = vector.shape_cast %468 : vector<16xf32> to vector<16x1xf32>
    %470 = vector.broadcast %469 : vector<16x1xf32> to vector<16x16xf32>
    %471 = arith.subf %467, %470 : vector<16x16xf32>
    %472 = math.exp %471 : vector<16x16xf32>
    %cst_175 = arith.constant dense<0.000000e+00> : vector<16xf32>
    %473 = vector.multi_reduction <add>, %472, %cst_175 [1] : vector<16x16xf32> to vector<16xf32>
    %474 = vector.shape_cast %473 : vector<16xf32> to vector<16x1xf32>
    %475 = tpu.reciprocal %474 {approx = true} : vector<16x1xf32> -> vector<16x1xf32>
    %476 = vector.broadcast %475 : vector<16x1xf32> to vector<16x16xf32>
    %477 = arith.mulf %472, %476 : vector<16x16xf32>
    %478 = vector.extract_strided_slice %403 {offsets = [0, 24], sizes = [16, 8], strides = [1, 1]} : vector<16x32xf32> to vector<16x8xf32>
    %cst_176 = arith.constant dense<0.000000e+00> : vector<16x8xf32>
    %479 = tpu.matmul %477, %478, %cst_176 {dimension_numbers = #tpu.dot_dimension_numbers<[1], [0], [0], [1], [0, 0, 1, 1], [], []>} : vector<16x16xf32>, vector<16x8xf32>, vector<16x8xf32> -> vector<16x8xf32>
    %480 = vector.extract_strided_slice %405 {offsets = [24, 0], sizes = [8, 32], strides = [1, 1]} : vector<32x32xf32> to vector<8x32xf32>
    %cst_177 = arith.constant dense<0.000000e+00> : vector<16x32xf32>
    %481 = tpu.matmul %479, %480, %cst_177 {dimension_numbers = #tpu.dot_dimension_numbers<[1], [0], [0], [1], [0, 0, 1, 1], [], []>} : vector<16x8xf32>, vector<8x32xf32>, vector<16x32xf32> -> vector<16x32xf32>
    %482 = arith.addf %463, %481 : vector<16x32xf32>
    %483 = arith.addf %382, %482 : vector<16x32xf32>
    %c0_178 = arith.constant 0 : index
    %c0_179 = arith.constant 0 : index
    %484 = vector.load %arg19[%c0_178, %c0_179] : memref<2x32xf32, #tpu.memory_space<vmem>>, vector<1x32xf32>
    %485 = arith.mulf %483, %483 : vector<16x32xf32>
    %cst_180 = arith.constant dense<0.000000e+00> : vector<16xf32>
    %486 = vector.multi_reduction <add>, %485, %cst_180 [1] : vector<16x32xf32> to vector<16xf32>
    %487 = vector.shape_cast %486 : vector<16xf32> to vector<16x1xf32>
    %cst_181 = arith.constant 3.200000e+01 : f32
    %488 = vector.broadcast %cst_181 : f32 to vector<16x1xf32>
    %489 = arith.divf %487, %488 : vector<16x1xf32>
    %cst_182 = arith.constant 9.99999997E-7 : f32
    %490 = vector.broadcast %cst_182 : f32 to vector<16x1xf32>
    %491 = arith.addf %489, %490 : vector<16x1xf32>
    %492 = math.rsqrt %491 : vector<16x1xf32>
    %493 = vector.broadcast %492 : vector<16x1xf32> to vector<16x32xf32>
    %494 = arith.mulf %483, %493 : vector<16x32xf32>
    %495 = vector.broadcast %484 : vector<1x32xf32> to vector<16x32xf32>
    %496 = arith.mulf %494, %495 : vector<16x32xf32>
    %c0_183 = arith.constant 0 : index
    %c0_184 = arith.constant 0 : index
    %c0_185 = arith.constant 0 : index
    %497 = vector.load %arg20[%c0_183, %c0_184, %c0_185] : memref<2x32x64xf32, #tpu.memory_space<vmem>>, vector<1x32x64xf32>
    %498 = vector.shape_cast %497 : vector<1x32x64xf32> to vector<32x64xf32>
    %cst_186 = arith.constant dense<0.000000e+00> : vector<16x64xf32>
    %499 = tpu.matmul %496, %498, %cst_186 {dimension_numbers = #tpu.dot_dimension_numbers<[1], [0], [0], [1], [0, 0, 1, 1], [], []>} : vector<16x32xf32>, vector<32x64xf32>, vector<16x64xf32> -> vector<16x64xf32>
    %cst_187 = arith.constant 0.000000e+00 : f32
    %500 = vector.broadcast %cst_187 : f32 to vector<16x64xf32>
    %501 = arith.maximumf %499, %500 : vector<16x64xf32>
    %c0_188 = arith.constant 0 : index
    %c0_189 = arith.constant 0 : index
    %c0_190 = arith.constant 0 : index
    %502 = vector.load %arg21[%c0_188, %c0_189, %c0_190] : memref<2x64x32xf32, #tpu.memory_space<vmem>>, vector<1x64x32xf32>
    %503 = vector.shape_cast %502 : vector<1x64x32xf32> to vector<64x32xf32>
    %cst_191 = arith.constant dense<0.000000e+00> : vector<16x32xf32>
    %504 = tpu.matmul %501, %503, %cst_191 {dimension_numbers = #tpu.dot_dimension_numbers<[1], [0], [0], [1], [0, 0, 1, 1], [], []>} : vector<16x64xf32>, vector<64x32xf32>, vector<16x32xf32> -> vector<16x32xf32>
    %505 = arith.addf %483, %504 : vector<16x32xf32>
    %c1_192 = arith.constant 1 : index
    %c0_193 = arith.constant 0 : index
    %506 = vector.load %arg12[%c1_192, %c0_193] : memref<2x32xf32, #tpu.memory_space<vmem>>, vector<1x32xf32>
    %507 = arith.mulf %505, %505 : vector<16x32xf32>
    %cst_194 = arith.constant dense<0.000000e+00> : vector<16xf32>
    %508 = vector.multi_reduction <add>, %507, %cst_194 [1] : vector<16x32xf32> to vector<16xf32>
    %509 = vector.shape_cast %508 : vector<16xf32> to vector<16x1xf32>
    %cst_195 = arith.constant 3.200000e+01 : f32
    %510 = vector.broadcast %cst_195 : f32 to vector<16x1xf32>
    %511 = arith.divf %509, %510 : vector<16x1xf32>
    %cst_196 = arith.constant 9.99999997E-7 : f32
    %512 = vector.broadcast %cst_196 : f32 to vector<16x1xf32>
    %513 = arith.addf %511, %512 : vector<16x1xf32>
    %514 = math.rsqrt %513 : vector<16x1xf32>
    %515 = vector.broadcast %514 : vector<16x1xf32> to vector<16x32xf32>
    %516 = arith.mulf %505, %515 : vector<16x32xf32>
    %517 = vector.broadcast %506 : vector<1x32xf32> to vector<16x32xf32>
    %518 = arith.mulf %516, %517 : vector<16x32xf32>
    %c1_197 = arith.constant 1 : index
    %c0_198 = arith.constant 0 : index
    %c0_199 = arith.constant 0 : index
    %519 = vector.load %arg13[%c1_197, %c0_198, %c0_199] : memref<2x32x96xf32, #tpu.memory_space<vmem>>, vector<1x32x96xf32>
    %520 = vector.shape_cast %519 : vector<1x32x96xf32> to vector<32x96xf32>
    %cst_200 = arith.constant dense<0.000000e+00> : vector<16x96xf32>
    %521 = tpu.matmul %518, %520, %cst_200 {dimension_numbers = #tpu.dot_dimension_numbers<[1], [0], [0], [1], [0, 0, 1, 1], [], []>} : vector<16x32xf32>, vector<32x96xf32>, vector<16x96xf32> -> vector<16x96xf32>
    %522 = vector.extract_strided_slice %521 {offsets = [0, 0], sizes = [16, 32], strides = [1, 1]} : vector<16x96xf32> to vector<16x32xf32>
    %523 = vector.extract_strided_slice %521 {offsets = [0, 32], sizes = [16, 32], strides = [1, 1]} : vector<16x96xf32> to vector<16x32xf32>
    %524 = vector.extract_strided_slice %521 {offsets = [0, 64], sizes = [16, 32], strides = [1, 1]} : vector<16x96xf32> to vector<16x32xf32>
    %c1_201 = arith.constant 1 : index
    %c0_202 = arith.constant 0 : index
    %c0_203 = arith.constant 0 : index
    %525 = vector.load %arg14[%c1_201, %c0_202, %c0_203] : memref<2x32x32xf32, #tpu.memory_space<vmem>>, vector<1x32x32xf32>
    %526 = vector.shape_cast %525 : vector<1x32x32xf32> to vector<32x32xf32>
    %cst_204 = arith.constant 0.000000e+00 : f32
    %527 = vector.broadcast %cst_204 : f32 to vector<16x32xf32>
    %528 = vector.extract_strided_slice %522 {offsets = [0, 0], sizes = [16, 8], strides = [1, 1]} : vector<16x32xf32> to vector<16x8xf32>
    %529 = vector.extract_strided_slice %523 {offsets = [0, 0], sizes = [16, 8], strides = [1, 1]} : vector<16x32xf32> to vector<16x8xf32>
    %cst_205 = arith.constant dense<0.000000e+00> : vector<16x16xf32>
    %530 = tpu.matmul %528, %529, %cst_205 {dimension_numbers = #tpu.dot_dimension_numbers<[1], [1], [0], [0], [0, 0, 1, 0], [], []>} : vector<16x8xf32>, vector<16x8xf32>, vector<16x16xf32> -> vector<16x16xf32>
    %531 = vector.extract_strided_slice %1 {offsets = [0, 0, 0], sizes = [1, 16, 16], strides = [1, 1, 1]} : vector<4x16x16xf32> to vector<1x16x16xf32>
    %532 = vector.shape_cast %531 : vector<1x16x16xf32> to vector<16x16xf32>
    %533 = arith.addf %530, %532 : vector<16x16xf32>
    %cst_206 = arith.constant dense<0xFF800000> : vector<16xf32>
    %534 = vector.multi_reduction <maximumf>, %533, %cst_206 [1] : vector<16x16xf32> to vector<16xf32>
    %535 = vector.shape_cast %534 : vector<16xf32> to vector<16x1xf32>
    %536 = vector.broadcast %535 : vector<16x1xf32> to vector<16x16xf32>
    %537 = arith.subf %533, %536 : vector<16x16xf32>
    %538 = math.exp %537 : vector<16x16xf32>
    %cst_207 = arith.constant dense<0.000000e+00> : vector<16xf32>
    %539 = vector.multi_reduction <add>, %538, %cst_207 [1] : vector<16x16xf32> to vector<16xf32>
    %540 = vector.shape_cast %539 : vector<16xf32> to vector<16x1xf32>
    %541 = tpu.reciprocal %540 {approx = true} : vector<16x1xf32> -> vector<16x1xf32>
    %542 = vector.broadcast %541 : vector<16x1xf32> to vector<16x16xf32>
    %543 = arith.mulf %538, %542 : vector<16x16xf32>
    %544 = vector.extract_strided_slice %524 {offsets = [0, 0], sizes = [16, 8], strides = [1, 1]} : vector<16x32xf32> to vector<16x8xf32>
    %cst_208 = arith.constant dense<0.000000e+00> : vector<16x8xf32>
    %545 = tpu.matmul %543, %544, %cst_208 {dimension_numbers = #tpu.dot_dimension_numbers<[1], [0], [0], [1], [0, 0, 1, 1], [], []>} : vector<16x16xf32>, vector<16x8xf32>, vector<16x8xf32> -> vector<16x8xf32>
    %546 = vector.extract_strided_slice %526 {offsets = [0, 0], sizes = [8, 32], strides = [1, 1]} : vector<32x32xf32> to vector<8x32xf32>
    %cst_209 = arith.constant dense<0.000000e+00> : vector<16x32xf32>
    %547 = tpu.matmul %545, %546, %cst_209 {dimension_numbers = #tpu.dot_dimension_numbers<[1], [0], [0], [1], [0, 0, 1, 1], [], []>} : vector<16x8xf32>, vector<8x32xf32>, vector<16x32xf32> -> vector<16x32xf32>
    %548 = arith.addf %527, %547 : vector<16x32xf32>
    %549 = vector.extract_strided_slice %522 {offsets = [0, 8], sizes = [16, 8], strides = [1, 1]} : vector<16x32xf32> to vector<16x8xf32>
    %550 = vector.extract_strided_slice %523 {offsets = [0, 8], sizes = [16, 8], strides = [1, 1]} : vector<16x32xf32> to vector<16x8xf32>
    %cst_210 = arith.constant dense<0.000000e+00> : vector<16x16xf32>
    %551 = tpu.matmul %549, %550, %cst_210 {dimension_numbers = #tpu.dot_dimension_numbers<[1], [1], [0], [0], [0, 0, 1, 0], [], []>} : vector<16x8xf32>, vector<16x8xf32>, vector<16x16xf32> -> vector<16x16xf32>
    %552 = vector.extract_strided_slice %1 {offsets = [1, 0, 0], sizes = [1, 16, 16], strides = [1, 1, 1]} : vector<4x16x16xf32> to vector<1x16x16xf32>
    %553 = vector.shape_cast %552 : vector<1x16x16xf32> to vector<16x16xf32>
    %554 = arith.addf %551, %553 : vector<16x16xf32>
    %cst_211 = arith.constant dense<0xFF800000> : vector<16xf32>
    %555 = vector.multi_reduction <maximumf>, %554, %cst_211 [1] : vector<16x16xf32> to vector<16xf32>
    %556 = vector.shape_cast %555 : vector<16xf32> to vector<16x1xf32>
    %557 = vector.broadcast %556 : vector<16x1xf32> to vector<16x16xf32>
    %558 = arith.subf %554, %557 : vector<16x16xf32>
    %559 = math.exp %558 : vector<16x16xf32>
    %cst_212 = arith.constant dense<0.000000e+00> : vector<16xf32>
    %560 = vector.multi_reduction <add>, %559, %cst_212 [1] : vector<16x16xf32> to vector<16xf32>
    %561 = vector.shape_cast %560 : vector<16xf32> to vector<16x1xf32>
    %562 = tpu.reciprocal %561 {approx = true} : vector<16x1xf32> -> vector<16x1xf32>
    %563 = vector.broadcast %562 : vector<16x1xf32> to vector<16x16xf32>
    %564 = arith.mulf %559, %563 : vector<16x16xf32>
    %565 = vector.extract_strided_slice %524 {offsets = [0, 8], sizes = [16, 8], strides = [1, 1]} : vector<16x32xf32> to vector<16x8xf32>
    %cst_213 = arith.constant dense<0.000000e+00> : vector<16x8xf32>
    %566 = tpu.matmul %564, %565, %cst_213 {dimension_numbers = #tpu.dot_dimension_numbers<[1], [0], [0], [1], [0, 0, 1, 1], [], []>} : vector<16x16xf32>, vector<16x8xf32>, vector<16x8xf32> -> vector<16x8xf32>
    %567 = vector.extract_strided_slice %526 {offsets = [8, 0], sizes = [8, 32], strides = [1, 1]} : vector<32x32xf32> to vector<8x32xf32>
    %cst_214 = arith.constant dense<0.000000e+00> : vector<16x32xf32>
    %568 = tpu.matmul %566, %567, %cst_214 {dimension_numbers = #tpu.dot_dimension_numbers<[1], [0], [0], [1], [0, 0, 1, 1], [], []>} : vector<16x8xf32>, vector<8x32xf32>, vector<16x32xf32> -> vector<16x32xf32>
    %569 = arith.addf %548, %568 : vector<16x32xf32>
    %570 = vector.extract_strided_slice %522 {offsets = [0, 16], sizes = [16, 8], strides = [1, 1]} : vector<16x32xf32> to vector<16x8xf32>
    %571 = vector.extract_strided_slice %523 {offsets = [0, 16], sizes = [16, 8], strides = [1, 1]} : vector<16x32xf32> to vector<16x8xf32>
    %cst_215 = arith.constant dense<0.000000e+00> : vector<16x16xf32>
    %572 = tpu.matmul %570, %571, %cst_215 {dimension_numbers = #tpu.dot_dimension_numbers<[1], [1], [0], [0], [0, 0, 1, 0], [], []>} : vector<16x8xf32>, vector<16x8xf32>, vector<16x16xf32> -> vector<16x16xf32>
    %573 = vector.extract_strided_slice %1 {offsets = [2, 0, 0], sizes = [1, 16, 16], strides = [1, 1, 1]} : vector<4x16x16xf32> to vector<1x16x16xf32>
    %574 = vector.shape_cast %573 : vector<1x16x16xf32> to vector<16x16xf32>
    %575 = arith.addf %572, %574 : vector<16x16xf32>
    %cst_216 = arith.constant dense<0xFF800000> : vector<16xf32>
    %576 = vector.multi_reduction <maximumf>, %575, %cst_216 [1] : vector<16x16xf32> to vector<16xf32>
    %577 = vector.shape_cast %576 : vector<16xf32> to vector<16x1xf32>
    %578 = vector.broadcast %577 : vector<16x1xf32> to vector<16x16xf32>
    %579 = arith.subf %575, %578 : vector<16x16xf32>
    %580 = math.exp %579 : vector<16x16xf32>
    %cst_217 = arith.constant dense<0.000000e+00> : vector<16xf32>
    %581 = vector.multi_reduction <add>, %580, %cst_217 [1] : vector<16x16xf32> to vector<16xf32>
    %582 = vector.shape_cast %581 : vector<16xf32> to vector<16x1xf32>
    %583 = tpu.reciprocal %582 {approx = true} : vector<16x1xf32> -> vector<16x1xf32>
    %584 = vector.broadcast %583 : vector<16x1xf32> to vector<16x16xf32>
    %585 = arith.mulf %580, %584 : vector<16x16xf32>
    %586 = vector.extract_strided_slice %524 {offsets = [0, 16], sizes = [16, 8], strides = [1, 1]} : vector<16x32xf32> to vector<16x8xf32>
    %cst_218 = arith.constant dense<0.000000e+00> : vector<16x8xf32>
    %587 = tpu.matmul %585, %586, %cst_218 {dimension_numbers = #tpu.dot_dimension_numbers<[1], [0], [0], [1], [0, 0, 1, 1], [], []>} : vector<16x16xf32>, vector<16x8xf32>, vector<16x8xf32> -> vector<16x8xf32>
    %588 = vector.extract_strided_slice %526 {offsets = [16, 0], sizes = [8, 32], strides = [1, 1]} : vector<32x32xf32> to vector<8x32xf32>
    %cst_219 = arith.constant dense<0.000000e+00> : vector<16x32xf32>
    %589 = tpu.matmul %587, %588, %cst_219 {dimension_numbers = #tpu.dot_dimension_numbers<[1], [0], [0], [1], [0, 0, 1, 1], [], []>} : vector<16x8xf32>, vector<8x32xf32>, vector<16x32xf32> -> vector<16x32xf32>
    %590 = arith.addf %569, %589 : vector<16x32xf32>
    %591 = vector.extract_strided_slice %522 {offsets = [0, 24], sizes = [16, 8], strides = [1, 1]} : vector<16x32xf32> to vector<16x8xf32>
    %592 = vector.extract_strided_slice %523 {offsets = [0, 24], sizes = [16, 8], strides = [1, 1]} : vector<16x32xf32> to vector<16x8xf32>
    %cst_220 = arith.constant dense<0.000000e+00> : vector<16x16xf32>
    %593 = tpu.matmul %591, %592, %cst_220 {dimension_numbers = #tpu.dot_dimension_numbers<[1], [1], [0], [0], [0, 0, 1, 0], [], []>} : vector<16x8xf32>, vector<16x8xf32>, vector<16x16xf32> -> vector<16x16xf32>
    %594 = vector.extract_strided_slice %1 {offsets = [3, 0, 0], sizes = [1, 16, 16], strides = [1, 1, 1]} : vector<4x16x16xf32> to vector<1x16x16xf32>
    %595 = vector.shape_cast %594 : vector<1x16x16xf32> to vector<16x16xf32>
    %596 = arith.addf %593, %595 : vector<16x16xf32>
    %cst_221 = arith.constant dense<0xFF800000> : vector<16xf32>
    %597 = vector.multi_reduction <maximumf>, %596, %cst_221 [1] : vector<16x16xf32> to vector<16xf32>
    %598 = vector.shape_cast %597 : vector<16xf32> to vector<16x1xf32>
    %599 = vector.broadcast %598 : vector<16x1xf32> to vector<16x16xf32>
    %600 = arith.subf %596, %599 : vector<16x16xf32>
    %601 = math.exp %600 : vector<16x16xf32>
    %cst_222 = arith.constant dense<0.000000e+00> : vector<16xf32>
    %602 = vector.multi_reduction <add>, %601, %cst_222 [1] : vector<16x16xf32> to vector<16xf32>
    %603 = vector.shape_cast %602 : vector<16xf32> to vector<16x1xf32>
    %604 = tpu.reciprocal %603 {approx = true} : vector<16x1xf32> -> vector<16x1xf32>
    %605 = vector.broadcast %604 : vector<16x1xf32> to vector<16x16xf32>
    %606 = arith.mulf %601, %605 : vector<16x16xf32>
    %607 = vector.extract_strided_slice %524 {offsets = [0, 24], sizes = [16, 8], strides = [1, 1]} : vector<16x32xf32> to vector<16x8xf32>
    %cst_223 = arith.constant dense<0.000000e+00> : vector<16x8xf32>
    %608 = tpu.matmul %606, %607, %cst_223 {dimension_numbers = #tpu.dot_dimension_numbers<[1], [0], [0], [1], [0, 0, 1, 1], [], []>} : vector<16x16xf32>, vector<16x8xf32>, vector<16x8xf32> -> vector<16x8xf32>
    %609 = vector.extract_strided_slice %526 {offsets = [24, 0], sizes = [8, 32], strides = [1, 1]} : vector<32x32xf32> to vector<8x32xf32>
    %cst_224 = arith.constant dense<0.000000e+00> : vector<16x32xf32>
    %610 = tpu.matmul %608, %609, %cst_224 {dimension_numbers = #tpu.dot_dimension_numbers<[1], [0], [0], [1], [0, 0, 1, 1], [], []>} : vector<16x8xf32>, vector<8x32xf32>, vector<16x32xf32> -> vector<16x32xf32>
    %611 = arith.addf %590, %610 : vector<16x32xf32>
    %612 = arith.addf %505, %611 : vector<16x32xf32>
    %c1_225 = arith.constant 1 : index
    %c0_226 = arith.constant 0 : index
    %613 = vector.load %arg15[%c1_225, %c0_226] : memref<2x32xf32, #tpu.memory_space<vmem>>, vector<1x32xf32>
    %614 = arith.mulf %612, %612 : vector<16x32xf32>
    %cst_227 = arith.constant dense<0.000000e+00> : vector<16xf32>
    %615 = vector.multi_reduction <add>, %614, %cst_227 [1] : vector<16x32xf32> to vector<16xf32>
    %616 = vector.shape_cast %615 : vector<16xf32> to vector<16x1xf32>
    %cst_228 = arith.constant 3.200000e+01 : f32
    %617 = vector.broadcast %cst_228 : f32 to vector<16x1xf32>
    %618 = arith.divf %616, %617 : vector<16x1xf32>
    %cst_229 = arith.constant 9.99999997E-7 : f32
    %619 = vector.broadcast %cst_229 : f32 to vector<16x1xf32>
    %620 = arith.addf %618, %619 : vector<16x1xf32>
    %621 = math.rsqrt %620 : vector<16x1xf32>
    %622 = vector.broadcast %621 : vector<16x1xf32> to vector<16x32xf32>
    %623 = arith.mulf %612, %622 : vector<16x32xf32>
    %624 = vector.broadcast %613 : vector<1x32xf32> to vector<16x32xf32>
    %625 = arith.mulf %623, %624 : vector<16x32xf32>
    %c1_230 = arith.constant 1 : index
    %c0_231 = arith.constant 0 : index
    %c0_232 = arith.constant 0 : index
    %626 = vector.load %arg16[%c1_230, %c0_231, %c0_232] : memref<2x32x32xf32, #tpu.memory_space<vmem>>, vector<1x32x32xf32>
    %627 = vector.shape_cast %626 : vector<1x32x32xf32> to vector<32x32xf32>
    %cst_233 = arith.constant dense<0.000000e+00> : vector<16x32xf32>
    %628 = tpu.matmul %625, %627, %cst_233 {dimension_numbers = #tpu.dot_dimension_numbers<[1], [0], [0], [1], [0, 0, 1, 1], [], []>} : vector<16x32xf32>, vector<32x32xf32>, vector<16x32xf32> -> vector<16x32xf32>
    %c1_234 = arith.constant 1 : index
    %c0_235 = arith.constant 0 : index
    %c0_236 = arith.constant 0 : index
    %629 = vector.load %arg17[%c1_234, %c0_235, %c0_236] : memref<2x32x64xf32, #tpu.memory_space<vmem>>, vector<1x32x64xf32>
    %630 = vector.shape_cast %629 : vector<1x32x64xf32> to vector<32x64xf32>
    %cst_237 = arith.constant dense<0.000000e+00> : vector<16x64xf32>
    %631 = tpu.matmul %274, %630, %cst_237 {dimension_numbers = #tpu.dot_dimension_numbers<[1], [0], [0], [1], [0, 0, 1, 1], [], []>} : vector<16x32xf32>, vector<32x64xf32>, vector<16x64xf32> -> vector<16x64xf32>
    %632 = vector.extract_strided_slice %631 {offsets = [0, 0], sizes = [16, 32], strides = [1, 1]} : vector<16x64xf32> to vector<16x32xf32>
    %633 = vector.extract_strided_slice %631 {offsets = [0, 32], sizes = [16, 32], strides = [1, 1]} : vector<16x64xf32> to vector<16x32xf32>
    %c1_238 = arith.constant 1 : index
    %c0_239 = arith.constant 0 : index
    %c0_240 = arith.constant 0 : index
    %634 = vector.load %arg18[%c1_238, %c0_239, %c0_240] : memref<2x32x32xf32, #tpu.memory_space<vmem>>, vector<1x32x32xf32>
    %635 = vector.shape_cast %634 : vector<1x32x32xf32> to vector<32x32xf32>
    %cst_241 = arith.constant 0.000000e+00 : f32
    %636 = vector.broadcast %cst_241 : f32 to vector<16x32xf32>
    %637 = vector.extract_strided_slice %628 {offsets = [0, 0], sizes = [16, 8], strides = [1, 1]} : vector<16x32xf32> to vector<16x8xf32>
    %638 = vector.extract_strided_slice %632 {offsets = [0, 0], sizes = [16, 8], strides = [1, 1]} : vector<16x32xf32> to vector<16x8xf32>
    %cst_242 = arith.constant dense<0.000000e+00> : vector<16x16xf32>
    %639 = tpu.matmul %637, %638, %cst_242 {dimension_numbers = #tpu.dot_dimension_numbers<[1], [1], [0], [0], [0, 0, 1, 0], [], []>} : vector<16x8xf32>, vector<16x8xf32>, vector<16x16xf32> -> vector<16x16xf32>
    %640 = arith.addf %639, %2 : vector<16x16xf32>
    %cst_243 = arith.constant dense<0xFF800000> : vector<16xf32>
    %641 = vector.multi_reduction <maximumf>, %640, %cst_243 [1] : vector<16x16xf32> to vector<16xf32>
    %642 = vector.shape_cast %641 : vector<16xf32> to vector<16x1xf32>
    %643 = vector.broadcast %642 : vector<16x1xf32> to vector<16x16xf32>
    %644 = arith.subf %640, %643 : vector<16x16xf32>
    %645 = math.exp %644 : vector<16x16xf32>
    %cst_244 = arith.constant dense<0.000000e+00> : vector<16xf32>
    %646 = vector.multi_reduction <add>, %645, %cst_244 [1] : vector<16x16xf32> to vector<16xf32>
    %647 = vector.shape_cast %646 : vector<16xf32> to vector<16x1xf32>
    %648 = tpu.reciprocal %647 {approx = true} : vector<16x1xf32> -> vector<16x1xf32>
    %649 = vector.broadcast %648 : vector<16x1xf32> to vector<16x16xf32>
    %650 = arith.mulf %645, %649 : vector<16x16xf32>
    %651 = vector.extract_strided_slice %633 {offsets = [0, 0], sizes = [16, 8], strides = [1, 1]} : vector<16x32xf32> to vector<16x8xf32>
    %cst_245 = arith.constant dense<0.000000e+00> : vector<16x8xf32>
    %652 = tpu.matmul %650, %651, %cst_245 {dimension_numbers = #tpu.dot_dimension_numbers<[1], [0], [0], [1], [0, 0, 1, 1], [], []>} : vector<16x16xf32>, vector<16x8xf32>, vector<16x8xf32> -> vector<16x8xf32>
    %653 = vector.extract_strided_slice %635 {offsets = [0, 0], sizes = [8, 32], strides = [1, 1]} : vector<32x32xf32> to vector<8x32xf32>
    %cst_246 = arith.constant dense<0.000000e+00> : vector<16x32xf32>
    %654 = tpu.matmul %652, %653, %cst_246 {dimension_numbers = #tpu.dot_dimension_numbers<[1], [0], [0], [1], [0, 0, 1, 1], [], []>} : vector<16x8xf32>, vector<8x32xf32>, vector<16x32xf32> -> vector<16x32xf32>
    %655 = arith.addf %636, %654 : vector<16x32xf32>
    %656 = vector.extract_strided_slice %628 {offsets = [0, 8], sizes = [16, 8], strides = [1, 1]} : vector<16x32xf32> to vector<16x8xf32>
    %657 = vector.extract_strided_slice %632 {offsets = [0, 8], sizes = [16, 8], strides = [1, 1]} : vector<16x32xf32> to vector<16x8xf32>
    %cst_247 = arith.constant dense<0.000000e+00> : vector<16x16xf32>
    %658 = tpu.matmul %656, %657, %cst_247 {dimension_numbers = #tpu.dot_dimension_numbers<[1], [1], [0], [0], [0, 0, 1, 0], [], []>} : vector<16x8xf32>, vector<16x8xf32>, vector<16x16xf32> -> vector<16x16xf32>
    %659 = arith.addf %658, %2 : vector<16x16xf32>
    %cst_248 = arith.constant dense<0xFF800000> : vector<16xf32>
    %660 = vector.multi_reduction <maximumf>, %659, %cst_248 [1] : vector<16x16xf32> to vector<16xf32>
    %661 = vector.shape_cast %660 : vector<16xf32> to vector<16x1xf32>
    %662 = vector.broadcast %661 : vector<16x1xf32> to vector<16x16xf32>
    %663 = arith.subf %659, %662 : vector<16x16xf32>
    %664 = math.exp %663 : vector<16x16xf32>
    %cst_249 = arith.constant dense<0.000000e+00> : vector<16xf32>
    %665 = vector.multi_reduction <add>, %664, %cst_249 [1] : vector<16x16xf32> to vector<16xf32>
    %666 = vector.shape_cast %665 : vector<16xf32> to vector<16x1xf32>
    %667 = tpu.reciprocal %666 {approx = true} : vector<16x1xf32> -> vector<16x1xf32>
    %668 = vector.broadcast %667 : vector<16x1xf32> to vector<16x16xf32>
    %669 = arith.mulf %664, %668 : vector<16x16xf32>
    %670 = vector.extract_strided_slice %633 {offsets = [0, 8], sizes = [16, 8], strides = [1, 1]} : vector<16x32xf32> to vector<16x8xf32>
    %cst_250 = arith.constant dense<0.000000e+00> : vector<16x8xf32>
    %671 = tpu.matmul %669, %670, %cst_250 {dimension_numbers = #tpu.dot_dimension_numbers<[1], [0], [0], [1], [0, 0, 1, 1], [], []>} : vector<16x16xf32>, vector<16x8xf32>, vector<16x8xf32> -> vector<16x8xf32>
    %672 = vector.extract_strided_slice %635 {offsets = [8, 0], sizes = [8, 32], strides = [1, 1]} : vector<32x32xf32> to vector<8x32xf32>
    %cst_251 = arith.constant dense<0.000000e+00> : vector<16x32xf32>
    %673 = tpu.matmul %671, %672, %cst_251 {dimension_numbers = #tpu.dot_dimension_numbers<[1], [0], [0], [1], [0, 0, 1, 1], [], []>} : vector<16x8xf32>, vector<8x32xf32>, vector<16x32xf32> -> vector<16x32xf32>
    %674 = arith.addf %655, %673 : vector<16x32xf32>
    %675 = vector.extract_strided_slice %628 {offsets = [0, 16], sizes = [16, 8], strides = [1, 1]} : vector<16x32xf32> to vector<16x8xf32>
    %676 = vector.extract_strided_slice %632 {offsets = [0, 16], sizes = [16, 8], strides = [1, 1]} : vector<16x32xf32> to vector<16x8xf32>
    %cst_252 = arith.constant dense<0.000000e+00> : vector<16x16xf32>
    %677 = tpu.matmul %675, %676, %cst_252 {dimension_numbers = #tpu.dot_dimension_numbers<[1], [1], [0], [0], [0, 0, 1, 0], [], []>} : vector<16x8xf32>, vector<16x8xf32>, vector<16x16xf32> -> vector<16x16xf32>
    %678 = arith.addf %677, %2 : vector<16x16xf32>
    %cst_253 = arith.constant dense<0xFF800000> : vector<16xf32>
    %679 = vector.multi_reduction <maximumf>, %678, %cst_253 [1] : vector<16x16xf32> to vector<16xf32>
    %680 = vector.shape_cast %679 : vector<16xf32> to vector<16x1xf32>
    %681 = vector.broadcast %680 : vector<16x1xf32> to vector<16x16xf32>
    %682 = arith.subf %678, %681 : vector<16x16xf32>
    %683 = math.exp %682 : vector<16x16xf32>
    %cst_254 = arith.constant dense<0.000000e+00> : vector<16xf32>
    %684 = vector.multi_reduction <add>, %683, %cst_254 [1] : vector<16x16xf32> to vector<16xf32>
    %685 = vector.shape_cast %684 : vector<16xf32> to vector<16x1xf32>
    %686 = tpu.reciprocal %685 {approx = true} : vector<16x1xf32> -> vector<16x1xf32>
    %687 = vector.broadcast %686 : vector<16x1xf32> to vector<16x16xf32>
    %688 = arith.mulf %683, %687 : vector<16x16xf32>
    %689 = vector.extract_strided_slice %633 {offsets = [0, 16], sizes = [16, 8], strides = [1, 1]} : vector<16x32xf32> to vector<16x8xf32>
    %cst_255 = arith.constant dense<0.000000e+00> : vector<16x8xf32>
    %690 = tpu.matmul %688, %689, %cst_255 {dimension_numbers = #tpu.dot_dimension_numbers<[1], [0], [0], [1], [0, 0, 1, 1], [], []>} : vector<16x16xf32>, vector<16x8xf32>, vector<16x8xf32> -> vector<16x8xf32>
    %691 = vector.extract_strided_slice %635 {offsets = [16, 0], sizes = [8, 32], strides = [1, 1]} : vector<32x32xf32> to vector<8x32xf32>
    %cst_256 = arith.constant dense<0.000000e+00> : vector<16x32xf32>
    %692 = tpu.matmul %690, %691, %cst_256 {dimension_numbers = #tpu.dot_dimension_numbers<[1], [0], [0], [1], [0, 0, 1, 1], [], []>} : vector<16x8xf32>, vector<8x32xf32>, vector<16x32xf32> -> vector<16x32xf32>
    %693 = arith.addf %674, %692 : vector<16x32xf32>
    %694 = vector.extract_strided_slice %628 {offsets = [0, 24], sizes = [16, 8], strides = [1, 1]} : vector<16x32xf32> to vector<16x8xf32>
    %695 = vector.extract_strided_slice %632 {offsets = [0, 24], sizes = [16, 8], strides = [1, 1]} : vector<16x32xf32> to vector<16x8xf32>
    %cst_257 = arith.constant dense<0.000000e+00> : vector<16x16xf32>
    %696 = tpu.matmul %694, %695, %cst_257 {dimension_numbers = #tpu.dot_dimension_numbers<[1], [1], [0], [0], [0, 0, 1, 0], [], []>} : vector<16x8xf32>, vector<16x8xf32>, vector<16x16xf32> -> vector<16x16xf32>
    %697 = arith.addf %696, %2 : vector<16x16xf32>
    %cst_258 = arith.constant dense<0xFF800000> : vector<16xf32>
    %698 = vector.multi_reduction <maximumf>, %697, %cst_258 [1] : vector<16x16xf32> to vector<16xf32>
    %699 = vector.shape_cast %698 : vector<16xf32> to vector<16x1xf32>
    %700 = vector.broadcast %699 : vector<16x1xf32> to vector<16x16xf32>
    %701 = arith.subf %697, %700 : vector<16x16xf32>
    %702 = math.exp %701 : vector<16x16xf32>
    %cst_259 = arith.constant dense<0.000000e+00> : vector<16xf32>
    %703 = vector.multi_reduction <add>, %702, %cst_259 [1] : vector<16x16xf32> to vector<16xf32>
    %704 = vector.shape_cast %703 : vector<16xf32> to vector<16x1xf32>
    %705 = tpu.reciprocal %704 {approx = true} : vector<16x1xf32> -> vector<16x1xf32>
    %706 = vector.broadcast %705 : vector<16x1xf32> to vector<16x16xf32>
    %707 = arith.mulf %702, %706 : vector<16x16xf32>
    %708 = vector.extract_strided_slice %633 {offsets = [0, 24], sizes = [16, 8], strides = [1, 1]} : vector<16x32xf32> to vector<16x8xf32>
    %cst_260 = arith.constant dense<0.000000e+00> : vector<16x8xf32>
    %709 = tpu.matmul %707, %708, %cst_260 {dimension_numbers = #tpu.dot_dimension_numbers<[1], [0], [0], [1], [0, 0, 1, 1], [], []>} : vector<16x16xf32>, vector<16x8xf32>, vector<16x8xf32> -> vector<16x8xf32>
    %710 = vector.extract_strided_slice %635 {offsets = [24, 0], sizes = [8, 32], strides = [1, 1]} : vector<32x32xf32> to vector<8x32xf32>
    %cst_261 = arith.constant dense<0.000000e+00> : vector<16x32xf32>
    %711 = tpu.matmul %709, %710, %cst_261 {dimension_numbers = #tpu.dot_dimension_numbers<[1], [0], [0], [1], [0, 0, 1, 1], [], []>} : vector<16x8xf32>, vector<8x32xf32>, vector<16x32xf32> -> vector<16x32xf32>
    %712 = arith.addf %693, %711 : vector<16x32xf32>
    %713 = arith.addf %612, %712 : vector<16x32xf32>
    %c1_262 = arith.constant 1 : index
    %c0_263 = arith.constant 0 : index
    %714 = vector.load %arg19[%c1_262, %c0_263] : memref<2x32xf32, #tpu.memory_space<vmem>>, vector<1x32xf32>
    %715 = arith.mulf %713, %713 : vector<16x32xf32>
    %cst_264 = arith.constant dense<0.000000e+00> : vector<16xf32>
    %716 = vector.multi_reduction <add>, %715, %cst_264 [1] : vector<16x32xf32> to vector<16xf32>
    %717 = vector.shape_cast %716 : vector<16xf32> to vector<16x1xf32>
    %cst_265 = arith.constant 3.200000e+01 : f32
    %718 = vector.broadcast %cst_265 : f32 to vector<16x1xf32>
    %719 = arith.divf %717, %718 : vector<16x1xf32>
    %cst_266 = arith.constant 9.99999997E-7 : f32
    %720 = vector.broadcast %cst_266 : f32 to vector<16x1xf32>
    %721 = arith.addf %719, %720 : vector<16x1xf32>
    %722 = math.rsqrt %721 : vector<16x1xf32>
    %723 = vector.broadcast %722 : vector<16x1xf32> to vector<16x32xf32>
    %724 = arith.mulf %713, %723 : vector<16x32xf32>
    %725 = vector.broadcast %714 : vector<1x32xf32> to vector<16x32xf32>
    %726 = arith.mulf %724, %725 : vector<16x32xf32>
    %c1_267 = arith.constant 1 : index
    %c0_268 = arith.constant 0 : index
    %c0_269 = arith.constant 0 : index
    %727 = vector.load %arg20[%c1_267, %c0_268, %c0_269] : memref<2x32x64xf32, #tpu.memory_space<vmem>>, vector<1x32x64xf32>
    %728 = vector.shape_cast %727 : vector<1x32x64xf32> to vector<32x64xf32>
    %cst_270 = arith.constant dense<0.000000e+00> : vector<16x64xf32>
    %729 = tpu.matmul %726, %728, %cst_270 {dimension_numbers = #tpu.dot_dimension_numbers<[1], [0], [0], [1], [0, 0, 1, 1], [], []>} : vector<16x32xf32>, vector<32x64xf32>, vector<16x64xf32> -> vector<16x64xf32>
    %cst_271 = arith.constant 0.000000e+00 : f32
    %730 = vector.broadcast %cst_271 : f32 to vector<16x64xf32>
    %731 = arith.maximumf %729, %730 : vector<16x64xf32>
    %c1_272 = arith.constant 1 : index
    %c0_273 = arith.constant 0 : index
    %c0_274 = arith.constant 0 : index
    %732 = vector.load %arg21[%c1_272, %c0_273, %c0_274] : memref<2x64x32xf32, #tpu.memory_space<vmem>>, vector<1x64x32xf32>
    %733 = vector.shape_cast %732 : vector<1x64x32xf32> to vector<64x32xf32>
    %cst_275 = arith.constant dense<0.000000e+00> : vector<16x32xf32>
    %734 = tpu.matmul %731, %733, %cst_275 {dimension_numbers = #tpu.dot_dimension_numbers<[1], [0], [0], [1], [0, 0, 1, 1], [], []>} : vector<16x64xf32>, vector<64x32xf32>, vector<16x32xf32> -> vector<16x32xf32>
    %735 = arith.addf %713, %734 : vector<16x32xf32>
    %c0_276 = arith.constant 0 : index
    %c0_277 = arith.constant 0 : index
    %736 = vector.load %arg22[%c0_276, %c0_277] : memref<1x32xf32, #tpu.memory_space<vmem>>, vector<1x32xf32>
    %737 = arith.mulf %735, %735 : vector<16x32xf32>
    %cst_278 = arith.constant dense<0.000000e+00> : vector<16xf32>
    %738 = vector.multi_reduction <add>, %737, %cst_278 [1] : vector<16x32xf32> to vector<16xf32>
    %739 = vector.shape_cast %738 : vector<16xf32> to vector<16x1xf32>
    %cst_279 = arith.constant 3.200000e+01 : f32
    %740 = vector.broadcast %cst_279 : f32 to vector<16x1xf32>
    %741 = arith.divf %739, %740 : vector<16x1xf32>
    %cst_280 = arith.constant 9.99999997E-7 : f32
    %742 = vector.broadcast %cst_280 : f32 to vector<16x1xf32>
    %743 = arith.addf %741, %742 : vector<16x1xf32>
    %744 = math.rsqrt %743 : vector<16x1xf32>
    %745 = vector.broadcast %744 : vector<16x1xf32> to vector<16x32xf32>
    %746 = arith.mulf %735, %745 : vector<16x32xf32>
    %747 = vector.broadcast %736 : vector<1x32xf32> to vector<16x32xf32>
    %748 = arith.mulf %746, %747 : vector<16x32xf32>
    %c0_281 = arith.constant 0 : index
    %c0_282 = arith.constant 0 : index
    %749 = vector.load %arg23[%c0_281, %c0_282] : memref<32x128xf32, #tpu.memory_space<vmem>>, vector<32x128xf32>
    %cst_283 = arith.constant dense<0.000000e+00> : vector<16x128xf32>
    %750 = tpu.matmul %748, %749, %cst_283 {dimension_numbers = #tpu.dot_dimension_numbers<[1], [0], [0], [1], [0, 0, 1, 1], [], []>} : vector<16x32xf32>, vector<32x128xf32>, vector<16x128xf32> -> vector<16x128xf32>
    %c0_284 = arith.constant 0 : index
    %c0_285 = arith.constant 0 : index
    %751 = vector.load %arg24[%c0_284, %c0_285] : memref<1x128xf32, #tpu.memory_space<vmem>>, vector<1x128xf32>
    %752 = vector.broadcast %751 : vector<1x128xf32> to vector<16x128xf32>
    %753 = arith.addf %750, %752 : vector<16x128xf32>
    %c0_286 = arith.constant 0 : index
    %c0_287 = arith.constant 0 : index
    %754 = vector.load %arg25[%c0_286, %c0_287] : memref<16x128xf32, #tpu.memory_space<vmem>>, vector<16x128xf32>
    tpu.vector_store %arg25[%c0_286, %c0_287], %753 {strides = array<i32>} : memref<16x128xf32, #tpu.memory_space<vmem>>, vector<16x128xf32>,
    return
  }
}

</mosaic_0001>

<bundles_post_ra>
// kernel: t5_forward.1
= control target key start
LH: loop header
LB: loop body
LE: loop exit
PB: predicated region body
PF: predicated region fallthrough
CT: control target
= control target key end

     0   :  { %s12433_s0 = inlined_call_operand.vmem [shape: f32[16,32], index: 0, kind: input, shape index: {}]   ;;  %s12434_s1 = inlined_call_operand.vmem [shape: f32[16,32], index: 1, kind: input, shape index: {}]   ;;  %s12435_s2 = inlined_call_operand.vmem [shape: f32[4,16,16], index: 2, kind: input, shape index: {}]   ;;  %s12436_s3 = inlined_call_operand.vmem [shape: f32[4,16,16], index: 3, kind: input, shape index: {}]   ;;  %s12437_s4 = inlined_call_operand.vmem [shape: f32[16,16], index: 4, kind: input, shape index: {}]   ;;  %s12438_s5 = inlined_call_operand.vmem [shape: f32[2,32], index: 5, kind: input, shape index: {}]   ;;  %s12439_s6 = inlined_call_operand.vmem [shape: f32[2,32,96], index: 6, kind: input, shape index: {}]   ;;  %s12440_s7 = inlined_call_operand.vmem [shape: f32[2,32,32], index: 7, kind: input, shape index: {}]   ;;  %s12441_s8 = inlined_call_operand.vmem [shape: f32[2,32], index: 8, kind: input, shape index: {}]   ;;  %s12442_s9 = inlined_call_operand.vmem [shape: f32[2,32,64], index: 9, kind: input, shape index: {}]   ;;  %s12443_s10 = inlined_call_operand.vmem [shape: f32[2,64,32], index: 10, kind: input, shape index: {}]   ;;  %s12444_s11 = inlined_call_operand.vmem [shape: f32[1,32], index: 11, kind: input, shape index: {}]   ;;  %s12445_s12 = inlined_call_operand.vmem [shape: f32[2,32], index: 12, kind: input, shape index: {}]   ;;  %s12446_s13 = inlined_call_operand.vmem [shape: f32[2,32,96], index: 13, kind: input, shape index: {}]   ;;  %s12447_s14 = inlined_call_operand.vmem [shape: f32[2,32,32], index: 14, kind: input, shape index: {}]   ;;  %s12448_s15 = inlined_call_operand.vmem [shape: f32[2,32], index: 15, kind: input, shape index: {}]   ;;  %s12449_s16 = inlined_call_operand.vmem [shape: f32[2,32,32], index: 16, kind: input, shape index: {}]   ;;  %s12450_s17 = inlined_call_operand.vmem [shape: f32[2,32,64], index: 17, kind: input, shape index: {}]   ;;  %s12451_s18 = inlined_call_operand.vmem [shape: f32[2,32,32], index: 18, kind: input, shape index: {}]   ;;  %s12452_s19 = inlined_call_operand.vmem [shape: f32[2,32], index: 19, kind: input, shape index: {}]   ;;  %s12453_s20 = inlined_call_operand.vmem [shape: f32[2,32,64], index: 20, kind: input, shape index: {}]   ;;  %s12454_s21 = inlined_call_operand.vmem [shape: f32[2,64,32], index: 21, kind: input, shape index: {}]   ;;  %s12455_s22 = inlined_call_operand.vmem [shape: f32[1,32], index: 22, kind: input, shape index: {}]   ;;  %s12456_s23 = inlined_call_operand.vmem [shape: f32[32,128], index: 23, kind: input, shape index: {}]   ;;  %s12457_s24 = inlined_call_operand.vmem [shape: f32[1,128], index: 24, kind: input, shape index: {}]   ;;  %s12458_s25 = inlined_call_operand.hbm [shape: f32[16,128], index: 25, kind: output, shape index: {}]  }
   0x1   :  { %12497 = sst [smem:[#allocation5_spill]] %s12433_s0 }
   0x2   :  { %12498 = sst [smem:[#allocation6_spill]] %s12434_s1 }
   0x3   :  { %12499 = sst [smem:[#allocation7_spill]] %s12435_s2 }
   0x4   :  { %12500 = sst [smem:[#allocation8_spill]] %s12436_s3 }
   0x5   :  { %12501 = sst [smem:[#allocation9_spill]] %s12437_s4 }
   0x6   :  { %12502 = sst [smem:[#allocation10_spill]] %s12438_s5 }
   0x7   :  { %12503 = sst [smem:[#allocation11_spill]] %s12439_s6 }
   0x8   :  { %12504 = sst [smem:[#allocation12_spill]] %s12440_s7 }
   0x9   :  { %12505 = sst [smem:[#allocation13_spill]] %s12441_s8 }
   0xa   :  { %12506 = sst [smem:[#allocation14_spill]] %s12442_s9 }
   0xb   :  { %12507 = sst [smem:[#allocation15_spill]] %s12452_s19 }
   0xc   :  { %12508 = sst [smem:[#allocation16_spill]] %s12453_s20 }
   0xd   :  { %12509 = sst [smem:[#allocation17_spill]] %s12454_s21 }
   0xe   :  { %12510 = sst [smem:[#allocation18_spill]] %s12455_s22 }
   0xf   :  { %12511 = sst [smem:[#allocation19_spill]] %s12456_s23 }
  0x10   :  { %12512 = sst [smem:[#allocation20_spill]] %s12457_s24 }
  0x11   :  { %12513 = sst [smem:[#allocation21_spill]] %s12458_s25 }
  0x12   :  { %s12514_s6 = sld [smem:[#allocation5_spill]]  ;;  %vm104_vm0 = vcmask 261120  }
  0x18   :  { %v11140_v0 = vld [vmem:[%s12514_s6] sm:$0xff]  ;;  %v11145_v1 = vld [vmem:[%s12514_s6 + $0x8] sm:$0xff] }
  0x19   :  { %30 = vsyncpa [#allocation3], 0  ;;  %v102_v2 = vmul.f32 %v11140_v0, %v11140_v0  ;;  %v103_v3 = vmul.f32 %v11145_v1, %v11145_v1  ;;  %s12515_s1 = sld [smem:[#allocation11_spill]]  ;;  %s12516_s2 = sld [smem:[#allocation10_spill]]  ;;  %vm221_vm1 = vcmask 64512   ;;  %vm305_vm3 = vcmask 130048  }
  0x1a   :  { %s12487_s6 = smov 96   ;;  %vm11186_vm2 = vmpackc.low %vm221_vm1, %vm221_vm1  ;;  %s12519_s3 = sld [smem:[#allocation7_spill]]  ;;  %vm1463_vm4 = vcmask 523264  }
  0x1b   :  { %v105_v4 = vsel %vm104_vm0, %v102_v2, 0.0  ;;  %v108_v5 = vsel %vm104_vm0, %v103_v3, 0.0  ;;  %s12489_s27 = smov 88   ;;  %s12483_s4 = smov 112  }
  0x1c   :  { %106 = vadd.xlane.f32.xlu0 %v105_v4  ;;  %s12479_s28 = smov 64   ;;  %s12485_s9 = smov 120  }
  0x1d   :  { %s12481_s5 = smov 80   ;;  %s12477_s26 = smov 72  }
  0x1e   :  { %s12471_s8 = smov 104   ;;  %s12469_s30 = smov 56  }
  0x1f   :  { %v126_v6 = vld [vmem:[%s12515_s1] sm:$0xff]  ;;  %v127_v7 = vld [vmem:[%s12515_s1 + $0x8] sm:$0xff]  ;;  %v128_v8 = vld [vmem:[%s12515_s1 + $0x10] sm:$0xff]  ;;  %s12475_s29 = smov 48   ;;  %s12520_s7 = sld [smem:[#allocation12_spill]] }
  0x20   :  { %109 = vadd.xlane.f32.xlu0 %v108_v5  ;;  %v10031_v9 = vpack.c.bf16 %v127_v7, %v126_v6  ;;  %v129_v10 = vld [vmem:[%s12515_s1 + $0x18] sm:$0xff]  ;;  %v8683_v19 = vld [vmem:[%s12516_s2] ss:$0 sm:$0xff]  ;;  %v11199_v33 = vld [vmem:[%s12519_s3 + $0x8] sm:$0xff]  ;;  %s12526_s0 = smov 80   ;;  %s12531_s25 = smov 48  }
  0x21   :  { %v10035_v11 = vpack.c.bf16 %v129_v10, %v128_v8  ;;  %v11204_v34 = vld [vmem:[%s12519_s3] sm:$0xff]  ;;  %s12536_s24 = sld [smem:[#allocation9_spill]]  ;;  %s12538_s21 = sld [smem:[#allocation15_spill]] }
  0x22   :  { %10032 = vmatprep.subr.bf16.mxu0 %v10031_v9 }
  0x23   :  { %10034 = vmatpush3.bf16.msra.mxu0 %v10031_v9 }
  0x24   :  { %10036 = vmatprep.subr.bf16.mxu0 %v10035_v11 }
  0x27   :  { %10038 = vmatpush3.bf16.msra.mxu0 %v10035_v11 }
  0xa9   :  { %v107_v12 = vpop.xlane.xlu0 %106 }
  0xaa   :  { %v112_v13 = vmul.f32 0.03125, %v107_v12 }
  0xac   :  { %v114_v14 = vadd.f32 1e-06, %v112_v13  ;;  %v11247_v13 = vld [vmem:[%s12519_s3 + $0x18] sm:$0xff] }
  0xad   :  { %v110_v15 = vpop.xlane.xlu0 %109 }
  0xae   :  { %10719 = vrsqrt.f32 %v114_v14  ;;  %v113_v16 = vmul.f32 0.03125, %v110_v15  ;;  %v11252_v14 = vld [vmem:[%s12519_s3 + $0x10] sm:$0xff] }
  0xb0   :  { %v115_v17 = vadd.f32 1e-06, %v113_v16 }
  0xb2   :  { %10721 = vrsqrt.f32 %v115_v17 }
  0xb8   :  { %v10720_v18 = vpop.eup %10719 }
  0xb9   :  { %v118_v20 = vmul.f32 %v10720_v18, %v11140_v0 }
  0xbb   :  { %v124_v21 = vmul.f32 %v8683_v19, %v118_v20 }
  0xbc   :  { %v10722_v22 = vpop.eup %10721 }
  0xbd   :  { %v119_v23 = vmul.f32 %v10722_v22, %v11145_v1  ;;  %9364 = vmatprep.mubr.msk.f32.mxu0 %vm104_vm0, %v124_v21 }
  0xbf   :  { %v125_v24 = vmul.f32 %v8683_v19, %v119_v23  ;;  %v11267_v23 = vld [vmem:[%s12519_s3 + $0x28] sm:$0xff] }
  0xc1   :  { %9365 = vmatmul.mubr.msk.f32.vlgmr.msra.gmra.mrb[0].mxu0 %vm104_vm0, %v125_v24 }
 0x194   :  { %v11172_v25 = vpop.f32.mrb[0].mxu0 }
 0x195   :  { %v11174_v26 = vpop.f32.mrb[1].mxu0 }
 0x196   :  { %9371 = vmatprep.mubr.msk.f32.mxu1 %vm221_vm1, %v11174_v26  ;;  %v11180_v27 = vpack.i.bf16 %v11172_v25, %v11174_v26 }
 0x198   :  { %10490 = vrot.lane.b32.xlu1 %v11180_v27, %s12487_s6  ;;  %s12527_s6 = smov 64  }
 0x20a   :  { %v10491_v28 = vpop.permute.xlu1 %10490 }
 0x20b   :  { %v10493_v29 = vunpack.i.h.bf16 %v10491_v28  ;;  %v10492_v30 = vunpack.i.l.bf16 %v10491_v28 }
 0x20d   :  { %v10039_v32 = vpack.c.bf16 %v10493_v29, %v10492_v30 }
 0x20f   :  { %10041 = vmatprep.subr.msk.bf16.mxu1 %vm11186_vm2, %v10039_v32 }
 0x210   :  { %10044 = vmatpush3.bf16.xpose.msk.msra.mxu1 %vm11186_vm2, %v10039_v32 }
 0x217   :  { %9372 = vmatmul.mubr.msk.f32.vlgmr.msra.gmra.mrb[0].mxu1 %vm221_vm1, %v11172_v25 }
 0x2ea   :  { %v9373_v35 = vpop.f32.mrb[0].mxu1 }
 0x2eb   :  { %v302_v36 = vadd.f32 %v9373_v35, %v11199_v33  ;;  %v296_v37 = vpop.f32.mrb[1].mxu1 }
 0x2ec   :  { %v297_v38 = vadd.f32 %v296_v37, %v11204_v34 }
 0x2ed   :  { %v309_v39 = vsel %vm305_vm3, %v302_v36, -inf }
 0x2ee   :  { %310 = vmax.xlane.f32.xlu0 %v309_v39  ;;  %v306_v40 = vsel %vm305_vm3, %v297_v38, -inf }
 0x2ef   :  { %307 = vmax.xlane.f32.xlu1 %v306_v40 }
 0x300   :  { %10500 = vrot.lane.b32.xlu1 %v11180_v27, %s12489_s27 }
 0x304   :  { %779 = vrot.lane.b32.xlu1 %v11172_v25, %s12483_s4  ;;  %10495 = vrot.lane.b32.xlu0 %v11180_v27, %s12479_s28  ;;  %s12530_s28 = smov 56  }
 0x37b   :  { %v311_v41 = vpop.xlane.xlu0 %310 }
 0x37c   :  { %v313_v42 = vsub.f32 %v302_v36, %v311_v41  ;;  %v308_v43 = vpop.xlane.xlu1 %307 }
 0x37d   :  { %v312_v44 = vsub.f32 %v297_v38, %v308_v43 }
 0x37e   :  { %v316_v45 = vmul.f32 1.442695, %v313_v42 }
 0x37f   :  { %v314_v46 = vmul.f32 1.442695, %v312_v44  ;;  %v10496_v47 = vpop.permute.xlu0 %10495 }
 0x380   :  { %10723 = vpow2.f32 %v316_v45  ;;  %v10498_v48 = vunpack.i.h.bf16 %v10496_v47  ;;  %v10497_v49 = vunpack.i.l.bf16 %v10496_v47  ;;  %v10501_v50 = vpop.permute.xlu1 %10500 }
 0x381   :  { %v10503_v51 = vunpack.i.h.bf16 %v10501_v50  ;;  %v10502_v52 = vunpack.i.l.bf16 %v10501_v50  ;;  %10725 = vpow2.f32 %v314_v46 }
 0x382   :  { %v10045_v53 = vpack.c.bf16 %v10498_v48, %v10497_v49  ;;  %v11284_v49 = vld [vmem:[%s12519_s3 + $0x20] sm:$0xff] }
 0x383   :  { %v10049_v54 = vpack.c.bf16 %v10503_v51, %v10502_v52 }
 0x384   :  { %10046 = vmatprep.subr.bf16.mxu1 %v10045_v53  ;;  %v780_v10 = vpop.permute.xlu1 %779 }
 0x385   :  { %10048 = vmatpush3.bf16.msra.mxu1 %v10045_v53 }
 0x386   :  { %10051 = vmatprep.subr.msk.bf16.mxu1 %vm11186_vm2, %v10049_v54 }
 0x38a   :  { %v10724_v55 = vpop.eup %10723 }
 0x38b   :  { %v321_v56 = vsel %vm305_vm3, %v10724_v55, 0.0  ;;  %v10726_v57 = vpop.eup %10725 }
 0x38c   :  { %322 = vadd.xlane.f32.xlu0 %v321_v56  ;;  %v318_v58 = vsel %vm305_vm3, %v10726_v57, 0.0 }
 0x390   :  { %319 = vadd.xlane.f32.xlu0 %v318_v58 }
 0x3a6   :  { %415 = vrot.lane.b32.xlu0 %v11174_v26, %s12485_s9 }
 0x3aa   :  { %417 = vrot.lane.b32.xlu0 %v11172_v25, %s12485_s9  ;;  %s12528_s9 = smov 72  }
 0x3ae   :  { %10505 = vrot.lane.b32.xlu0 %v11180_v27, %s12481_s5  ;;  %s12533_s5 = sld [smem:[#allocation6_spill]] }
 0x3b2   :  { %777 = vrot.lane.b32.xlu0 %v11174_v26, %s12483_s4  ;;  %s12532_s4 = smov 40  }
 0x419   :  { %v323_v59 = vpop.xlane.xlu0 %322 }
 0x41a   :  { %10727 = vrcp.f32 %v323_v59 }
 0x41d   :  { %v320_v60 = vpop.xlane.xlu0 %319 }
 0x41e   :  { %10729 = vrcp.f32 %v320_v60 }
 0x421   :  { %v416_v61 = vpop.permute.xlu0 %415 }
 0x424   :  { %v10728_v63 = vpop.eup %10727 }
 0x425   :  { %v418_v62 = vpop.permute.xlu0 %417  ;;  %v327_v7 = vmul.f32 %v10728_v63, %v10724_v55 }
 0x428   :  { %v10730_v2 = vpop.eup %10729 }
 0x429   :  { %v10506_v3 = vpop.permute.xlu0 %10505  ;;  %v326_v4 = vmul.f32 %v10730_v2, %v10726_v57 }
 0x42a   :  { %v10508_v5 = vunpack.i.h.bf16 %v10506_v3  ;;  %v10507_v6 = vunpack.i.l.bf16 %v10506_v3 }
 0x42b   :  { %9378 = vmatprep.mubr.msk.f32.mxu1 %vm305_vm3, %v326_v4 }
 0x42c   :  { %v10059_v8 = vpack.c.bf16 %v10508_v5, %v10507_v6  ;;  %9379 = vmatmul.mubr.msk.f32.vlgmr.msra.gmra.mrb[2].mxu1 %vm305_vm3, %v327_v7  ;;  %v11297_v5 = vld [vmem:[%s12519_s3 + $0x30] sm:$0xff]  ;;  %v11302_v7 = vld [vmem:[%s12519_s3 + $0x38] sm:$0xff]  ;;  %s12521_s3 = sld [smem:[#allocation14_spill]] }
 0x42d   :  { %10054 = vmatpush3.bf16.xpose.msk.msra.mxu1 %vm11186_vm2, %v10049_v54  ;;  %9385 = vmatprep.mubr.msk.f32.mxu1 %vm221_vm1, %v416_v61  ;;  %v778_v9 = vpop.permute.xlu0 %777 }
 0x42e   :  { %10061 = vmatprep.subr.msk.bf16.mxu1 %vm11186_vm2, %v10059_v8 }
 0x434   :  { %9386 = vmatmul.mubr.msk.f32.vlgmr.msra.gmra.mrb[4].mxu1 %vm221_vm1, %v418_v62 }
 0x435   :  { %10064 = vmatpush3.bf16.xpose.msk.msra.mxu1 %vm11186_vm2, %v10059_v8  ;;  %9409 = vmatprep.mubr.msk.f32.mxu1 %vm221_vm1, %v778_v9 }
 0x43c   :  { %9410 = vmatmul.mubr.msk.f32.vlgmr.msra.gmra.mrb[6].mxu1 %vm221_vm1, %v780_v10 }
 0x4ff   :  { %v11240_v11 = vpop.f32.mrb[2].mxu1 }
 0x500   :  { %v11242_v12 = vpop.f32.mrb[3].mxu1 }
 0x507   :  { %v9387_v15 = vpop.f32.mrb[4].mxu1 }
 0x508   :  { %v503_v16 = vadd.f32 %v9387_v15, %v11247_v13  ;;  %v497_v17 = vpop.f32.mrb[5].mxu1 }
 0x509   :  { %v498_v18 = vadd.f32 %v497_v17, %v11252_v14 }
 0x50a   :  { %v509_v19 = vsel %vm305_vm3, %v503_v16, -inf }
 0x50b   :  { %510 = vmax.xlane.f32.xlu1 %v509_v19  ;;  %v506_v20 = vsel %vm305_vm3, %v498_v18, -inf  ;;  %v212_v19 = vld [vmem:[%s12520_s7 + $0x8] sm:$0xff] }
 0x50c   :  { %507 = vmax.xlane.f32.xlu0 %v506_v20  ;;  %v211_v20 = vld [vmem:[%s12520_s7] sm:$0xff] }
 0x50f   :  { %v9411_v21 = vpop.f32.mrb[6].mxu1 }
 0x510   :  { %v859_v22 = vpop.f32.mrb[7].mxu1  ;;  %v865_v24 = vadd.f32 %v9411_v21, %v11267_v23 }
 0x511   :  { %v860_v50 = vadd.f32 %v859_v22, %v11284_v49 }
 0x512   :  { %v871_v28 = vsel %vm305_vm3, %v865_v24, -inf }
 0x513   :  { %v868_v51 = vsel %vm305_vm3, %v860_v50, -inf }
 0x51c   :  { %10515 = vrot.lane.b32.xlu1 %v11180_v27, %s12477_s26  ;;  %s12541_s26 = sld [smem:[#allocation18_spill]] }
 0x520   :  { %1060 = vrot.lane.b32.xlu1 %v11174_v26, %s12471_s8 }
 0x524   :  { %1062 = vrot.lane.b32.xlu1 %v11172_v25, %s12471_s8  ;;  %s12473_s8 = smov 40  }
 0x548   :  { %872 = vmax.xlane.f32.xlu1 %v871_v28 }
 0x598   :  { %v511_v29 = vpop.xlane.xlu1 %510 }
 0x599   :  { %v513_v30 = vsub.f32 %v503_v16, %v511_v29  ;;  %v508_v32 = vpop.xlane.xlu0 %507 }
 0x59a   :  { %v512_v35 = vsub.f32 %v498_v18, %v508_v32 }
 0x59b   :  { %v516_v36 = vmul.f32 1.442695, %v513_v30 }
 0x59c   :  { %v514_v37 = vmul.f32 1.442695, %v512_v35  ;;  %v10516_v26 = vpop.permute.xlu1 %10515 }
 0x59d   :  { %10731 = vpow2.f32 %v516_v36  ;;  %v10518_v38 = vunpack.i.h.bf16 %v10516_v26  ;;  %v10517_v25 = vunpack.i.l.bf16 %v10516_v26 }
 0x59e   :  { %10733 = vpow2.f32 %v514_v37 }
 0x59f   :  { %v10069_v39 = vpack.c.bf16 %v10518_v38, %v10517_v25 }
 0x5a0   :  { %v1061_v40 = vpop.permute.xlu1 %1060 }
 0x5a1   :  { %10071 = vmatprep.subr.msk.bf16.mxu1 %vm11186_vm2, %v10069_v39  ;;  %9428 = vmatprep.mubr.msk.f32.mxu1 %vm221_vm1, %v1061_v40 }
 0x5a2   :  { %10074 = vmatpush3.bf16.xpose.msk.msra.mxu1 %vm11186_vm2, %v10069_v39 }
 0x5a4   :  { %v1063_v42 = vpop.permute.xlu1 %1062 }
 0x5a7   :  { %v10732_v41 = vpop.eup %10731 }
 0x5a8   :  { %v521_v43 = vsel %vm305_vm3, %v10732_v41, 0.0  ;;  %v10734_v44 = vpop.eup %10733 }
 0x5a9   :  { %9429 = vmatmul.mubr.msk.f32.vlgmr.msra.gmra.mrb[8].mxu1 %vm221_vm1, %v1063_v42  ;;  %522 = vadd.xlane.f32.xlu0 %v521_v43  ;;  %v518_v45 = vsel %vm305_vm3, %v10734_v44, 0.0 }
 0x5ad   :  { %519 = vadd.xlane.f32.xlu0 %v518_v45 }
 0x5c3   :  { %10510 = vrot.lane.b32.xlu0 %v11180_v27, %s12469_s30  ;;  %s12525_s30 = smov 112  }
 0x5d5   :  { %v873_v46 = vpop.xlane.xlu1 %872 }
 0x5d6   :  { %v875_v47 = vsub.f32 %v865_v24, %v873_v46 }
 0x5d8   :  { %v878_v48 = vmul.f32 1.442695, %v875_v47  ;;  %v213_v47 = vld [vmem:[%s12520_s7 + $0x10] sm:$0xff] }
 0x5da   :  { %10735 = vpow2.f32 %v878_v48 }
 0x5e2   :  { %869 = vmax.xlane.f32.xlu0 %v868_v51 }
 0x5e4   :  { %v11288_v52 = vpop.eup %10735 }
 0x5e5   :  { %v883_v53 = vsel %vm305_vm3, %v11288_v52, 0.0 }
 0x5e6   :  { %884 = vadd.xlane.f32.xlu0 %v883_v53 }
 0x636   :  { %v523_v54 = vpop.xlane.xlu0 %522 }
 0x637   :  { %10737 = vrcp.f32 %v523_v54 }
 0x63a   :  { %v520_v55 = vpop.xlane.xlu0 %519 }
 0x63b   :  { %10739 = vrcp.f32 %v520_v55 }
 0x63e   :  { %v10511_v56 = vpop.permute.xlu0 %10510 }
 0x63f   :  { %v10513_v57 = vunpack.i.h.bf16 %v10511_v56  ;;  %v10512_v58 = vunpack.i.l.bf16 %v10511_v56 }
 0x641   :  { %v10055_v59 = vpack.c.bf16 %v10513_v57, %v10512_v58  ;;  %v10738_v60 = vpop.eup %10737  ;;  %v214_v58 = vld [vmem:[%s12520_s7 + $0x18] sm:$0xff] }
 0x642   :  { %v527_v63 = vmul.f32 %v10738_v60, %v10732_v41 }
 0x643   :  { %10056 = vmatprep.subr.bf16.mxu0 %v10055_v59 }
 0x644   :  { %10058 = vmatpush3.bf16.msra.mxu0 %v10055_v59 }
 0x645   :  { %v10740_v61 = vpop.eup %10739  ;;  %9395 = vmatprep.subr.mxu0 %v212_v19 }
 0x646   :  { %v526_v62 = vmul.f32 %v10740_v61, %v10734_v44 }
 0x648   :  { %9392 = vmatprep.mubr.msk.f32.mxu0 %vm305_vm3, %v526_v62 }
 0x649   :  { %9393 = vmatmul.mubr.msk.f32.vlgmr.msra.gmra.mrb[2].mxu0 %vm305_vm3, %v527_v63 }
 0x64a   :  { %9396 = vmatpush3.msra.mxu0 %v212_v19  ;;  %v1456_v19 = vld [vmem:[%s12443_s10 + $0x8] sm:$0xff] }
 0x64b   :  { %9400 = vmatprep.subr.mxu0 %v211_v20 }
 0x66f   :  { %v870_v2 = vpop.xlane.xlu0 %869 }
 0x670   :  { %v874_v3 = vsub.f32 %v860_v50, %v870_v2 }
 0x672   :  { %v876_v4 = vmul.f32 1.442695, %v874_v3 }
 0x673   :  { %v885_v21 = vpop.xlane.xlu0 %884 }
 0x674   :  { %10741 = vpow2.f32 %v876_v4 }
 0x67c   :  { %v9430_v6 = vpop.f32.mrb[8].mxu1 }
 0x67d   :  { %v1142_v8 = vpop.f32.mrb[9].mxu1  ;;  %v1148_v16 = vadd.f32 %v9430_v6, %v11302_v7 }
 0x67e   :  { %v10742_v9 = vpop.eup %10741  ;;  %v1143_v10 = vadd.f32 %v1142_v8, %v11297_v5 }
 0x67f   :  { %v880_v15 = vsel %vm305_vm3, %v10742_v9, 0.0  ;;  %v1154_v18 = vsel %vm305_vm3, %v1148_v16, -inf }
 0x680   :  { %881 = vadd.xlane.f32.xlu0 %v880_v15  ;;  %v1151_v17 = vsel %vm305_vm3, %v1143_v10, -inf }
 0x681   :  { %1152 = vmax.xlane.f32.xlu1 %v1151_v17 }
 0x685   :  { %1155 = vmax.xlane.f32.xlu1 %v1154_v18  ;;  %v1455_v18 = vld [vmem:[%s12443_s10] sm:$0xff] }
 0x696   :  { %10520 = vrot.lane.b32.xlu0 %v11180_v27, %s12475_s29  ;;  %s12522_s29 = sld [smem:[#allocation13_spill]] }
 0x70d   :  { %v882_v28 = vpop.xlane.xlu0 %881 }
 0x70e   :  { %v1153_v22 = vpop.xlane.xlu1 %1152 }
 0x70f   :  { %v1157_v24 = vsub.f32 %v1143_v10, %v1153_v22  ;;  %v1370_v10 = vld [vmem:[%s12521_s3 + $0x10] sm:$0xff]  ;;  %v1458_v22 = vld [vmem:[%s12443_s10 + $0x18] sm:$0xff] }
 0x711   :  { %v1159_v32 = vmul.f32 1.442695, %v1157_v24  ;;  %v10521_v36 = vpop.permute.xlu0 %10520 }
 0x712   :  { %v1156_v29 = vpop.xlane.xlu1 %1155  ;;  %v10523_v37 = vunpack.i.h.bf16 %v10521_v36  ;;  %v10522_v26 = vunpack.i.l.bf16 %v10521_v36 }
 0x713   :  { %v1158_v30 = vsub.f32 %v1148_v16, %v1156_v29  ;;  %v1371_v16 = vld [vmem:[%s12521_s3 + $0x18] sm:$0xff]  ;;  %v1460_v29 = vld [vmem:[%s12443_s10 + $0x28] sm:$0xff] }
 0x714   :  { %v10065_v39 = vpack.c.bf16 %v10523_v37, %v10522_v26  ;;  %v10083_v17 = vpack.c.bf16 %v1371_v16, %v1370_v10 }
 0x715   :  { %v1161_v35 = vmul.f32 1.442695, %v1158_v30 }
 0x717   :  { %10743 = vpow2.f32 %v1161_v35 }
 0x718   :  { %10745 = vrcp.f32 %v882_v28  ;;  %v1459_v28 = vld [vmem:[%s12443_s10 + $0x20] sm:$0xff] }
 0x719   :  { %10747 = vpow2.f32 %v1159_v32  ;;  %v10095_v30 = vpack.c.bf16 %v1460_v29, %v1459_v28 }
 0x71a   :  { %10749 = vrcp.f32 %v885_v21  ;;  %v10087_v21 = vpack.c.bf16 %v1456_v19, %v1455_v18 }
 0x71c   :  { %v9394_v38 = vpop.f32.mrb[2].mxu0 }
 0x71d   :  { %v606_v25 = vpop.f32.mrb[3].mxu0 }
 0x71e   :  { %9397 = vmatprep.mubr.msk.f32.mxu0 %vm221_vm1, %v606_v25 }
 0x71f   :  { %9398 = vmatmul.mubr.msk.f32.vlgmr.msra.gmra.mrb[4].mxu0 %vm221_vm1, %v9394_v38 }
 0x720   :  { %9401 = vmatpush3.msra.mxu0 %v211_v20  ;;  %9402 = vmatprep.mubr.msk.f32.mxu0 %vm221_vm1, %v11242_v12  ;;  %v1457_v20 = vld [vmem:[%s12443_s10 + $0x10] sm:$0xff] }
 0x721   :  { %v10744_v40 = vpop.eup %10743  ;;  %10066 = vmatprep.subr.bf16.mxu0 %v10065_v39  ;;  %v10091_v24 = vpack.c.bf16 %v1458_v22, %v1457_v20 }
 0x722   :  { %v10746_v41 = vpop.eup %10745  ;;  %v1166_v42 = vsel %vm305_vm3, %v10744_v40, 0.0 }
 0x723   :  { %v10748_v43 = vpop.eup %10747  ;;  %1167 = vadd.xlane.f32.xlu1 %v1166_v42  ;;  %v888_v46 = vmul.f32 %v10746_v41, %v10742_v9 }
 0x724   :  { %v10750_v44 = vpop.eup %10749  ;;  %v1163_v45 = vsel %vm305_vm3, %v10748_v43, 0.0 }
 0x725   :  { %v889_v12 = vmul.f32 %v10750_v44, %v11288_v52 }
 0x727   :  { %1164 = vadd.xlane.f32.xlu1 %v1163_v45  ;;  %9403 = vmatmul.mubr.msk.f32.vlgmr.msra.gmra.mrb[4].mxu0 %vm221_vm1, %v11240_v11  ;;  %v1461_v45 = vld [vmem:[%s12443_s10 + $0x30] sm:$0xff] }
 0x728   :  { %10068 = vmatpush3.bf16.msra.mxu0 %v10065_v39  ;;  %9416 = vmatprep.mubr.msk.f32.mxu0 %vm305_vm3, %v888_v46  ;;  %v1462_v46 = vld [vmem:[%s12443_s10 + $0x38] sm:$0xff] }
 0x729   :  { %9419 = vmatprep.subr.mxu0 %v213_v47 }
 0x72b   :  { %9417 = vmatmul.mubr.msk.f32.vlgmr.msra.gmra.mrb[6].mxu0 %vm305_vm3, %v889_v12  ;;  %v10099_v12 = vpack.c.bf16 %v1462_v46, %v1461_v45 }
 0x72c   :  { %9420 = vmatpush3.msra.mxu0 %v213_v47 }
 0x738   :  { %10525 = vrot.lane.b32.xlu1 %v11180_v27, %s12473_s8  ;;  %s12529_s8 = smov 104  }
 0x7b0   :  { %v1168_v48 = vpop.xlane.xlu1 %1167 }
 0x7b4   :  { %v1165_v50 = vpop.xlane.xlu1 %1164 }
 0x7b5   :  { %10751 = vrcp.f32 %v1165_v50 }
 0x7b6   :  { %10753 = vrcp.f32 %v1168_v48 }
 0x7b8   :  { %v10526_v11 = vpop.permute.xlu1 %10525 }
 0x7b9   :  { %v10528_v51 = vunpack.i.h.bf16 %v10526_v11  ;;  %v10527_v53 = vunpack.i.l.bf16 %v10526_v11 }
 0x7bb   :  { %v10075_v54 = vpack.c.bf16 %v10528_v51, %v10527_v53 }
 0x7bd   :  { %10076 = vmatprep.subr.bf16.mxu0 %v10075_v54 }
 0x7bf   :  { %v10752_v52 = vpop.eup %10751 }
 0x7c0   :  { %v10754_v57 = vpop.eup %10753  ;;  %v1171_v27 = vmul.f32 %v10752_v52, %v10748_v43 }
 0x7c1   :  { %v1172_v59 = vmul.f32 %v10754_v57, %v10744_v40  ;;  %v8718_v40 = vld [vmem:[%s12522_s29] ss:$0 sm:$0xff] }
 0x7fe   :  { %v9418_v55 = vpop.f32.mrb[6].mxu0 }
 0x7ff   :  { %v968_v56 = vpop.f32.mrb[7].mxu0 }
 0x800   :  { %9421 = vmatprep.mubr.msk.f32.mxu0 %vm221_vm1, %v968_v56 }
 0x801   :  { %9422 = vmatmul.mubr.msk.f32.vlgmr.msra.gmra.mrb[4].mxu0 %vm221_vm1, %v9418_v55 }
 0x802   :  { %10078 = vmatpush3.bf16.msra.mxu0 %v10075_v54  ;;  %9435 = vmatprep.mubr.msk.f32.mxu0 %vm305_vm3, %v1171_v27 }
 0x803   :  { %9438 = vmatprep.subr.mxu0 %v214_v58 }
 0x805   :  { %9436 = vmatmul.mubr.msk.f32.vlgmr.msra.gmra.mrb[8].mxu0 %vm305_vm3, %v1172_v59  ;;  %v8725_v59 = vld [vmem:[%s12515_s1 + $0x28] sm:$0xff] }
 0x806   :  { %9439 = vmatpush3.msra.mxu0 %v214_v58  ;;  %v8724_v58 = vld [vmem:[%s12515_s1 + $0x20] sm:$0xff] }
 0x807   :  { %10088 = vmatprep.subr.bf16.mxu0 %v10087_v21 }
 0x8d8   :  { %v9437_v60 = vpop.f32.mrb[8].mxu0 }
 0x8d9   :  { %v1251_v61 = vpop.f32.mrb[9].mxu0 }
 0x8da   :  { %9440 = vmatprep.mubr.msk.f32.mxu0 %vm221_vm1, %v1251_v61  ;;  %v10103_v61 = vpack.c.bf16 %v8725_v59, %v8724_v58 }
 0x8db   :  { %9441 = vmatmul.mubr.msk.f32.vlgmr.msra.gmra.mrb[4].mxu0 %vm221_vm1, %v9437_v60  ;;  %v8726_v60 = vld [vmem:[%s12515_s1 + $0x30] sm:$0xff] }
 0x8dc   :  { %10090 = vmatpush3.bf16.msra.mxu0 %v10087_v21 }
 0x8dd   :  { %10092 = vmatprep.subr.bf16.mxu0 %v10091_v24 }
 0x8e0   :  { %10094 = vmatpush3.bf16.msra.mxu0 %v10091_v24 }
 0x8e1   :  { %10096 = vmatprep.subr.bf16.mxu0 %v10095_v30 }
 0x8e4   :  { %10098 = vmatpush3.bf16.msra.mxu0 %v10095_v30 }
 0x8e5   :  { %10100 = vmatprep.subr.bf16.mxu0 %v10099_v12 }
 0x8e8   :  { %10102 = vmatpush3.bf16.msra.mxu0 %v10099_v12 }
 0x9ae   :  { %v9442_v62 = vpop.f32.mrb[4].mxu0 }
 0x9af   :  { %v11343_v63 = vadd.f32 %v9442_v62, %v11145_v1  ;;  %v1332_v2 = vpop.f32.mrb[5].mxu0  ;;  %v1368_v1 = vld [vmem:[%s12521_s3] sm:$0xff]  ;;  %v8727_v62 = vld [vmem:[%s12515_s1 + $0x38] sm:$0xff]  ;;  %s12523_s1 = smov 96  }
 0x9b0   :  { %v11346_v3 = vadd.f32 %v1332_v2, %v11140_v0  ;;  %v1369_v0 = vld [vmem:[%s12521_s3 + $0x8] sm:$0xff] }
 0x9b1   :  { %v1347_v4 = vmul.f32 %v11343_v63, %v11343_v63  ;;  %v10079_v15 = vpack.c.bf16 %v1369_v0, %v1368_v1  ;;  %v8723_v0 = vld [vmem:[%s12516_s2 + $0x1] ss:$0 sm:$0xff]  ;;  %s12524_s2 = smov 120  }
 0x9b2   :  { %v1346_v6 = vmul.f32 %v11346_v3, %v11346_v3 }
 0x9b3   :  { %v1351_v8 = vsel %vm104_vm0, %v1347_v4, 0.0  ;;  %10080 = vmatprep.subr.bf16.mxu1 %v10079_v15 }
 0x9b4   :  { %1352 = vadd.xlane.f32.xlu1 %v1351_v8  ;;  %v1348_v9 = vsel %vm104_vm0, %v1346_v6, 0.0  ;;  %10082 = vmatpush3.bf16.msra.mxu1 %v10079_v15 }
 0x9b5   :  { %1349 = vadd.xlane.f32.xlu0 %v1348_v9  ;;  %10084 = vmatprep.subr.bf16.mxu1 %v10083_v17 }
 0x9b8   :  { %10086 = vmatpush3.bf16.msra.mxu1 %v10083_v17 }
 0x9b9   :  { %10104 = vmatprep.subr.bf16.mxu1 %v10103_v61 }
 0xa41   :  { %v1353_v32 = vpop.xlane.xlu1 %1352 }
 0xa42   :  { %v1355_v35 = vmul.f32 0.03125, %v1353_v32  ;;  %v1350_v36 = vpop.xlane.xlu0 %1349 }
 0xa43   :  { %v1354_v37 = vmul.f32 0.03125, %v1350_v36 }
 0xa44   :  { %v1357_v26 = vadd.f32 1e-06, %v1355_v35 }
 0xa45   :  { %v1356_v38 = vadd.f32 1e-06, %v1354_v37 }
 0xa46   :  { %10755 = vrsqrt.f32 %v1357_v26 }
 0xa47   :  { %10757 = vrsqrt.f32 %v1356_v38 }
 0xa50   :  { %v10756_v25 = vpop.eup %10755 }
 0xa51   :  { %v10758_v39 = vpop.eup %10757  ;;  %v1361_v41 = vmul.f32 %v10756_v25, %v11343_v63 }
 0xa52   :  { %v1360_v42 = vmul.f32 %v10758_v39, %v11346_v3 }
 0xa53   :  { %v1367_v44 = vmul.f32 %v8718_v40, %v1361_v41 }
 0xa54   :  { %v1366_v43 = vmul.f32 %v8718_v40, %v1360_v42 }
 0xa56   :  { %9451 = vmatprep.mubr.msk.f32.mxu1 %vm104_vm0, %v1366_v43 }
 0xa57   :  { %9452 = vmatmul.mubr.msk.f32.vlgmr.msra.gmra.mrb[10].mxu1 %vm104_vm0, %v1367_v44 }
 0xa58   :  { %10106 = vmatpush3.bf16.msra.mxu1 %v10103_v61 }
 0xb2a   :  { %v9453_v47 = vpop.f32.mrb[10].mxu1 }
 0xb2b   :  { %v1444_v48 = vpop.f32.mrb[11].mxu1  ;;  %v1454_v11 = vmax.f32 %v9453_v47, 0.0 }
 0xb2c   :  { %v1453_v50 = vmax.f32 %v1444_v48, 0.0 }
 0xb2e   :  { %9470 = vmatprep.mubr.msk.f32.mxu0 %vm1463_vm4, %v1453_v50 }
 0xb2f   :  { %9471 = vmatmul.mubr.msk.f32.vlgmr.msra.gmra.mrb[10].mxu0 %vm1463_vm4, %v1454_v11 }
 0xc02   :  { %v9472_v51 = vpop.f32.mrb[10].mxu0 }
 0xc03   :  { %v1536_v53 = vpop.f32.mrb[11].mxu0  ;;  %v11400_v54 = vadd.f32 %v9472_v51, %v11343_v63  ;;  %v10107_v63 = vpack.c.bf16 %v8727_v62, %v8726_v60 }
 0xc04   :  { %v11403_v52 = vadd.f32 %v1536_v53, %v11346_v3 }
 0xc05   :  { %v1549_v57 = vmul.f32 %v11400_v54, %v11400_v54  ;;  %10108 = vmatprep.subr.bf16.mxu1 %v10107_v63 }
 0xc06   :  { %v1548_v55 = vmul.f32 %v11403_v52, %v11403_v52  ;;  %10110 = vmatpush3.bf16.msra.mxu1 %v10107_v63 }
 0xc07   :  { %v1553_v27 = vsel %vm104_vm0, %v1549_v57, 0.0 }
 0xc08   :  { %v1550_v56 = vsel %vm104_vm0, %v1548_v55, 0.0 }
 0xc09   :  { %1551 = vadd.xlane.f32.xlu0 %v1550_v56 }
 0xc0d   :  { %1554 = vadd.xlane.f32.xlu0 %v1553_v27 }
 0xc96   :  { %v1552_v2 = vpop.xlane.xlu0 %1551 }
 0xc97   :  { %v1556_v3 = vmul.f32 0.03125, %v1552_v2 }
 0xc99   :  { %v1558_v4 = vadd.f32 1e-06, %v1556_v3 }
 0xc9a   :  { %v1555_v6 = vpop.xlane.xlu0 %1554 }
 0xc9b   :  { %10759 = vrsqrt.f32 %v1558_v4  ;;  %v1557_v8 = vmul.f32 0.03125, %v1555_v6 }
 0xc9d   :  { %v1559_v9 = vadd.f32 1e-06, %v1557_v8 }
 0xc9f   :  { %10761 = vrsqrt.f32 %v1559_v9 }
 0xca5   :  { %v10760_v1 = vpop.eup %10759 }
 0xca6   :  { %v1562_v10 = vmul.f32 %v10760_v1, %v11403_v52 }
 0xca8   :  { %v1568_v15 = vmul.f32 %v8723_v0, %v1562_v10 }
 0xca9   :  { %v10762_v16 = vpop.eup %10761 }
 0xcaa   :  { %v1563_v17 = vmul.f32 %v10762_v16, %v11400_v54  ;;  %9481 = vmatprep.mubr.msk.f32.mxu1 %vm104_vm0, %v1568_v15 }
 0xcac   :  { %v1569_v18 = vmul.f32 %v8723_v0, %v1563_v17 }
 0xcae   :  { %9482 = vmatmul.mubr.msk.f32.vlgmr.msra.gmra.mrb[12].mxu1 %vm104_vm0, %v1569_v18 }
 0xd81   :  { %v11430_v19 = vpop.f32.mrb[12].mxu1 }
 0xd82   :  { %v11432_v20 = vpop.f32.mrb[13].mxu1 }
 0xd83   :  { %9488 = vmatprep.mubr.msk.f32.mxu1 %vm221_vm1, %v11432_v20  ;;  %v11438_v21 = vpack.i.bf16 %v11430_v19, %v11432_v20 }
 0xd85   :  { %10535 = vrot.lane.b32.xlu1 %v11438_v21, %s12489_s27  ;;  %10530 = vrot.lane.b32.xlu0 %v11438_v21, %s12523_s1 }
 0xd89   :  { %1861 = vrot.lane.b32.xlu1 %v11430_v19, %s12524_s2  ;;  %1859 = vrot.lane.b32.xlu0 %v11432_v20, %s12524_s2 }
 0xd8d   :  { %2221 = vrot.lane.b32.xlu1 %v11432_v20, %s12525_s30  ;;  %10540 = vrot.lane.b32.xlu0 %v11438_v21, %s12526_s0 }
 0xd91   :  { %2223 = vrot.lane.b32.xlu0 %v11430_v19, %s12525_s30 }
 0xdf7   :  { %v10536_v22 = vpop.permute.xlu1 %10535  ;;  %v10531_v24 = vpop.permute.xlu0 %10530 }
 0xdf8   :  { %v10538_v28 = vunpack.i.h.bf16 %v10536_v22  ;;  %v10537_v29 = vunpack.i.l.bf16 %v10536_v22  ;;  %v10533_v30 = vunpack.i.h.bf16 %v10531_v24  ;;  %v10532_v32 = vunpack.i.l.bf16 %v10531_v24 }
 0xdfa   :  { %v10111_v35 = vpack.c.bf16 %v10533_v30, %v10532_v32  ;;  %v10121_v37 = vpack.c.bf16 %v10538_v28, %v10537_v29 }
 0xdfb   :  { %v1860_v36 = vpop.permute.xlu0 %1859  ;;  %v1862_v40 = vpop.permute.xlu1 %1861 }
 0xdfc   :  { %10113 = vmatprep.subr.msk.bf16.mxu1 %vm11186_vm2, %v10111_v35 }
 0xdfd   :  { %10116 = vmatpush3.bf16.xpose.msk.msra.mxu1 %vm11186_vm2, %v10111_v35 }
 0xdfe   :  { %10123 = vmatprep.subr.msk.bf16.mxu1 %vm11186_vm2, %v10121_v37 }
 0xdff   :  { %v10541_v26 = vpop.permute.xlu0 %10540  ;;  %v2222_v41 = vpop.permute.xlu1 %2221 }
 0xe00   :  { %v10543_v38 = vunpack.i.h.bf16 %v10541_v26  ;;  %v10542_v25 = vunpack.i.l.bf16 %v10541_v26 }
 0xe02   :  { %v10131_v39 = vpack.c.bf16 %v10543_v38, %v10542_v25 }
 0xe03   :  { %v2224_v42 = vpop.permute.xlu0 %2223 }
 0xe04   :  { %9489 = vmatmul.mubr.msk.f32.vlgmr.msra.gmra.mrb[14].mxu1 %vm221_vm1, %v11430_v19 }
 0xe05   :  { %10126 = vmatpush3.bf16.xpose.msk.msra.mxu1 %vm11186_vm2, %v10121_v37  ;;  %9502 = vmatprep.mubr.msk.f32.mxu1 %vm221_vm1, %v1860_v36 }
 0xe06   :  { %10133 = vmatprep.subr.msk.bf16.mxu1 %vm11186_vm2, %v10131_v39 }
 0xe0c   :  { %9503 = vmatmul.mubr.msk.f32.vlgmr.msra.gmra.mrb[16].mxu1 %vm221_vm1, %v1862_v40 }
 0xe0d   :  { %10136 = vmatpush3.bf16.xpose.msk.msra.mxu1 %vm11186_vm2, %v10131_v39  ;;  %9526 = vmatprep.mubr.msk.f32.mxu1 %vm221_vm1, %v2222_v41 }
 0xe14   :  { %9527 = vmatmul.mubr.msk.f32.vlgmr.msra.gmra.mrb[18].mxu1 %vm221_vm1, %v2224_v42 }
 0xed7   :  { %v9490_v43 = vpop.f32.mrb[14].mxu1 }
 0xed8   :  { %v1747_v44 = vadd.f32 %v9490_v43, %v11199_v33  ;;  %v1741_v45 = vpop.f32.mrb[15].mxu1 }
 0xed9   :  { %v1742_v46 = vadd.f32 %v1741_v45, %v11204_v34 }
 0xeda   :  { %v1753_v12 = vsel %vm305_vm3, %v1747_v44, -inf }
 0xedb   :  { %1754 = vmax.xlane.f32.xlu0 %v1753_v12  ;;  %v1750_v47 = vsel %vm305_vm3, %v1742_v46, -inf }
 0xedc   :  { %1751 = vmax.xlane.f32.xlu1 %v1750_v47 }
 0xedf   :  { %v9504_v48 = vpop.f32.mrb[16].mxu1 }
 0xee0   :  { %v1941_v50 = vpop.f32.mrb[17].mxu1  ;;  %v1947_v51 = vadd.f32 %v9504_v48, %v11247_v13 }
 0xee1   :  { %v1942_v11 = vadd.f32 %v1941_v50, %v11252_v14 }
 0xee2   :  { %v1953_v33 = vsel %vm305_vm3, %v1947_v51, -inf }
 0xee3   :  { %v1950_v53 = vsel %vm305_vm3, %v1942_v11, -inf }
 0xee4   :  { %1951 = vmax.xlane.f32.xlu0 %v1950_v53 }
 0xee7   :  { %v9528_v55 = vpop.f32.mrb[18].mxu1 }
 0xee8   :  { %v2303_v56 = vpop.f32.mrb[19].mxu1  ;;  %1954 = vmax.xlane.f32.xlu0 %v1953_v33  ;;  %v2309_v17 = vadd.f32 %v9528_v55, %v11267_v23 }
 0xee9   :  { %v2304_v15 = vadd.f32 %v2303_v56, %v11284_v49 }
 0xeea   :  { %v2315_v18 = vsel %vm305_vm3, %v2309_v17, -inf }
 0xeeb   :  { %v2312_v16 = vsel %vm305_vm3, %v2304_v15, -inf }
 0xf68   :  { %v1755_v34 = vpop.xlane.xlu0 %1754 }
 0xf69   :  { %v1757_v57 = vsub.f32 %v1747_v44, %v1755_v34  ;;  %v1752_v27 = vpop.xlane.xlu1 %1751 }
 0xf6a   :  { %v1756_v58 = vsub.f32 %v1742_v46, %v1752_v27  ;;  %v8731_v27 = vld [vmem:[%s12520_s7 + $0x28] sm:$0xff] }
 0xf6b   :  { %v1760_v59 = vmul.f32 1.442695, %v1757_v57 }
 0xf6c   :  { %v1758_v60 = vmul.f32 1.442695, %v1756_v58  ;;  %v8730_v58 = vld [vmem:[%s12520_s7 + $0x20] sm:$0xff] }
 0xf6d   :  { %10763 = vpow2.f32 %v1760_v59 }
 0xf6e   :  { %10765 = vpow2.f32 %v1758_v60 }
 0xf71   :  { %v1952_v61 = vpop.xlane.xlu0 %1951 }
 0xf72   :  { %v1956_v14 = vsub.f32 %v1942_v11, %v1952_v61 }
 0xf74   :  { %v1958_v62 = vmul.f32 1.442695, %v1956_v14 }
 0xf75   :  { %v1955_v13 = vpop.xlane.xlu0 %1954 }
 0xf76   :  { %10767 = vpow2.f32 %v1958_v62  ;;  %v1957_v63 = vsub.f32 %v1947_v51, %v1955_v13 }
 0xf77   :  { %v10764_v2 = vpop.eup %10763 }
 0xf78   :  { %v10766_v3 = vpop.eup %10765  ;;  %v1960_v4 = vmul.f32 1.442695, %v1957_v63  ;;  %v1765_v6 = vsel %vm305_vm3, %v10764_v2, 0.0 }
 0xf79   :  { %1766 = vadd.xlane.f32.xlu0 %v1765_v6  ;;  %v1762_v8 = vsel %vm305_vm3, %v10766_v3, 0.0 }
 0xf7a   :  { %10769 = vpow2.f32 %v1960_v4  ;;  %1763 = vadd.xlane.f32.xlu1 %v1762_v8 }
 0xf80   :  { %v10768_v9 = vpop.eup %10767 }
 0xf81   :  { %v1962_v1 = vsel %vm305_vm3, %v10768_v9, 0.0 }
 0xf82   :  { %1963 = vadd.xlane.f32.xlu1 %v1962_v1 }
 0xf84   :  { %v10770_v0 = vpop.eup %10769 }
 0xf85   :  { %v1965_v10 = vsel %vm305_vm3, %v10770_v0, 0.0 }
 0xf86   :  { %1966 = vadd.xlane.f32.xlu0 %v1965_v10 }
 0xf93   :  { %10545 = vrot.lane.b32.xlu1 %v11438_v21, %s12527_s6 }
 0xf97   :  { %10555 = vrot.lane.b32.xlu1 %v11438_v21, %s12528_s9 }
 0xf9b   :  { %2504 = vrot.lane.b32.xlu1 %v11432_v20, %s12529_s8 }
 0xf9c   :  { %10550 = vrot.lane.b32.xlu0 %v11438_v21, %s12530_s28 }
 0xf9f   :  { %2506 = vrot.lane.b32.xlu1 %v11430_v19, %s12529_s8 }
 0xfbb   :  { %2313 = vmax.xlane.f32.xlu0 %v2312_v16 }
 0xfc3   :  { %2316 = vmax.xlane.f32.xlu1 %v2315_v18 }
0x1006   :  { %v1767_v24 = vpop.xlane.xlu0 %1766 }
0x1007   :  { %v1764_v22 = vpop.xlane.xlu1 %1763 }
0x1008   :  { %10771 = vrcp.f32 %v1764_v22 }
0x1009   :  { %10773 = vrcp.f32 %v1767_v24 }
0x100f   :  { %v1964_v20 = vpop.xlane.xlu1 %1963 }
0x1010   :  { %10775 = vrcp.f32 %v1964_v20 }
0x1012   :  { %v10772_v28 = vpop.eup %10771 }
0x1013   :  { %v1967_v29 = vpop.xlane.xlu0 %1966  ;;  %v10546_v30 = vpop.permute.xlu1 %10545  ;;  %v1770_v19 = vmul.f32 %v10772_v28, %v10766_v3 }
0x1014   :  { %10777 = vrcp.f32 %v1967_v29  ;;  %v10548_v49 = vunpack.i.h.bf16 %v10546_v30  ;;  %v10547_v32 = vunpack.i.l.bf16 %v10546_v30  ;;  %v10774_v23 = vpop.eup %10773 }
0x1015   :  { %9495 = vmatprep.mubr.msk.f32.mxu0 %vm305_vm3, %v1770_v19  ;;  %v1771_v42 = vmul.f32 %v10774_v23, %v10764_v2 }
0x1016   :  { %v10117_v35 = vpack.c.bf16 %v10548_v49, %v10547_v32 }
0x1017   :  { %v10551_v36 = vpop.permute.xlu0 %10550  ;;  %v10556_v37 = vpop.permute.xlu1 %10555 }
0x1018   :  { %v10553_v26 = vunpack.i.h.bf16 %v10551_v36  ;;  %v10552_v38 = vunpack.i.l.bf16 %v10551_v36  ;;  %v10558_v25 = vunpack.i.h.bf16 %v10556_v37  ;;  %v10557_v39 = vunpack.i.l.bf16 %v10556_v37  ;;  %10118 = vmatprep.subr.bf16.mxu0 %v10117_v35 }
0x1019   :  { %10120 = vmatpush3.bf16.msra.mxu0 %v10117_v35 }
0x101a   :  { %v10776_v40 = vpop.eup %10775  ;;  %v10141_v41 = vpack.c.bf16 %v10558_v25, %v10557_v39  ;;  %v10127_v43 = vpack.c.bf16 %v10553_v26, %v10552_v38 }
0x101b   :  { %v2505_v44 = vpop.permute.xlu1 %2504  ;;  %v1970_v45 = vmul.f32 %v10776_v40, %v10768_v9  ;;  %v8733_v40 = vld [vmem:[%s12520_s7 + $0x38] sm:$0xff] }
0x101c   :  { %9496 = vmatmul.mubr.msk.f32.vlgmr.msra.gmra.mrb[12].mxu0 %vm305_vm3, %v1771_v42  ;;  %10128 = vmatprep.subr.bf16.mxu0 %v10127_v43 }
0x101d   :  { %10143 = vmatprep.subr.msk.bf16.mxu1 %vm11186_vm2, %v10141_v41  ;;  %9545 = vmatprep.mubr.msk.f32.mxu1 %vm221_vm1, %v2505_v44 }
0x101e   :  { %v10778_v46 = vpop.eup %10777  ;;  %10130 = vmatpush3.bf16.msra.mxu0 %v10127_v43  ;;  %9509 = vmatprep.mubr.msk.f32.mxu0 %vm305_vm3, %v1970_v45 }
0x101f   :  { %10146 = vmatpush3.bf16.xpose.msk.msra.mxu1 %vm11186_vm2, %v10141_v41  ;;  %v1971_v12 = vmul.f32 %v10778_v46, %v10770_v0  ;;  %v2507_v47 = vpop.permute.xlu1 %2506  ;;  %9512 = vmatprep.subr.mxu0 %v8731_v27 }
0x1021   :  { %9510 = vmatmul.mubr.msk.f32.vlgmr.msra.gmra.mrb[14].mxu0 %vm305_vm3, %v1971_v12 }
0x1022   :  { %9513 = vmatpush3.msra.mxu0 %v8731_v27  ;;  %v8768_v27 = vld [vmem:[%s12521_s3 + $0x28] sm:$0xff] }
0x1023   :  { %9517 = vmatprep.subr.mxu0 %v8730_v58 }
0x1026   :  { %9546 = vmatmul.mubr.msk.f32.vlgmr.msra.gmra.mrb[20].mxu1 %vm221_vm1, %v2507_v47 }
0x1048   :  { %v2314_v48 = vpop.xlane.xlu0 %2313 }
0x1049   :  { %v2318_v50 = vsub.f32 %v2304_v15, %v2314_v48  ;;  %v11550_v48 = vld [vmem:[%s12533_s5] sm:$0xff] }
0x104b   :  { %v2320_v53 = vmul.f32 1.442695, %v2318_v50 }
0x1050   :  { %v2317_v11 = vpop.xlane.xlu1 %2316 }
0x1051   :  { %v2319_v51 = vsub.f32 %v2309_v17, %v2317_v11 }
0x1053   :  { %v2322_v55 = vmul.f32 1.442695, %v2319_v51 }
0x1055   :  { %10779 = vpow2.f32 %v2322_v55  ;;  %v11565_v55 = vld [vmem:[%s12533_s5 + $0x8] sm:$0xff]  ;;  %s12537_s5 = sld [smem:[#allocation17_spill]] }
0x1056   :  { %10781 = vpow2.f32 %v2320_v53  ;;  %v3020_v53 = vmul.f32 %v11550_v48, %v11550_v48 }
0x105f   :  { %v10780_v33 = vpop.eup %10779 }
0x1060   :  { %v2327_v56 = vsel %vm305_vm3, %v10780_v33, 0.0  ;;  %v10782_v34 = vpop.eup %10781 }
0x1061   :  { %2328 = vadd.xlane.f32.xlu0 %v2327_v56  ;;  %v2324_v57 = vsel %vm305_vm3, %v10782_v34, 0.0  ;;  %v3021_v56 = vmul.f32 %v11565_v55, %v11565_v55 }
0x1065   :  { %2325 = vadd.xlane.f32.xlu0 %v2324_v57  ;;  %v8767_v57 = vld [vmem:[%s12521_s3 + $0x20] sm:$0xff] }
0x107b   :  { %10560 = vrot.lane.b32.xlu0 %v11438_v21, %s12531_s25 }
0x10ee   :  { %v2329_v59 = vpop.xlane.xlu0 %2328 }
0x10ef   :  { %v9497_v60 = vpop.f32.mrb[12].mxu0 }
0x10f0   :  { %v1850_v61 = vpop.f32.mrb[13].mxu0 }
0x10f2   :  { %v2326_v14 = vpop.xlane.xlu0 %2325 }
0x10f3   :  { %10783 = vrcp.f32 %v2326_v14  ;;  %v3042_v14 = vld [vmem:[%s12446_s13] sm:$0xff] }
0x10f4   :  { %10785 = vrcp.f32 %v2329_v59  ;;  %v9511_v62 = vpop.f32.mrb[14].mxu0  ;;  %v8769_v59 = vld [vmem:[%s12521_s3 + $0x30] sm:$0xff] }
0x10f5   :  { %v2050_v13 = vpop.f32.mrb[15].mxu0 }
0x10f6   :  { %v10561_v63 = vpop.permute.xlu0 %10560  ;;  %9514 = vmatprep.mubr.msk.f32.mxu0 %vm221_vm1, %v2050_v13 }
0x10f7   :  { %v10563_v2 = vunpack.i.h.bf16 %v10561_v63  ;;  %v10562_v3 = vunpack.i.l.bf16 %v10561_v63  ;;  %9515 = vmatmul.mubr.msk.f32.vlgmr.msra.gmra.mrb[16].mxu0 %vm221_vm1, %v9511_v62  ;;  %v3043_v62 = vld [vmem:[%s12446_s13 + $0x8] sm:$0xff]  ;;  %v8773_v63 = vld [vmem:[%s12443_s10 + $0x40] sm:$0xff] }
0x10f8   :  { %9519 = vmatprep.mubr.msk.f32.mxu0 %vm221_vm1, %v1850_v61  ;;  %9518 = vmatpush3.msra.mxu0 %v8730_v58  ;;  %v10151_v58 = vpack.c.bf16 %v8768_v27, %v8767_v57  ;;  %v10175_v13 = vpack.c.bf16 %v3043_v62, %v3042_v14 }
0x10f9   :  { %v9547_v4 = vpop.f32.mrb[20].mxu1  ;;  %v10137_v6 = vpack.c.bf16 %v10563_v2, %v10562_v3  ;;  %v8774_v2 = vld [vmem:[%s12443_s10 + $0x48] sm:$0xff]  ;;  %v8775_v3 = vld [vmem:[%s12443_s10 + $0x50] sm:$0xff] }
0x10fa   :  { %v2586_v8 = vpop.f32.mrb[21].mxu1  ;;  %v2592_v0 = vadd.f32 %v9547_v4, %v11302_v7  ;;  %10152 = vmatprep.subr.bf16.mxu1 %v10151_v58  ;;  %v10159_v4 = vpack.c.bf16 %v8774_v2, %v8773_v63 }
0x10fb   :  { %v2587_v9 = vadd.f32 %v2586_v8, %v11297_v5  ;;  %10138 = vmatprep.subr.bf16.mxu0 %v10137_v6  ;;  %v8732_v5 = vld [vmem:[%s12520_s7 + $0x30] sm:$0xff]  ;;  %10154 = vmatpush3.bf16.msra.mxu1 %v10151_v58 }
0x10fc   :  { %v2598_v17 = vsel %vm305_vm3, %v2592_v0, -inf }
0x10fd   :  { %v10784_v1 = vpop.eup %10783  ;;  %v2595_v10 = vsel %vm305_vm3, %v2587_v9, -inf }
0x10fe   :  { %v10786_v15 = vpop.eup %10785  ;;  %2596 = vmax.xlane.f32.xlu1 %v2595_v10  ;;  %v2332_v16 = vmul.f32 %v10784_v1, %v10782_v34  ;;  %v3025_v34 = vsel %vm104_vm0, %v3021_v56, 0.0  ;;  %v8778_v1 = vld [vmem:[%s12443_s10 + $0x68] sm:$0xff] }
0x10ff   :  { %9520 = vmatmul.mubr.msk.f32.vlgmr.msra.gmra.mrb[16].mxu0 %vm221_vm1, %v9497_v60  ;;  %v2333_v18 = vmul.f32 %v10786_v15, %v10780_v33  ;;  %v3022_v33 = vsel %vm104_vm0, %v3020_v53, 0.0  ;;  %v8770_v60 = vld [vmem:[%s12521_s3 + $0x38] sm:$0xff]  ;;  %s12535_s3 = sld [smem:[#allocation8_spill]] }
0x1100   :  { %10140 = vmatpush3.bf16.msra.mxu0 %v10137_v6  ;;  %9533 = vmatprep.mubr.msk.f32.mxu0 %vm305_vm3, %v2332_v16  ;;  %v10155_v61 = vpack.c.bf16 %v8770_v60, %v8769_v59  ;;  %v8776_v6 = vld [vmem:[%s12443_s10 + $0x58] sm:$0xff] }
0x1101   :  { %9536 = vmatprep.subr.mxu0 %v8732_v5  ;;  %v10163_v8 = vpack.c.bf16 %v8776_v6, %v8775_v3 }
0x1102   :  { %2599 = vmax.xlane.f32.xlu1 %v2598_v17  ;;  %10156 = vmatprep.subr.bf16.mxu1 %v10155_v61 }
0x1103   :  { %9534 = vmatmul.mubr.msk.f32.vlgmr.msra.gmra.mrb[18].mxu0 %vm305_vm3, %v2333_v18  ;;  %10158 = vmatpush3.bf16.msra.mxu1 %v10155_v61 }
0x1104   :  { %9537 = vmatpush3.msra.mxu0 %v8732_v5  ;;  %10176 = vmatprep.subr.bf16.mxu1 %v10175_v13 }
0x118b   :  { %v2597_v7 = vpop.xlane.xlu1 %2596 }
0x118c   :  { %v2601_v22 = vsub.f32 %v2587_v9, %v2597_v7  ;;  %v8777_v9 = vld [vmem:[%s12443_s10 + $0x60] sm:$0xff] }
0x118e   :  { %v2603_v28 = vmul.f32 1.442695, %v2601_v22 }
0x118f   :  { %v2600_v24 = vpop.xlane.xlu1 %2599 }
0x1190   :  { %v2602_v20 = vsub.f32 %v2592_v0, %v2600_v24  ;;  %v10167_v0 = vpack.c.bf16 %v8778_v1, %v8777_v9  ;;  %v90_v1 = vld [vmem:[%s12535_s3 + $0x8] sm:$0xff] }
0x1192   :  { %v2605_v29 = vmul.f32 1.442695, %v2602_v20 }
0x1194   :  { %10787 = vpow2.f32 %v2605_v29 }
0x1195   :  { %10789 = vpow2.f32 %v2603_v28 }
0x119e   :  { %v10788_v30 = vpop.eup %10787 }
0x119f   :  { %v2610_v19 = vsel %vm305_vm3, %v10788_v30, 0.0  ;;  %v10790_v49 = vpop.eup %10789 }
0x11a0   :  { %2611 = vadd.xlane.f32.xlu1 %v2610_v19  ;;  %v2607_v32 = vsel %vm305_vm3, %v10790_v49, 0.0 }
0x11a4   :  { %2608 = vadd.xlane.f32.xlu1 %v2607_v32 }
0x11b5   :  { %10565 = vrot.lane.b32.xlu1 %v11438_v21, %s12532_s4 }
0x11d6   :  { %v9535_v35 = vpop.f32.mrb[18].mxu0 }
0x11d7   :  { %v2412_v23 = vpop.f32.mrb[19].mxu0 }
0x11d8   :  { %9538 = vmatprep.mubr.msk.f32.mxu0 %vm221_vm1, %v2412_v23  ;;  %v3044_v23 = vld [vmem:[%s12446_s13 + $0x10] sm:$0xff] }
0x11d9   :  { %9539 = vmatmul.mubr.msk.f32.vlgmr.msra.gmra.mrb[16].mxu0 %vm221_vm1, %v9535_v35 }
0x122d   :  { %v2612_v36 = vpop.xlane.xlu1 %2611 }
0x122e   :  { %10791 = vrcp.f32 %v2612_v36  ;;  %v3045_v36 = vld [vmem:[%s12446_s13 + $0x18] sm:$0xff] }
0x1231   :  { %v2609_v37 = vpop.xlane.xlu1 %2608 }
0x1232   :  { %10793 = vrcp.f32 %v2609_v37 }
0x1235   :  { %v10566_v26 = vpop.permute.xlu1 %10565 }
0x1236   :  { %v10568_v38 = vunpack.i.h.bf16 %v10566_v26  ;;  %v10567_v25 = vunpack.i.l.bf16 %v10566_v26 }
0x1238   :  { %v10147_v39 = vpack.c.bf16 %v10568_v38, %v10567_v25  ;;  %v10792_v21 = vpop.eup %10791  ;;  %v10179_v25 = vpack.c.bf16 %v3045_v36, %v3044_v23 }
0x1239   :  { %v2616_v43 = vmul.f32 %v10792_v21, %v10788_v30 }
0x123a   :  { %10148 = vmatprep.subr.bf16.mxu0 %v10147_v39 }
0x123b   :  { %10150 = vmatpush3.bf16.msra.mxu0 %v10147_v39  ;;  %v8784_v39 = vld [vmem:[%s12445_s12] ss:$0 sm:$0xff] }
0x123c   :  { %v10794_v41 = vpop.eup %10793  ;;  %9555 = vmatprep.subr.mxu0 %v8733_v40 }
0x123d   :  { %v2615_v42 = vmul.f32 %v10794_v41, %v10790_v49  ;;  %v8766_v49 = vld [vmem:[%s12522_s29 + $0x1] ss:$0 sm:$0xff] }
0x123f   :  { %9552 = vmatprep.mubr.msk.f32.mxu0 %vm305_vm3, %v2615_v42 }
0x1240   :  { %9553 = vmatmul.mubr.msk.f32.vlgmr.msra.gmra.mrb[20].mxu0 %vm305_vm3, %v2616_v43 }
0x1241   :  { %9556 = vmatpush3.msra.mxu0 %v8733_v40 }
0x1242   :  { %10160 = vmatprep.subr.bf16.mxu0 %v10159_v4 }
0x1313   :  { %v9554_v44 = vpop.f32.mrb[20].mxu0 }
0x1314   :  { %v2695_v45 = vpop.f32.mrb[21].mxu0 }
0x1315   :  { %9557 = vmatprep.mubr.msk.f32.mxu0 %vm221_vm1, %v2695_v45  ;;  %v8780_v45 = vld [vmem:[%s12443_s10 + $0x78] sm:$0xff] }
0x1316   :  { %9558 = vmatmul.mubr.msk.f32.vlgmr.msra.gmra.mrb[16].mxu0 %vm221_vm1, %v9554_v44  ;;  %v8779_v44 = vld [vmem:[%s12443_s10 + $0x70] sm:$0xff]  ;;  %s12534_s10 = smov 88  }
0x1317   :  { %10162 = vmatpush3.bf16.msra.mxu0 %v10159_v4 }
0x1318   :  { %10164 = vmatprep.subr.bf16.mxu0 %v10163_v8 }
0x131b   :  { %10166 = vmatpush3.bf16.msra.mxu0 %v10163_v8 }
0x131c   :  { %10168 = vmatprep.subr.bf16.mxu0 %v10167_v0 }
0x131f   :  { %10170 = vmatpush3.bf16.msra.mxu0 %v10167_v0  ;;  %v89_v0 = vld [vmem:[%s12535_s3] sm:$0xff] }
0x13e9   :  { %v9559_v46 = vpop.f32.mrb[16].mxu0 }
0x13ea   :  { %v11545_v12 = vadd.f32 %v9559_v46, %v11400_v54  ;;  %v2776_v47 = vpop.f32.mrb[17].mxu0  ;;  %v10171_v46 = vpack.c.bf16 %v8780_v45, %v8779_v44 }
0x13eb   :  { %v11553_v50 = vadd.f32 %v2776_v47, %v11403_v52 }
0x13ec   :  { %v2791_v11 = vmul.f32 %v11545_v12, %v11545_v12  ;;  %10172 = vmatprep.subr.bf16.mxu0 %v10171_v46 }
0x13ed   :  { %v2790_v51 = vmul.f32 %v11553_v50, %v11553_v50  ;;  %10174 = vmatpush3.bf16.msra.mxu0 %v10171_v46 }
0x13ee   :  { %v2795_v54 = vsel %vm104_vm0, %v2791_v11, 0.0 }
0x13ef   :  { %2796 = vadd.xlane.f32.xlu1 %v2795_v54  ;;  %v2792_v52 = vsel %vm104_vm0, %v2790_v51, 0.0 }
0x13f0   :  { %2793 = vadd.xlane.f32.xlu0 %v2792_v52 }
0x13f4   :  { %3023 = vadd.xlane.f32.xlu0 %v3022_v33 }
0x13f8   :  { %3026 = vadd.xlane.f32.xlu0 %v3025_v34 }
0x147c   :  { %v2797_v10 = vpop.xlane.xlu1 %2796 }
0x147d   :  { %v2799_v15 = vmul.f32 0.03125, %v2797_v10  ;;  %v2794_v16 = vpop.xlane.xlu0 %2793 }
0x147e   :  { %v2798_v17 = vmul.f32 0.03125, %v2794_v16 }
0x147f   :  { %v2801_v18 = vadd.f32 1e-06, %v2799_v15 }
0x1480   :  { %v2800_v5 = vadd.f32 1e-06, %v2798_v17 }
0x1481   :  { %10795 = vrsqrt.f32 %v2801_v18  ;;  %v3024_v7 = vpop.xlane.xlu0 %3023 }
0x1482   :  { %10797 = vrsqrt.f32 %v2800_v5  ;;  %v3028_v22 = vmul.f32 0.03125, %v3024_v7  ;;  %v91_v7 = vld [vmem:[%s12535_s3 + $0x10] sm:$0xff] }
0x1484   :  { %v3030_v24 = vadd.f32 1e-06, %v3028_v22 }
0x1485   :  { %v3027_v20 = vpop.xlane.xlu0 %3026 }
0x1486   :  { %10799 = vrsqrt.f32 %v3030_v24  ;;  %v3029_v28 = vmul.f32 0.03125, %v3027_v20  ;;  %v92_v24 = vld [vmem:[%s12535_s3 + $0x18] sm:$0xff] }
0x1488   :  { %v3031_v29 = vadd.f32 1e-06, %v3029_v28 }
0x148a   :  { %10801 = vrsqrt.f32 %v3031_v29 }
0x148b   :  { %v10796_v30 = vpop.eup %10795 }
0x148c   :  { %v10798_v19 = vpop.eup %10797  ;;  %v2805_v32 = vmul.f32 %v10796_v30, %v11545_v12 }
0x148d   :  { %v2804_v35 = vmul.f32 %v10798_v19, %v11553_v50 }
0x148e   :  { %v2811_v38 = vmul.f32 %v8766_v49, %v2805_v32 }
0x148f   :  { %v2810_v37 = vmul.f32 %v8766_v49, %v2804_v35 }
0x1490   :  { %v10800_v26 = vpop.eup %10799 }
0x1491   :  { %9568 = vmatprep.mubr.msk.f32.mxu1 %vm104_vm0, %v2810_v37  ;;  %v3034_v40 = vmul.f32 %v10800_v26, %v11550_v48 }
0x1492   :  { %9569 = vmatmul.mubr.msk.f32.vlgmr.msra.gmra.mrb[22].mxu1 %vm104_vm0, %v2811_v38 }
0x1493   :  { %10178 = vmatpush3.bf16.msra.mxu1 %v10175_v13  ;;  %v3040_v21 = vmul.f32 %v8784_v39, %v3034_v40 }
0x1494   :  { %v10802_v41 = vpop.eup %10801  ;;  %10180 = vmatprep.subr.bf16.mxu1 %v10179_v25 }
0x1495   :  { %v3035_v42 = vmul.f32 %v10802_v41, %v11565_v55  ;;  %9598 = vmatprep.mubr.msk.f32.mxu1 %vm104_vm0, %v3040_v21 }
0x1497   :  { %v3041_v43 = vmul.f32 %v8784_v39, %v3035_v42  ;;  %10182 = vmatpush3.bf16.msra.mxu1 %v10179_v25 }
0x149a   :  { %9599 = vmatmul.mubr.msk.f32.vlgmr.msra.gmra.mrb[24].mxu1 %vm104_vm0, %v3041_v43 }
0x1565   :  { %v9570_v47 = vpop.f32.mrb[22].mxu1 }
0x1566   :  { %v2889_v11 = vpop.f32.mrb[23].mxu1  ;;  %v2899_v53 = vmax.f32 %v9570_v47, 0.0 }
0x1567   :  { %v2898_v51 = vmax.f32 %v2889_v11, 0.0 }
0x1569   :  { %9587 = vmatprep.mubr.msk.f32.mxu0 %vm1463_vm4, %v2898_v51 }
0x156a   :  { %9588 = vmatmul.mubr.msk.f32.vlgmr.msra.gmra.mrb[22].mxu0 %vm1463_vm4, %v2899_v53 }
0x156d   :  { %v11636_v54 = vpop.f32.mrb[24].mxu1 }
0x156e   :  { %v11638_v52 = vpop.f32.mrb[25].mxu1 }
0x156f   :  { %9605 = vmatprep.mubr.msk.f32.mxu1 %vm221_vm1, %v11638_v52  ;;  %v11644_v33 = vpack.i.bf16 %v11636_v54, %v11638_v52 }
0x1571   :  { %10575 = vrot.lane.b32.xlu1 %v11644_v33, %s12534_s10  ;;  %10570 = vrot.lane.b32.xlu0 %v11644_v33, %s12523_s1 }
0x1575   :  { %3331 = vrot.lane.b32.xlu1 %v11636_v54, %s12524_s2  ;;  %3329 = vrot.lane.b32.xlu0 %v11638_v52, %s12524_s2 }
0x1579   :  { %3691 = vrot.lane.b32.xlu1 %v11638_v52, %s12525_s30  ;;  %10580 = vrot.lane.b32.xlu0 %v11644_v33, %s12526_s0 }
0x157d   :  { %3693 = vrot.lane.b32.xlu0 %v11636_v54, %s12525_s30 }
0x15e3   :  { %v10576_v56 = vpop.permute.xlu1 %10575  ;;  %v10571_v34 = vpop.permute.xlu0 %10570 }
0x15e4   :  { %v10578_v57 = vunpack.i.h.bf16 %v10576_v56  ;;  %v10577_v27 = vunpack.i.l.bf16 %v10576_v56  ;;  %v10573_v58 = vunpack.i.h.bf16 %v10571_v34  ;;  %v10572_v59 = vunpack.i.l.bf16 %v10571_v34  ;;  %v93_v56 = vld [vmem:[%s12535_s3 + $0x20] sm:$0xff] }
0x15e6   :  { %v10183_v60 = vpack.c.bf16 %v10573_v58, %v10572_v59  ;;  %v10193_v14 = vpack.c.bf16 %v10578_v57, %v10577_v27  ;;  %v94_v27 = vld [vmem:[%s12535_s3 + $0x28] sm:$0xff] }
0x15e7   :  { %v3330_v61 = vpop.permute.xlu0 %3329  ;;  %v3332_v3 = vpop.permute.xlu1 %3331 }
0x15e8   :  { %10185 = vmatprep.subr.msk.bf16.mxu1 %vm11186_vm2, %v10183_v60 }
0x15e9   :  { %10188 = vmatpush3.bf16.xpose.msk.msra.mxu1 %vm11186_vm2, %v10183_v60 }
0x15ea   :  { %10195 = vmatprep.subr.msk.bf16.mxu1 %vm11186_vm2, %v10193_v14 }
0x15eb   :  { %v10581_v62 = vpop.permute.xlu0 %10580  ;;  %v3692_v4 = vpop.permute.xlu1 %3691 }
0x15ec   :  { %v10583_v13 = vunpack.i.h.bf16 %v10581_v62  ;;  %v10582_v63 = vunpack.i.l.bf16 %v10581_v62 }
0x15ee   :  { %v10203_v2 = vpack.c.bf16 %v10583_v13, %v10582_v63 }
0x15ef   :  { %v3694_v6 = vpop.permute.xlu0 %3693 }
0x15f0   :  { %9606 = vmatmul.mubr.msk.f32.vlgmr.msra.gmra.mrb[26].mxu1 %vm221_vm1, %v11636_v54 }
0x15f1   :  { %10198 = vmatpush3.bf16.xpose.msk.msra.mxu1 %vm11186_vm2, %v10193_v14  ;;  %9619 = vmatprep.mubr.msk.f32.mxu1 %vm221_vm1, %v3330_v61 }
0x15f2   :  { %10205 = vmatprep.subr.msk.bf16.mxu1 %vm11186_vm2, %v10203_v2 }
0x15f8   :  { %9620 = vmatmul.mubr.msk.f32.vlgmr.msra.gmra.mrb[28].mxu1 %vm221_vm1, %v3332_v3 }
0x15f9   :  { %10208 = vmatpush3.bf16.xpose.msk.msra.mxu1 %vm11186_vm2, %v10203_v2  ;;  %9643 = vmatprep.mubr.msk.f32.mxu1 %vm221_vm1, %v3692_v4 }
0x1600   :  { %9644 = vmatmul.mubr.msk.f32.vlgmr.msra.gmra.mrb[30].mxu1 %vm221_vm1, %v3694_v6 }
0x163d   :  { %v11678_v8 = vpop.f32.mrb[22].mxu0 }
0x163e   :  { %v11680_v9 = vpop.f32.mrb[23].mxu0 }
0x16c3   :  { %v9607_v10 = vpop.f32.mrb[26].mxu1 }
0x16c4   :  { %v3217_v15 = vadd.f32 %v9607_v10, %v90_v1  ;;  %v3211_v16 = vpop.f32.mrb[27].mxu1 }
0x16c5   :  { %v3212_v17 = vadd.f32 %v3211_v16, %v89_v0 }
0x16c6   :  { %v3223_v18 = vsel %vm305_vm3, %v3217_v15, -inf }
0x16c7   :  { %3224 = vmax.xlane.f32.xlu0 %v3223_v18  ;;  %v3220_v5 = vsel %vm305_vm3, %v3212_v17, -inf }
0x16c8   :  { %3221 = vmax.xlane.f32.xlu1 %v3220_v5 }
0x16cb   :  { %v9621_v22 = vpop.f32.mrb[28].mxu1 }
0x16cc   :  { %v3411_v20 = vpop.f32.mrb[29].mxu1  ;;  %v3417_v29 = vadd.f32 %v9621_v22, %v92_v24 }
0x16cd   :  { %v3412_v28 = vadd.f32 %v3411_v20, %v91_v7 }
0x16ce   :  { %v3423_v49 = vsel %vm305_vm3, %v3417_v29, -inf }
0x16cf   :  { %v3420_v30 = vsel %vm305_vm3, %v3412_v28, -inf }
0x16d0   :  { %3421 = vmax.xlane.f32.xlu0 %v3420_v30 }
0x16d3   :  { %v9645_v19 = vpop.f32.mrb[30].mxu1 }
0x16d4   :  { %v3773_v32 = vpop.f32.mrb[31].mxu1  ;;  %3424 = vmax.xlane.f32.xlu0 %v3423_v49  ;;  %v3779_v58 = vadd.f32 %v9645_v19, %v94_v27 }
0x16d5   :  { %v3774_v34 = vadd.f32 %v3773_v32, %v93_v56 }
0x16d7   :  { %v3782_v57 = vsel %vm305_vm3, %v3774_v34, -inf }
0x1754   :  { %v3225_v35 = vpop.xlane.xlu0 %3224 }
0x1755   :  { %v3227_v23 = vsub.f32 %v3217_v15, %v3225_v35  ;;  %v3222_v36 = vpop.xlane.xlu1 %3221 }
0x1756   :  { %v3226_v37 = vsub.f32 %v3212_v17, %v3222_v36 }
0x1757   :  { %v3230_v26 = vmul.f32 1.442695, %v3227_v23 }
0x1758   :  { %v3228_v38 = vmul.f32 1.442695, %v3226_v37 }
0x1759   :  { %10803 = vpow2.f32 %v3230_v26 }
0x175a   :  { %10805 = vpow2.f32 %v3228_v38 }
0x175d   :  { %v3422_v25 = vpop.xlane.xlu0 %3421 }
0x175e   :  { %v3426_v39 = vsub.f32 %v3412_v28, %v3422_v25  ;;  %v3128_v25 = vld [vmem:[%s12447_s14 + $0x8] sm:$0xff] }
0x1760   :  { %v3428_v40 = vmul.f32 1.442695, %v3426_v39  ;;  %v3127_v39 = vld [vmem:[%s12447_s14] sm:$0xff] }
0x1761   :  { %v3425_v21 = vpop.xlane.xlu0 %3424 }
0x1762   :  { %10807 = vpow2.f32 %v3428_v40  ;;  %v3427_v41 = vsub.f32 %v3417_v29, %v3425_v21  ;;  %v11742_v40 = vadd.f32 %v11680_v9, %v11553_v50  ;;  %v95_v9 = vld [vmem:[%s12535_s3 + $0x30] sm:$0xff] }
0x1763   :  { %v10804_v42 = vpop.eup %10803 }
0x1764   :  { %v10806_v43 = vpop.eup %10805  ;;  %v3430_v44 = vmul.f32 1.442695, %v3427_v41  ;;  %v3235_v45 = vsel %vm305_vm3, %v10804_v42, 0.0  ;;  %v2993_v21 = vmul.f32 %v11742_v40, %v11742_v40 }
0x1765   :  { %3236 = vadd.xlane.f32.xlu0 %v3235_v45  ;;  %v3232_v46 = vsel %vm305_vm3, %v10806_v43, 0.0 }
0x1766   :  { %10809 = vpow2.f32 %v3430_v44  ;;  %3233 = vadd.xlane.f32.xlu1 %v3232_v46  ;;  %v2995_v41 = vsel %vm104_vm0, %v2993_v21, 0.0 }
0x176c   :  { %v10808_v47 = vpop.eup %10807 }
0x176d   :  { %v3432_v11 = vsel %vm305_vm3, %v10808_v47, 0.0 }
0x176e   :  { %3433 = vadd.xlane.f32.xlu1 %v3432_v11 }
0x1770   :  { %v10810_v51 = vpop.eup %10809 }
0x1771   :  { %v3435_v53 = vsel %vm305_vm3, %v10810_v51, 0.0 }
0x1772   :  { %3436 = vadd.xlane.f32.xlu0 %v3435_v53 }
0x177f   :  { %10585 = vrot.lane.b32.xlu1 %v11644_v33, %s12527_s6 }
0x1783   :  { %10595 = vrot.lane.b32.xlu1 %v11644_v33, %s12528_s9 }
0x1787   :  { %3974 = vrot.lane.b32.xlu1 %v11638_v52, %s12529_s8  ;;  %v3785_v52 = vsel %vm305_vm3, %v3779_v58, -inf }
0x1788   :  { %10590 = vrot.lane.b32.xlu0 %v11644_v33, %s12530_s28 }
0x178b   :  { %3976 = vrot.lane.b32.xlu1 %v11636_v54, %s12529_s8 }
0x17a7   :  { %3783 = vmax.xlane.f32.xlu0 %v3782_v57 }
0x17af   :  { %3786 = vmax.xlane.f32.xlu1 %v3785_v52 }
0x17f2   :  { %v3237_v60 = vpop.xlane.xlu0 %3236 }
0x17f3   :  { %v3234_v59 = vpop.xlane.xlu1 %3233 }
0x17f4   :  { %10811 = vrcp.f32 %v3234_v59 }
0x17f5   :  { %10813 = vrcp.f32 %v3237_v60 }
0x17fb   :  { %v3434_v54 = vpop.xlane.xlu1 %3433 }
0x17fc   :  { %10815 = vrcp.f32 %v3434_v54 }
0x17fe   :  { %v10812_v61 = vpop.eup %10811 }
0x17ff   :  { %v3437_v14 = vpop.xlane.xlu0 %3436  ;;  %v10586_v62 = vpop.permute.xlu1 %10585  ;;  %v3240_v13 = vmul.f32 %v10812_v61, %v10806_v43 }
0x1800   :  { %10817 = vrcp.f32 %v3437_v14  ;;  %v10588_v63 = vunpack.i.h.bf16 %v10586_v62  ;;  %v10587_v2 = vunpack.i.l.bf16 %v10586_v62  ;;  %v10814_v4 = vpop.eup %10813  ;;  %v3129_v62 = vld [vmem:[%s12447_s14 + $0x10] sm:$0xff] }
0x1801   :  { %9612 = vmatprep.mubr.msk.f32.mxu0 %vm305_vm3, %v3240_v13  ;;  %v3241_v5 = vmul.f32 %v10814_v4, %v10804_v42 }
0x1802   :  { %v10189_v3 = vpack.c.bf16 %v10588_v63, %v10587_v2 }
0x1803   :  { %v10591_v6 = vpop.permute.xlu0 %10590  ;;  %v10596_v1 = vpop.permute.xlu1 %10595 }
0x1804   :  { %v10593_v0 = vunpack.i.h.bf16 %v10591_v6  ;;  %v10592_v10 = vunpack.i.l.bf16 %v10591_v6  ;;  %v10598_v15 = vunpack.i.h.bf16 %v10596_v1  ;;  %v10597_v16 = vunpack.i.l.bf16 %v10596_v1  ;;  %10190 = vmatprep.subr.bf16.mxu0 %v10189_v3 }
0x1805   :  { %10192 = vmatpush3.bf16.msra.mxu0 %v10189_v3 }
0x1806   :  { %v10816_v17 = vpop.eup %10815  ;;  %v10213_v18 = vpack.c.bf16 %v10598_v15, %v10597_v16  ;;  %v10199_v7 = vpack.c.bf16 %v10593_v0, %v10592_v10  ;;  %v2991_v16 = vadd.f32 %v11678_v8, %v11545_v12  ;;  %v3130_v12 = vld [vmem:[%s12447_s14 + $0x18] sm:$0xff] }
0x1807   :  { %v3975_v22 = vpop.permute.xlu1 %3974  ;;  %v3440_v24 = vmul.f32 %v10816_v17, %v10808_v47 }
0x1808   :  { %9613 = vmatmul.mubr.msk.f32.vlgmr.msra.gmra.mrb[24].mxu0 %vm305_vm3, %v3241_v5  ;;  %10200 = vmatprep.subr.bf16.mxu0 %v10199_v7  ;;  %v2994_v17 = vmul.f32 %v2991_v16, %v2991_v16 }
0x1809   :  { %10215 = vmatprep.subr.msk.bf16.mxu1 %vm11186_vm2, %v10213_v18  ;;  %9662 = vmatprep.mubr.msk.f32.mxu1 %vm221_vm1, %v3975_v22 }
0x180a   :  { %v10818_v20 = vpop.eup %10817  ;;  %10202 = vmatpush3.bf16.msra.mxu0 %v10199_v7  ;;  %9626 = vmatprep.mubr.msk.f32.mxu0 %vm305_vm3, %v3440_v24  ;;  %v2998_v7 = vsel %vm104_vm0, %v2994_v17, 0.0 }
0x180b   :  { %10218 = vmatpush3.bf16.xpose.msk.msra.mxu1 %vm11186_vm2, %v10213_v18  ;;  %v3441_v28 = vmul.f32 %v10818_v20, %v10810_v51  ;;  %v3977_v29 = vpop.permute.xlu1 %3976  ;;  %9629 = vmatprep.subr.mxu0 %v3128_v25 }
0x180d   :  { %9627 = vmatmul.mubr.msk.f32.vlgmr.msra.gmra.mrb[26].mxu0 %vm305_vm3, %v3441_v28 }
0x180e   :  { %9630 = vmatpush3.msra.mxu0 %v3128_v25 }
0x180f   :  { %9634 = vmatprep.subr.mxu0 %v3127_v39 }
0x1812   :  { %9663 = vmatmul.mubr.msk.f32.vlgmr.msra.gmra.mrb[32].mxu1 %vm221_vm1, %v3977_v29 }
0x1834   :  { %v3784_v30 = vpop.xlane.xlu0 %3783 }
0x1835   :  { %v3788_v19 = vsub.f32 %v3774_v34, %v3784_v30  ;;  %v96_v34 = vld [vmem:[%s12535_s3 + $0x38] sm:$0xff] }
0x1837   :  { %v3790_v35 = vmul.f32 1.442695, %v3788_v19 }
0x183c   :  { %v3787_v49 = vpop.xlane.xlu1 %3786 }
0x183d   :  { %v3789_v32 = vsub.f32 %v3779_v58, %v3787_v49 }
0x183f   :  { %v3792_v23 = vmul.f32 1.442695, %v3789_v32  ;;  %v4367_v32 = vld [vmem:[%s12450_s17] sm:$0xff] }
0x1841   :  { %10819 = vpow2.f32 %v3792_v23 }
0x1842   :  { %10821 = vpow2.f32 %v3790_v35  ;;  %v4368_v35 = vld [vmem:[%s12450_s17 + $0x8] sm:$0xff] }
0x1843   :  { %v10231_v23 = vpack.c.bf16 %v4368_v35, %v4367_v32 }
0x184b   :  { %v10820_v36 = vpop.eup %10819 }
0x184c   :  { %v3797_v37 = vsel %vm305_vm3, %v10820_v36, 0.0  ;;  %v10822_v26 = vpop.eup %10821 }
0x184d   :  { %3798 = vadd.xlane.f32.xlu0 %v3797_v37  ;;  %v3794_v38 = vsel %vm305_vm3, %v10822_v26, 0.0 }
0x1851   :  { %3795 = vadd.xlane.f32.xlu0 %v3794_v38 }
0x1867   :  { %10600 = vrot.lane.b32.xlu0 %v11644_v33, %s12531_s25 }
0x1886   :  { %2996 = vadd.xlane.f32.xlu0 %v2995_v41 }
0x18da   :  { %v3799_v42 = vpop.xlane.xlu0 %3798 }
0x18db   :  { %v9614_v43 = vpop.f32.mrb[24].mxu0 }
0x18dc   :  { %v3320_v44 = vpop.f32.mrb[25].mxu0 }
0x18de   :  { %v3796_v45 = vpop.xlane.xlu0 %3795 }
0x18df   :  { %10823 = vrcp.f32 %v3796_v45 }
0x18e0   :  { %10825 = vrcp.f32 %v3799_v42  ;;  %v9628_v46 = vpop.f32.mrb[26].mxu0  ;;  %v4369_v42 = vld [vmem:[%s12450_s17 + $0x10] sm:$0xff] }
0x18e1   :  { %v3520_v47 = vpop.f32.mrb[27].mxu0 }
0x18e2   :  { %v10601_v11 = vpop.permute.xlu0 %10600  ;;  %9631 = vmatprep.mubr.msk.f32.mxu0 %vm221_vm1, %v3520_v47 }
0x18e3   :  { %v10603_v51 = vunpack.i.h.bf16 %v10601_v11  ;;  %v10602_v50 = vunpack.i.l.bf16 %v10601_v11  ;;  %9632 = vmatmul.mubr.msk.f32.vlgmr.msra.gmra.mrb[28].mxu0 %vm221_vm1, %v9628_v46 }
0x18e4   :  { %9636 = vmatprep.mubr.msk.f32.mxu0 %vm221_vm1, %v3320_v44  ;;  %9635 = vmatpush3.msra.mxu0 %v3127_v39  ;;  %v8783_v44 = vld [vmem:[%s12444_s11] ss:$0 sm:$0xff]  ;;  %s12542_s11 = sld [smem:[#allocation20_spill]] }
0x18e5   :  { %v9664_v53 = vpop.f32.mrb[32].mxu1  ;;  %v10209_v56 = vpack.c.bf16 %v10603_v51, %v10602_v50 }
0x18e6   :  { %v4056_v57 = vpop.f32.mrb[33].mxu1  ;;  %v4062_v52 = vadd.f32 %v9664_v53, %v96_v34  ;;  %v4283_v53 = vld [vmem:[%s12449_s16 + $0x8] sm:$0xff]  ;;  %v4284_v34 = vld [vmem:[%s12449_s16 + $0x10] sm:$0xff] }
0x18e7   :  { %v4057_v27 = vadd.f32 %v4056_v57, %v95_v9  ;;  %10210 = vmatprep.subr.bf16.mxu0 %v10209_v56  ;;  %v4282_v9 = vld [vmem:[%s12449_s16] sm:$0xff]  ;;  %v4285_v57 = vld [vmem:[%s12449_s16 + $0x18] sm:$0xff] }
0x18e8   :  { %v4068_v61 = vsel %vm305_vm3, %v4062_v52, -inf }
0x18e9   :  { %v10824_v58 = vpop.eup %10823  ;;  %v4065_v59 = vsel %vm305_vm3, %v4057_v27, -inf }
0x18ea   :  { %v10826_v60 = vpop.eup %10825  ;;  %4066 = vmax.xlane.f32.xlu1 %v4065_v59  ;;  %v3802_v54 = vmul.f32 %v10824_v58, %v10822_v26 }
0x18eb   :  { %9637 = vmatmul.mubr.msk.f32.vlgmr.msra.gmra.mrb[28].mxu0 %vm221_vm1, %v9614_v43  ;;  %v3803_v14 = vmul.f32 %v10826_v60, %v10820_v36  ;;  %v4370_v43 = vld [vmem:[%s12450_s17 + $0x18] sm:$0xff] }
0x18ec   :  { %10212 = vmatpush3.bf16.msra.mxu0 %v10209_v56  ;;  %9650 = vmatprep.mubr.msk.f32.mxu0 %vm305_vm3, %v3802_v54  ;;  %v10235_v47 = vpack.c.bf16 %v4370_v43, %v4369_v42  ;;  %v10223_v56 = vpack.c.bf16 %v4283_v53, %v4282_v9 }
0x18ed   :  { %9653 = vmatprep.subr.mxu0 %v3129_v62 }
0x18ee   :  { %4069 = vmax.xlane.f32.xlu1 %v4068_v61  ;;  %10224 = vmatprep.subr.bf16.mxu1 %v10223_v56 }
0x18ef   :  { %9651 = vmatmul.mubr.msk.f32.vlgmr.msra.gmra.mrb[30].mxu0 %vm305_vm3, %v3803_v14  ;;  %10226 = vmatpush3.bf16.msra.mxu1 %v10223_v56 }
0x18f0   :  { %9654 = vmatpush3.msra.mxu0 %v3129_v62 }
0x1913   :  { %v2997_v36 = vpop.xlane.xlu0 %2996 }
0x1914   :  { %v3001_v37 = vmul.f32 0.03125, %v2997_v36  ;;  %v11876_v36 = vld [vmem:[%s12536_s24 + $0x8] sm:$0xff] }
0x1916   :  { %v3003_v26 = vadd.f32 1e-06, %v3001_v37  ;;  %v11881_v37 = vld [vmem:[%s12536_s24] sm:$0xff] }
0x1977   :  { %v4067_v13 = vpop.xlane.xlu1 %4066 }
0x1978   :  { %v4071_v63 = vsub.f32 %v4057_v27, %v4067_v13  ;;  %v10227_v27 = vpack.c.bf16 %v4285_v57, %v4284_v34 }
0x197a   :  { %v4073_v4 = vmul.f32 1.442695, %v4071_v63  ;;  %10228 = vmatprep.subr.bf16.mxu1 %v10227_v27 }
0x197b   :  { %v4070_v2 = vpop.xlane.xlu1 %4069  ;;  %10230 = vmatpush3.bf16.msra.mxu1 %v10227_v27 }
0x197c   :  { %v4072_v3 = vsub.f32 %v4062_v52, %v4070_v2 }
0x197e   :  { %v4075_v6 = vmul.f32 1.442695, %v4072_v3 }
0x1980   :  { %10827 = vpow2.f32 %v4075_v6 }
0x1981   :  { %10829 = vpow2.f32 %v4073_v4 }
0x198a   :  { %v10828_v1 = vpop.eup %10827 }
0x198b   :  { %v4080_v0 = vsel %vm305_vm3, %v10828_v1, 0.0  ;;  %v10830_v10 = vpop.eup %10829 }
0x198c   :  { %4081 = vadd.xlane.f32.xlu1 %v4080_v0  ;;  %v4077_v15 = vsel %vm305_vm3, %v10830_v10, 0.0 }
0x1990   :  { %4078 = vadd.xlane.f32.xlu1 %v4077_v15  ;;  %v8819_v15 = vld [vmem:[%s12448_s15] ss:$0 sm:$0xff] }
0x19a1   :  { %10605 = vrot.lane.b32.xlu1 %v11644_v33, %s12532_s4 }
0x19c2   :  { %v9652_v18 = vpop.f32.mrb[30].mxu0 }
0x19c3   :  { %v3882_v5 = vpop.f32.mrb[31].mxu0 }
0x19c4   :  { %9655 = vmatprep.mubr.msk.f32.mxu0 %vm221_vm1, %v3882_v5 }
0x19c5   :  { %2999 = vadd.xlane.f32.xlu1 %v2998_v7  ;;  %9656 = vmatmul.mubr.msk.f32.vlgmr.msra.gmra.mrb[28].mxu0 %vm221_vm1, %v9652_v18 }
0x1a19   :  { %v4082_v22 = vpop.xlane.xlu1 %4081 }
0x1a1a   :  { %10831 = vrcp.f32 %v4082_v22 }
0x1a1d   :  { %v4079_v24 = vpop.xlane.xlu1 %4078 }
0x1a1e   :  { %10833 = vrcp.f32 %v4079_v24 }
0x1a1f   :  { %10835 = vrsqrt.f32 %v3003_v26 }
0x1a21   :  { %v10606_v20 = vpop.permute.xlu1 %10605 }
0x1a22   :  { %v10608_v28 = vunpack.i.h.bf16 %v10606_v20  ;;  %v10607_v33 = vunpack.i.l.bf16 %v10606_v20 }
0x1a24   :  { %v10219_v29 = vpack.c.bf16 %v10608_v28, %v10607_v33  ;;  %v10832_v8 = vpop.eup %10831 }
0x1a25   :  { %v4086_v49 = vmul.f32 %v10832_v8, %v10828_v1 }
0x1a26   :  { %10220 = vmatprep.subr.bf16.mxu0 %v10219_v29 }
0x1a27   :  { %10222 = vmatpush3.bf16.msra.mxu0 %v10219_v29 }
0x1a28   :  { %v10834_v30 = vpop.eup %10833  ;;  %9672 = vmatprep.subr.mxu0 %v3130_v12 }
0x1a29   :  { %v4085_v19 = vmul.f32 %v10834_v30, %v10830_v10  ;;  %v10836_v21 = vpop.eup %10835 }
0x1a2a   :  { %v3007_v41 = vmul.f32 %v10836_v21, %v11742_v40 }
0x1a2b   :  { %9669 = vmatprep.mubr.msk.f32.mxu0 %vm305_vm3, %v4085_v19 }
0x1a2c   :  { %9670 = vmatmul.mubr.msk.f32.vlgmr.msra.gmra.mrb[32].mxu0 %vm305_vm3, %v4086_v49  ;;  %v11795_v51 = vmul.f32 %v8783_v44, %v3007_v41 }
0x1a2d   :  { %9673 = vmatpush3.msra.mxu0 %v3130_v12 }
0x1a2e   :  { %10232 = vmatprep.subr.bf16.mxu0 %v10231_v23 }
0x1a52   :  { %v3000_v38 = vpop.xlane.xlu1 %2999 }
0x1a53   :  { %v3002_v25 = vmul.f32 0.03125, %v3000_v38 }
0x1a55   :  { %v3004_v39 = vadd.f32 1e-06, %v3002_v25 }
0x1a57   :  { %10837 = vrsqrt.f32 %v3004_v39 }
0x1a61   :  { %v10838_v11 = vpop.eup %10837 }
0x1a62   :  { %v3008_v40 = vmul.f32 %v10838_v11, %v2991_v16 }
0x1a64   :  { %v11800_v50 = vmul.f32 %v8783_v44, %v3008_v40 }
0x1aff   :  { %v9671_v45 = vpop.f32.mrb[32].mxu0 }
0x1b00   :  { %v4165_v46 = vpop.f32.mrb[33].mxu0 }
0x1b01   :  { %9674 = vmatprep.mubr.msk.f32.mxu0 %vm221_vm1, %v4165_v46 }
0x1b02   :  { %9675 = vmatmul.mubr.msk.f32.vlgmr.msra.gmra.mrb[28].mxu0 %vm221_vm1, %v9671_v45 }
0x1b03   :  { %10234 = vmatpush3.bf16.msra.mxu0 %v10231_v23  ;;  %9696 = vmatprep.mubr.msk.f32.mxu0 %vm104_vm0, %v11795_v51 }
0x1b04   :  { %10236 = vmatprep.subr.bf16.mxu0 %v10235_v47 }
0x1b07   :  { %10238 = vmatpush3.bf16.msra.mxu0 %v10235_v47 }
0x1b0a   :  { %9697 = vmatmul.mubr.msk.f32.vlgmr.msra.gmra.mrb[34].mxu0 %vm104_vm0, %v11800_v50 }
0x1bd5   :  { %v9676_v58 = vpop.f32.mrb[28].mxu0 }
0x1bd6   :  { %v11817_v52 = vadd.f32 %v9676_v58, %v11565_v55  ;;  %v4246_v59 = vpop.f32.mrb[29].mxu0 }
0x1bd7   :  { %v11820_v60 = vadd.f32 %v4246_v59, %v11550_v48 }
0x1bd8   :  { %v4261_v61 = vmul.f32 %v11817_v52, %v11817_v52 }
0x1bd9   :  { %v4260_v54 = vmul.f32 %v11820_v60, %v11820_v60 }
0x1bda   :  { %v4265_v63 = vsel %vm104_vm0, %v4261_v61, 0.0 }
0x1bdb   :  { %v4262_v14 = vsel %vm104_vm0, %v4260_v54, 0.0 }
0x1bdc   :  { %4263 = vadd.xlane.f32.xlu0 %v4262_v14 }
0x1bdd   :  { %v9698_v62 = vpop.f32.mrb[34].mxu0 }
0x1bde   :  { %v4443_v13 = vpop.f32.mrb[35].mxu0 }
0x1bdf   :  { %v10239_v2 = vpack.c.bf16 %v9698_v62, %v4443_v13  ;;  %v11828_v55 = vpack.i.bf16 %v9698_v62, %v4443_v13 }
0x1be0   :  { %4266 = vadd.xlane.f32.xlu0 %v4265_v63 }
0x1be1   :  { %10241 = vmatprep.subr.msk.bf16.mxu1 %vm11186_vm2, %v10239_v2 }
0x1bf6   :  { %10610 = vrot.lane.b32.xlu0 %v11828_v55, %s12524_s2 }
0x1c69   :  { %v4264_v48 = vpop.xlane.xlu0 %4263 }
0x1c6a   :  { %v4268_v3 = vmul.f32 0.03125, %v4264_v48 }
0x1c6c   :  { %v4270_v4 = vadd.f32 1e-06, %v4268_v3 }
0x1c6d   :  { %v4267_v6 = vpop.xlane.xlu0 %4266 }
0x1c6e   :  { %10839 = vrsqrt.f32 %v4270_v4  ;;  %v4269_v1 = vmul.f32 0.03125, %v4267_v6 }
0x1c70   :  { %v4271_v0 = vadd.f32 1e-06, %v4269_v1 }
0x1c71   :  { %v10611_v17 = vpop.permute.xlu0 %10610 }
0x1c72   :  { %10841 = vrsqrt.f32 %v4271_v0  ;;  %v10613_v7 = vunpack.i.h.bf16 %v10611_v17  ;;  %v10612_v22 = vunpack.i.l.bf16 %v10611_v17 }
0x1c74   :  { %v10249_v28 = vpack.c.bf16 %v10613_v7, %v10612_v22 }
0x1c78   :  { %v10840_v10 = vpop.eup %10839 }
0x1c79   :  { %v4274_v16 = vmul.f32 %v10840_v10, %v11820_v60 }
0x1c7b   :  { %v4280_v18 = vmul.f32 %v8819_v15, %v4274_v16 }
0x1c7c   :  { %v10842_v5 = vpop.eup %10841 }
0x1c7d   :  { %v4275_v24 = vmul.f32 %v10842_v5, %v11817_v52  ;;  %9685 = vmatprep.mubr.msk.f32.mxu1 %vm104_vm0, %v4280_v18 }
0x1c7f   :  { %v4281_v20 = vmul.f32 %v8819_v15, %v4275_v24 }
0x1c81   :  { %9686 = vmatmul.mubr.msk.f32.vlgmr.msra.gmra.mrb[34].mxu1 %vm104_vm0, %v4281_v20 }
0x1c82   :  { %10244 = vmatpush3.bf16.xpose.msk.msra.mxu1 %vm11186_vm2, %v10239_v2 }
0x1c83   :  { %10251 = vmatprep.subr.msk.bf16.mxu1 %vm11186_vm2, %v10249_v28 }
0x1d54   :  { %v11845_v33 = vpop.f32.mrb[34].mxu1 }
0x1d55   :  { %4654 = vrot.lane.b32.xlu0 %v11845_v33, %s12524_s2  ;;  %v11849_v29 = vpop.f32.mrb[35].mxu1 }
0x1d56   :  { %4652 = vrot.lane.b32.xlu1 %v11849_v29, %s12524_s2  ;;  %9703 = vmatprep.mubr.msk.f32.mxu1 %vm221_vm1, %v11849_v29 }
0x1d57   :  { %9704 = vmatmul.mubr.msk.f32.vlgmr.msra.gmra.mrb[36].mxu1 %vm221_vm1, %v11845_v33 }
0x1d58   :  { %10254 = vmatpush3.bf16.xpose.msk.msra.mxu1 %vm11186_vm2, %v10249_v28 }
0x1d59   :  { %5014 = vrot.lane.b32.xlu0 %v11849_v29, %s12525_s30 }
0x1d5a   :  { %10615 = vrot.lane.b32.xlu1 %v11828_v55, %s12525_s30 }
0x1d5e   :  { %5016 = vrot.lane.b32.xlu1 %v11845_v33, %s12525_s30 }
0x1dc7   :  { %v4655_v12 = vpop.permute.xlu0 %4654 }
0x1dc8   :  { %v4653_v8 = vpop.permute.xlu1 %4652 }
0x1dc9   :  { %9717 = vmatprep.mubr.msk.f32.mxu1 %vm221_vm1, %v4653_v8 }
0x1dca   :  { %9718 = vmatmul.mubr.msk.f32.vlgmr.msra.gmra.mrb[38].mxu1 %vm221_vm1, %v4655_v12 }
0x1dcb   :  { %v5015_v30 = vpop.permute.xlu0 %5014 }
0x1dcc   :  { %v10616_v19 = vpop.permute.xlu1 %10615  ;;  %9741 = vmatprep.mubr.msk.f32.mxu1 %vm221_vm1, %v5015_v30 }
0x1dcd   :  { %v10618_v49 = vunpack.i.h.bf16 %v10616_v19  ;;  %v10617_v32 = vunpack.i.l.bf16 %v10616_v19 }
0x1dcf   :  { %v10259_v35 = vpack.c.bf16 %v10618_v49, %v10617_v32 }
0x1dd0   :  { %v5017_v23 = vpop.permute.xlu1 %5016 }
0x1dd1   :  { %10261 = vmatprep.subr.msk.bf16.mxu1 %vm11186_vm2, %v10259_v35 }
0x1dd2   :  { %10264 = vmatpush3.bf16.xpose.msk.msra.mxu1 %vm11186_vm2, %v10259_v35 }
0x1dd9   :  { %9742 = vmatmul.mubr.msk.f32.vlgmr.msra.gmra.mrb[40].mxu1 %vm221_vm1, %v5017_v23 }
0x1e2a   :  { %v9705_v26 = vpop.f32.mrb[36].mxu1 }
0x1e2b   :  { %v4540_v38 = vadd.f32 %v9705_v26, %v11876_v36  ;;  %v4534_v25 = vpop.f32.mrb[37].mxu1 }
0x1e2c   :  { %v4535_v39 = vadd.f32 %v4534_v25, %v11881_v37 }
0x1e2d   :  { %v4546_v21 = vsel %vm305_vm3, %v4540_v38, -inf }
0x1e2e   :  { %4547 = vmax.xlane.f32.xlu1 %v4546_v21  ;;  %v4543_v41 = vsel %vm305_vm3, %v4535_v39, -inf }
0x1e2f   :  { %4544 = vmax.xlane.f32.xlu0 %v4543_v41 }
0x1e9d   :  { %v9719_v42 = vpop.f32.mrb[38].mxu1 }
0x1e9e   :  { %v4734_v43 = vpop.f32.mrb[39].mxu1  ;;  %v4740_v45 = vadd.f32 %v9719_v42, %v11876_v36 }
0x1e9f   :  { %v4735_v44 = vadd.f32 %v4734_v43, %v11881_v37 }
0x1ea0   :  { %v4746_v47 = vsel %vm305_vm3, %v4740_v45, -inf }
0x1ea1   :  { %v4743_v46 = vsel %vm305_vm3, %v4735_v44, -inf }
0x1ea2   :  { %4744 = vmax.xlane.f32.xlu0 %v4743_v46 }
0x1ea6   :  { %4747 = vmax.xlane.f32.xlu0 %v4746_v47 }
0x1eac   :  { %v9743_v11 = vpop.f32.mrb[40].mxu1 }
0x1ead   :  { %v5096_v40 = vpop.f32.mrb[41].mxu1  ;;  %v5102_v16 = vadd.f32 %v9743_v11, %v11876_v36 }
0x1eae   :  { %v5097_v18 = vadd.f32 %v5096_v40, %v11881_v37 }
0x1eaf   :  { %v5108_v17 = vsel %vm305_vm3, %v5102_v16, -inf }
0x1eb0   :  { %v5105_v5 = vsel %vm305_vm3, %v5097_v18, -inf }
0x1ebb   :  { %v4548_v9 = vpop.xlane.xlu1 %4547 }
0x1ebc   :  { %v4550_v53 = vsub.f32 %v4540_v38, %v4548_v9  ;;  %v4545_v56 = vpop.xlane.xlu0 %4544 }
0x1ebd   :  { %v4549_v34 = vsub.f32 %v4535_v39, %v4545_v56 }
0x1ebe   :  { %v4553_v57 = vmul.f32 1.442695, %v4550_v53 }
0x1ebf   :  { %v4551_v27 = vmul.f32 1.442695, %v4549_v34  ;;  %v4453_v34 = vld [vmem:[%s12451_s18 + $0x8] sm:$0xff] }
0x1ec0   :  { %10843 = vpow2.f32 %v4553_v57  ;;  %v4452_v57 = vld [vmem:[%s12451_s18] sm:$0xff] }
0x1ec1   :  { %10845 = vpow2.f32 %v4551_v27 }
0x1eca   :  { %v10844_v58 = vpop.eup %10843 }
0x1ecb   :  { %v10846_v59 = vpop.eup %10845  ;;  %v4558_v54 = vsel %vm305_vm3, %v10844_v58, 0.0 }
0x1ecc   :  { %4559 = vadd.xlane.f32.xlu1 %v4558_v54  ;;  %v4555_v61 = vsel %vm305_vm3, %v10846_v59, 0.0 }
0x1ecd   :  { %4556 = vadd.xlane.f32.xlu0 %v4555_v61 }
0x1f2f   :  { %v4745_v14 = vpop.xlane.xlu0 %4744 }
0x1f30   :  { %v4749_v62 = vsub.f32 %v4735_v44, %v4745_v14 }
0x1f32   :  { %v4751_v13 = vmul.f32 1.442695, %v4749_v62 }
0x1f33   :  { %v4748_v63 = vpop.xlane.xlu0 %4747 }
0x1f34   :  { %10847 = vpow2.f32 %v4751_v13  ;;  %v4750_v2 = vsub.f32 %v4740_v45, %v4748_v63 }
0x1f36   :  { %v4753_v48 = vmul.f32 1.442695, %v4750_v2 }
0x1f38   :  { %10849 = vpow2.f32 %v4753_v48 }
0x1f3e   :  { %v10848_v3 = vpop.eup %10847 }
0x1f3f   :  { %v4755_v4 = vsel %vm305_vm3, %v10848_v3, 0.0 }
0x1f40   :  { %4756 = vadd.xlane.f32.xlu0 %v4755_v4 }
0x1f42   :  { %v10850_v6 = vpop.eup %10849 }
0x1f43   :  { %v4758_v1 = vsel %vm305_vm3, %v10850_v6, 0.0 }
0x1f44   :  { %4759 = vadd.xlane.f32.xlu1 %v4758_v1 }
0x1f55   :  { %10625 = vrot.lane.b32.xlu1 %v11828_v55, %s12534_s10 }
0x1f56   :  { %10620 = vrot.lane.b32.xlu0 %v11828_v55, %s12523_s1 }
0x1f59   :  { %10630 = vrot.lane.b32.xlu1 %v11828_v55, %s12529_s8  ;;  %v4560_v7 = vpop.xlane.xlu1 %4559 }
0x1f5a   :  { %5299 = vrot.lane.b32.xlu0 %v11845_v33, %s12529_s8  ;;  %v4557_v0 = vpop.xlane.xlu0 %4556 }
0x1f5b   :  { %10851 = vrcp.f32 %v4557_v0 }
0x1f5c   :  { %10853 = vrcp.f32 %v4560_v7 }
0x1f5d   :  { %5297 = vrot.lane.b32.xlu1 %v11849_v29, %s12529_s8 }
0x1f65   :  { %v10852_v10 = vpop.eup %10851 }
0x1f66   :  { %v4563_v15 = vmul.f32 %v10852_v10, %v10846_v59  ;;  %v10854_v12 = vpop.eup %10853 }
0x1f67   :  { %v4564_v32 = vmul.f32 %v10854_v12, %v10844_v58 }
0x1f68   :  { %9710 = vmatprep.mubr.msk.f32.mxu0 %vm305_vm3, %v4563_v15  ;;  %v4454_v15 = vld [vmem:[%s12451_s18 + $0x10] sm:$0xff] }
0x1f79   :  { %5109 = vmax.xlane.f32.xlu0 %v5108_v17 }
0x1f81   :  { %5106 = vmax.xlane.f32.xlu1 %v5105_v5 }
0x1f92   :  { %10635 = vrot.lane.b32.xlu1 %v11828_v55, %s12526_s0 }
0x1f96   :  { %10640 = vrot.lane.b32.xlu1 %v11828_v55, %s12528_s9 }
0x1fcd   :  { %v4757_v22 = vpop.xlane.xlu0 %4756 }
0x1fce   :  { %10855 = vrcp.f32 %v4757_v22 }
0x1fd1   :  { %v4760_v24 = vpop.xlane.xlu1 %4759  ;;  %v10621_v20 = vpop.permute.xlu0 %10620 }
0x1fd2   :  { %10857 = vrcp.f32 %v4760_v24  ;;  %v10623_v28 = vunpack.i.h.bf16 %v10621_v20  ;;  %v10622_v33 = vunpack.i.l.bf16 %v10621_v20 }
0x1fd4   :  { %v10245_v29 = vpack.c.bf16 %v10623_v28, %v10622_v33 }
0x1fd5   :  { %v10626_v8 = vpop.permute.xlu1 %10625  ;;  %v5300_v42 = vpop.permute.xlu0 %5299 }
0x1fd6   :  { %v10628_v30 = vunpack.i.h.bf16 %v10626_v8  ;;  %v10627_v19 = vunpack.i.l.bf16 %v10626_v8  ;;  %10246 = vmatprep.subr.bf16.mxu0 %v10245_v29 }
0x1fd7   :  { %10248 = vmatpush3.bf16.msra.mxu0 %v10245_v29 }
0x1fd8   :  { %v10856_v49 = vpop.eup %10855  ;;  %v10255_v35 = vpack.c.bf16 %v10628_v30, %v10627_v19 }
0x1fd9   :  { %v10631_v55 = vpop.permute.xlu1 %10630  ;;  %v4763_v23 = vmul.f32 %v10856_v49, %v10848_v3 }
0x1fda   :  { %v10633_v26 = vunpack.i.h.bf16 %v10631_v55  ;;  %v10632_v38 = vunpack.i.l.bf16 %v10631_v55  ;;  %9711 = vmatmul.mubr.msk.f32.vlgmr.msra.gmra.mrb[36].mxu0 %vm305_vm3, %v4564_v32  ;;  %10256 = vmatprep.subr.bf16.mxu0 %v10255_v35 }
0x1fdb   :  { %10258 = vmatpush3.bf16.msra.mxu0 %v10255_v35  ;;  %9724 = vmatprep.mubr.msk.f32.mxu0 %vm305_vm3, %v4763_v23  ;;  %v4455_v35 = vld [vmem:[%s12451_s18 + $0x18] sm:$0xff] }
0x1fdc   :  { %v10858_v25 = vpop.eup %10857  ;;  %v10269_v39 = vpack.c.bf16 %v10633_v26, %v10632_v38  ;;  %9727 = vmatprep.subr.mxu0 %v4453_v34 }
0x1fdd   :  { %v4764_v21 = vmul.f32 %v10858_v25, %v10850_v6  ;;  %v5298_v41 = vpop.permute.xlu1 %5297 }
0x1fde   :  { %10271 = vmatprep.subr.msk.bf16.mxu1 %vm11186_vm2, %v10269_v39  ;;  %9760 = vmatprep.mubr.msk.f32.mxu1 %vm221_vm1, %v5298_v41 }
0x1fdf   :  { %9725 = vmatmul.mubr.msk.f32.vlgmr.msra.gmra.mrb[38].mxu0 %vm305_vm3, %v4764_v21  ;;  %10274 = vmatpush3.bf16.xpose.msk.msra.mxu1 %vm11186_vm2, %v10269_v39 }
0x1fe0   :  { %9728 = vmatpush3.msra.mxu0 %v4453_v34 }
0x1fe1   :  { %9732 = vmatprep.subr.mxu0 %v4452_v57 }
0x1fe6   :  { %9761 = vmatmul.mubr.msk.f32.vlgmr.msra.gmra.mrb[42].mxu1 %vm221_vm1, %v5300_v42 }
0x2006   :  { %v5110_v43 = vpop.xlane.xlu0 %5109 }
0x2007   :  { %v5112_v44 = vsub.f32 %v5102_v16, %v5110_v43 }
0x2009   :  { %v5115_v47 = vmul.f32 1.442695, %v5112_v44 }
0x200e   :  { %v5107_v45 = vpop.xlane.xlu1 %5106 }
0x200f   :  { %v5111_v46 = vsub.f32 %v5097_v18, %v5107_v45 }
0x2011   :  { %v5113_v11 = vmul.f32 1.442695, %v5111_v46 }
0x2012   :  { %v10636_v59 = vpop.permute.xlu1 %10635 }
0x2013   :  { %10859 = vpow2.f32 %v5113_v11  ;;  %v10638_v14 = vunpack.i.h.bf16 %v10636_v59  ;;  %v10637_v62 = vunpack.i.l.bf16 %v10636_v59 }
0x2014   :  { %10861 = vpow2.f32 %v5115_v47 }
0x2015   :  { %v10265_v2 = vpack.c.bf16 %v10638_v14, %v10637_v62  ;;  %v5696_v14 = vld [vmem:[%s12537_s5 + $0x20] sm:$0xff]  ;;  %v5697_v62 = vld [vmem:[%s12537_s5 + $0x28] sm:$0xff] }
0x2016   :  { %v10641_v48 = vpop.permute.xlu1 %10640 }
0x2017   :  { %v10643_v10 = vunpack.i.h.bf16 %v10641_v48  ;;  %v10642_v16 = vunpack.i.l.bf16 %v10641_v48 }
0x201d   :  { %v10860_v40 = vpop.eup %10859 }
0x201e   :  { %v5117_v9 = vsel %vm305_vm3, %v10860_v40, 0.0  ;;  %v10862_v53 = vpop.eup %10861 }
0x201f   :  { %5118 = vadd.xlane.f32.xlu0 %v5117_v9  ;;  %v5120_v56 = vsel %vm305_vm3, %v10862_v53, 0.0  ;;  %v5607_v9 = vld [vmem:[%s12453_s20 + $0x10] sm:$0xff] }
0x2023   :  { %5121 = vadd.xlane.f32.xlu0 %v5120_v56  ;;  %v5608_v56 = vld [vmem:[%s12453_s20 + $0x18] sm:$0xff] }
0x2024   :  { %v10283_v34 = vpack.c.bf16 %v5608_v56, %v5607_v9 }
0x20ac   :  { %v5119_v27 = vpop.xlane.xlu0 %5118 }
0x20ad   :  { %v9712_v58 = vpop.f32.mrb[36].mxu0  ;;  %10863 = vrcp.f32 %v5119_v27  ;;  %v5693_v27 = vld [vmem:[%s12537_s5 + $0x8] sm:$0xff] }
0x20ae   :  { %v4643_v54 = vpop.f32.mrb[37].mxu0 }
0x20b0   :  { %v5122_v61 = vpop.xlane.xlu0 %5121 }
0x20b1   :  { %10865 = vrcp.f32 %v5122_v61 }
0x20b2   :  { %v9726_v13 = vpop.f32.mrb[38].mxu0 }
0x20b3   :  { %v4843_v63 = vpop.f32.mrb[39].mxu0 }
0x20b4   :  { %9729 = vmatprep.mubr.msk.f32.mxu0 %vm221_vm1, %v4843_v63 }
0x20b5   :  { %9730 = vmatmul.mubr.msk.f32.vlgmr.msra.gmra.mrb[40].mxu0 %vm221_vm1, %v9726_v13  ;;  %v10295_v13 = vpack.c.bf16 %v5697_v62, %v5696_v14 }
0x20b6   :  { %9733 = vmatpush3.msra.mxu0 %v4452_v57  ;;  %9734 = vmatprep.mubr.msk.f32.mxu0 %vm221_vm1, %v4643_v54  ;;  %v5692_v57 = vld [vmem:[%s12537_s5] sm:$0xff]  ;;  %v5695_v54 = vld [vmem:[%s12537_s5 + $0x18] sm:$0xff] }
0x20b7   :  { %10266 = vmatprep.subr.bf16.mxu0 %v10265_v2  ;;  %v10864_v4 = vpop.eup %10863  ;;  %v10287_v59 = vpack.c.bf16 %v5693_v27, %v5692_v57 }
0x20b8   :  { %v5125_v5 = vmul.f32 %v10864_v4, %v10860_v40 }
0x20b9   :  { %v9762_v3 = vpop.f32.mrb[42].mxu1 }
0x20ba   :  { %v5379_v6 = vpop.f32.mrb[43].mxu1  ;;  %v5385_v17 = vadd.f32 %v9762_v3, %v11876_v36 }
0x20bb   :  { %v5380_v1 = vadd.f32 %v5379_v6, %v11881_v37  ;;  %v10866_v0 = vpop.eup %10865  ;;  %v10275_v37 = vpack.c.bf16 %v10643_v10, %v10642_v16  ;;  %v8856_v10 = vld [vmem:[%s12538_s21] ss:$0 sm:$0xff] }
0x20bc   :  { %v5126_v7 = vmul.f32 %v10866_v0, %v10862_v53  ;;  %v5391_v22 = vsel %vm305_vm3, %v5385_v17, -inf }
0x20bd   :  { %9735 = vmatmul.mubr.msk.f32.vlgmr.msra.gmra.mrb[40].mxu0 %vm221_vm1, %v9712_v58  ;;  %v5388_v18 = vsel %vm305_vm3, %v5380_v1, -inf  ;;  %v5694_v58 = vld [vmem:[%s12537_s5 + $0x10] sm:$0xff] }
0x20be   :  { %10268 = vmatpush3.bf16.msra.mxu0 %v10265_v2  ;;  %5389 = vmax.xlane.f32.xlu0 %v5388_v18  ;;  %v10291_v61 = vpack.c.bf16 %v5695_v54, %v5694_v58 }
0x20bf   :  { %9748 = vmatprep.mubr.msk.f32.mxu0 %vm305_vm3, %v5125_v5  ;;  %9751 = vmatprep.subr.mxu0 %v4454_v15  ;;  %v5698_v5 = vld [vmem:[%s12537_s5 + $0x30] sm:$0xff] }
0x20c1   :  { %9749 = vmatmul.mubr.msk.f32.vlgmr.msra.gmra.mrb[42].mxu0 %vm305_vm3, %v5126_v7  ;;  %v5699_v7 = vld [vmem:[%s12537_s5 + $0x38] sm:$0xff] }
0x20c2   :  { %9752 = vmatpush3.msra.mxu0 %v4454_v15  ;;  %5392 = vmax.xlane.f32.xlu0 %v5391_v22 }
0x20c3   :  { %10276 = vmatprep.subr.bf16.mxu0 %v10275_v37 }
0x214b   :  { %v5390_v36 = vpop.xlane.xlu0 %5389 }
0x214c   :  { %v5394_v24 = vsub.f32 %v5380_v1, %v5390_v36 }
0x214e   :  { %v5396_v20 = vmul.f32 1.442695, %v5394_v24 }
0x214f   :  { %v5393_v28 = vpop.xlane.xlu0 %5392 }
0x2150   :  { %10867 = vpow2.f32 %v5396_v20  ;;  %v5395_v33 = vsub.f32 %v5385_v17, %v5393_v28 }
0x2152   :  { %v5398_v29 = vmul.f32 1.442695, %v5395_v33 }
0x2154   :  { %10869 = vpow2.f32 %v5398_v29 }
0x215a   :  { %v10868_v12 = vpop.eup %10867 }
0x215b   :  { %v5400_v8 = vsel %vm305_vm3, %v10868_v12, 0.0 }
0x215c   :  { %5401 = vadd.xlane.f32.xlu0 %v5400_v8 }
0x215e   :  { %v10870_v30 = vpop.eup %10869 }
0x215f   :  { %v5403_v19 = vsel %vm305_vm3, %v10870_v30, 0.0 }
0x2160   :  { %5404 = vadd.xlane.f32.xlu0 %v5403_v19 }
0x2194   :  { %v9750_v49 = vpop.f32.mrb[42].mxu0 }
0x2195   :  { %v5205_v32 = vpop.f32.mrb[43].mxu0 }
0x2196   :  { %9753 = vmatprep.mubr.msk.f32.mxu0 %vm221_vm1, %v5205_v32  ;;  %v8862_v32 = vld [vmem:[%s12446_s13 + $0x20] sm:$0xff] }
0x2197   :  { %9754 = vmatmul.mubr.msk.f32.vlgmr.msra.gmra.mrb[40].mxu0 %vm221_vm1, %v9750_v49 }
0x2198   :  { %10278 = vmatpush3.bf16.msra.mxu0 %v10275_v37  ;;  %v10299_v37 = vpack.c.bf16 %v5699_v7, %v5698_v5 }
0x2199   :  { %9770 = vmatprep.subr.mxu0 %v4455_v35 }
0x21e9   :  { %v5402_v55 = vpop.xlane.xlu0 %5401 }
0x21ea   :  { %10871 = vrcp.f32 %v5402_v55  ;;  %v8864_v55 = vld [vmem:[%s12446_s13 + $0x30] sm:$0xff] }
0x21ed   :  { %v5405_v23 = vpop.xlane.xlu0 %5404 }
0x21ee   :  { %10873 = vrcp.f32 %v5405_v23 }
0x21f4   :  { %v10872_v26 = vpop.eup %10871 }
0x21f5   :  { %v5408_v38 = vmul.f32 %v10872_v26, %v10868_v12  ;;  %v8865_v26 = vld [vmem:[%s12446_s13 + $0x38] sm:$0xff] }
0x21f7   :  { %9767 = vmatprep.mubr.msk.f32.mxu0 %vm305_vm3, %v5408_v38  ;;  %v10307_v38 = vpack.c.bf16 %v8865_v26, %v8864_v55 }
0x21f8   :  { %v10874_v25 = vpop.eup %10873 }
0x21f9   :  { %v5409_v39 = vmul.f32 %v10874_v25, %v10870_v30 }
0x21fb   :  { %9768 = vmatmul.mubr.msk.f32.vlgmr.msra.gmra.mrb[44].mxu0 %vm305_vm3, %v5409_v39 }
0x21fc   :  { %9771 = vmatpush3.msra.mxu0 %v4455_v35  ;;  %v8863_v35 = vld [vmem:[%s12446_s13 + $0x28] sm:$0xff] }
0x21fd   :  { %10288 = vmatprep.subr.bf16.mxu0 %v10287_v59  ;;  %v10303_v23 = vpack.c.bf16 %v8863_v35, %v8862_v32 }
0x22ce   :  { %v9769_v21 = vpop.f32.mrb[44].mxu0 }
0x22cf   :  { %v5488_v41 = vpop.f32.mrb[45].mxu0 }
0x22d0   :  { %9772 = vmatprep.mubr.msk.f32.mxu0 %vm221_vm1, %v5488_v41 }
0x22d1   :  { %9773 = vmatmul.mubr.msk.f32.vlgmr.msra.gmra.mrb[40].mxu0 %vm221_vm1, %v9769_v21 }
0x22d2   :  { %10290 = vmatpush3.bf16.msra.mxu0 %v10287_v59 }
0x22d3   :  { %10292 = vmatprep.subr.bf16.mxu0 %v10291_v61 }
0x22d6   :  { %10294 = vmatpush3.bf16.msra.mxu0 %v10291_v61 }
0x22d7   :  { %10296 = vmatprep.subr.bf16.mxu0 %v10295_v13 }
0x22da   :  { %10298 = vmatpush3.bf16.msra.mxu0 %v10295_v13 }
0x22db   :  { %10300 = vmatprep.subr.bf16.mxu0 %v10299_v37 }
0x22de   :  { %10302 = vmatpush3.bf16.msra.mxu0 %v10299_v37  ;;  %v10961_v37 = vld [vmem:[%s12535_s3 + $0x10] sm:$0xff] }
0x23a4   :  { %v9774_v42 = vpop.f32.mrb[40].mxu0 }
0x23a5   :  { %v11956_v43 = vadd.f32 %v9774_v42, %v11817_v52  ;;  %v5569_v44 = vpop.f32.mrb[41].mxu0  ;;  %v5605_v52 = vld [vmem:[%s12453_s20] sm:$0xff] }
0x23a6   :  { %v11959_v45 = vadd.f32 %v5569_v44, %v11820_v60  ;;  %v5606_v60 = vld [vmem:[%s12453_s20 + $0x8] sm:$0xff]  ;;  %s11004_s20 = smov [#allocation2]  }
0x23a7   :  { %v5584_v46 = vmul.f32 %v11956_v43, %v11956_v43  ;;  %v10279_v53 = vpack.c.bf16 %v5606_v60, %v5605_v52  ;;  %s8672_s29 = sshll.u32 %s11004_s20, 4  ;;  %s8673_s29 = int_to_ptr.vmem [resolvable:$true] %s8672_s29 }
0x23a8   :  { %v5583_v47 = vmul.f32 %v11959_v45, %v11959_v45  ;;  %s10969_s22 = scalar_lea.vmem %s8673_s29, 256  ;;  %p10974_p1 = scmp.lt.s32.totalorder %s8673_s29, %s8673_s29 }
0x23a9   :  { %v5588_v11 = vsel %vm104_vm0, %v5584_v46, 0.0  ;;  %10280 = vmatprep.subr.bf16.mxu1 %v10279_v53  ;;  %p10970_p0 = scmp.ne.s32.totalorder %s8673_s29, %s10969_s22  ;;  %p10975_p2 = scmp.lt.s32.totalorder %s10969_s22, %s10969_s22 }
0x23aa   :  { %5589 = vadd.xlane.f32.xlu1 %v5588_v11  ;;  %v5585_v40 = vsel %vm104_vm0, %v5583_v47, 0.0  ;;  %10282 = vmatpush3.bf16.msra.mxu1 %v10279_v53 }
0x23ab   :  { %5586 = vadd.xlane.f32.xlu0 %v5585_v40  ;;  %10284 = vmatprep.subr.bf16.mxu1 %v10283_v34  ;;  %p10976_p3 = por %p10975_p2, %p10974_p1 }
0x23ad   :  { %p10977_p4 = pnand %p10976_p3, %p10970_p0 }
0x23ae   :  { %10286 = vmatpush3.bf16.msra.mxu1 %v10283_v34 }
0x23af   :  { %10304 = vmatprep.subr.bf16.mxu1 %v10303_v23 }
0x2437   :  { %v5590_v63 = vpop.xlane.xlu1 %5589 }
0x2438   :  { %v5592_v2 = vmul.f32 0.03125, %v5590_v63  ;;  %v5587_v48 = vpop.xlane.xlu0 %5586 }
0x2439   :  { %v5591_v3 = vmul.f32 0.03125, %v5587_v48 }
0x243a   :  { %v5594_v4 = vadd.f32 1e-06, %v5592_v2 }
0x243b   :  { %v5593_v6 = vadd.f32 1e-06, %v5591_v3 }
0x243c   :  { %10875 = vrsqrt.f32 %v5594_v4 }
0x243d   :  { %10877 = vrsqrt.f32 %v5593_v6 }
0x2446   :  { %v10876_v1 = vpop.eup %10875 }
0x2447   :  { %v10878_v0 = vpop.eup %10877  ;;  %v5598_v15 = vmul.f32 %v10876_v1, %v11956_v43  ;;  %v10959_v1 = vld [vmem:[%s12535_s3 + $0x8] sm:$0xff] }
0x2448   :  { %v5597_v16 = vmul.f32 %v10878_v0, %v11959_v45 }
0x2449   :  { %v5604_v18 = vmul.f32 %v8856_v10, %v5598_v15  ;;  %v10960_v15 = vld [vmem:[%s12535_s3] sm:$0xff] }
0x244a   :  { %v5603_v17 = vmul.f32 %v8856_v10, %v5597_v16 }
0x244c   :  { %9783 = vmatprep.mubr.msk.f32.mxu1 %vm104_vm0, %v5603_v17 }
0x244d   :  { %9784 = vmatmul.mubr.msk.f32.vlgmr.msra.gmra.mrb[44].mxu1 %vm104_vm0, %v5604_v18 }
0x244e   :  { %10306 = vmatpush3.bf16.msra.mxu1 %v10303_v23 }
0x244f   :  { %10308 = vmatprep.subr.bf16.mxu1 %v10307_v38 }
0x2452   :  { %10310 = vmatpush3.bf16.msra.mxu1 %v10307_v38 }
0x2520   :  { %v9785_v22 = vpop.f32.mrb[44].mxu1 }
0x2521   :  { %v5681_v36 = vpop.f32.mrb[45].mxu1  ;;  %v5691_v20 = vmax.f32 %v9785_v22, 0.0 }
0x2522   :  { %v5690_v24 = vmax.f32 %v5681_v36, 0.0  ;;  %v10962_v36 = vld [vmem:[%s12535_s3 + $0x18] sm:$0xff] }
0x2524   :  { %9802 = vmatprep.mubr.msk.f32.mxu0 %vm1463_vm4, %v5690_v24 }
0x2525   :  { %9803 = vmatmul.mubr.msk.f32.vlgmr.msra.gmra.mrb[46].mxu0 %vm1463_vm4, %v5691_v20 }
0x25f8   :  { %v9804_v28 = vpop.f32.mrb[46].mxu0 }
0x25f9   :  { %v5772_v33 = vpop.f32.mrb[47].mxu0  ;;  %v12013_v29 = vadd.f32 %v9804_v28, %v11956_v43 }
0x25fa   :  { %v12016_v12 = vadd.f32 %v5772_v33, %v11959_v45  ;;  %v8861_v45 = vld [vmem:[%s12445_s12 + $0x1] ss:$0 sm:$0xff]  ;;  %s12539_s12 = sld [smem:[#allocation16_spill]] }
0x25fb   :  { %v5785_v19 = vmul.f32 %v12013_v29, %v12013_v29 }
0x25fc   :  { %v5784_v8 = vmul.f32 %v12016_v12, %v12016_v12 }
0x25fd   :  { %v5789_v49 = vsel %vm104_vm0, %v5785_v19, 0.0 }
0x25fe   :  { %v5786_v30 = vsel %vm104_vm0, %v5784_v8, 0.0 }
0x25ff   :  { %5787 = vadd.xlane.f32.xlu0 %v5786_v30 }
0x2603   :  { %5790 = vadd.xlane.f32.xlu0 %v5789_v49 }
0x268c   :  { %v5788_v25 = vpop.xlane.xlu0 %5787 }
0x268d   :  { %v5792_v39 = vmul.f32 0.03125, %v5788_v25 }
0x268f   :  { %v5794_v21 = vadd.f32 1e-06, %v5792_v39 }
0x2690   :  { %v5791_v41 = vpop.xlane.xlu0 %5790 }
0x2691   :  { %10879 = vrsqrt.f32 %v5794_v21  ;;  %v5793_v42 = vmul.f32 0.03125, %v5791_v41 }
0x2693   :  { %v5795_v43 = vadd.f32 1e-06, %v5793_v42 }
0x2695   :  { %10881 = vrsqrt.f32 %v5795_v43 }
0x269b   :  { %v10880_v44 = vpop.eup %10879 }
0x269c   :  { %v5798_v46 = vmul.f32 %v10880_v44, %v12016_v12 }
0x269e   :  { %v5804_v47 = vmul.f32 %v8861_v45, %v5798_v46 }
0x269f   :  { %v10882_v11 = vpop.eup %10881 }
0x26a0   :  { %v5799_v40 = vmul.f32 %v10882_v11, %v12013_v29  ;;  %9813 = vmatprep.mubr.msk.f32.mxu1 %vm104_vm0, %v5804_v47 }
0x26a2   :  { %v5805_v52 = vmul.f32 %v8861_v45, %v5799_v40  ;;  %v10963_v40 = vld [vmem:[%s12535_s3 + $0x28] sm:$0xff] }
0x26a4   :  { %9814 = vmatmul.mubr.msk.f32.vlgmr.msra.gmra.mrb[46].mxu1 %vm104_vm0, %v5805_v52 }
0x2777   :  { %v12043_v60 = vpop.f32.mrb[46].mxu1 }
0x2778   :  { %v12045_v9 = vpop.f32.mrb[47].mxu1 }
0x2779   :  { %6095 = vrot.lane.b32.xlu1 %v12045_v9, %s12524_s2  ;;  %9820 = vmatprep.mubr.msk.f32.mxu1 %vm221_vm1, %v12045_v9  ;;  %v12053_v53 = vpack.i.bf16 %v12043_v60, %v12045_v9 }
0x277b   :  { %10645 = vrot.lane.b32.xlu0 %v12053_v53, %s12523_s1 }
0x277f   :  { %10650 = vrot.lane.b32.xlu0 %v12053_v53, %s12534_s10 }
0x2783   :  { %6097 = vrot.lane.b32.xlu0 %v12043_v60, %s12524_s2 }
0x2787   :  { %10655 = vrot.lane.b32.xlu0 %v12053_v53, %s12526_s0 }
0x278b   :  { %6457 = vrot.lane.b32.xlu0 %v12045_v9, %s12525_s30 }
0x278f   :  { %6459 = vrot.lane.b32.xlu0 %v12043_v60, %s12525_s30 }
0x27eb   :  { %v6096_v13 = vpop.permute.xlu1 %6095 }
0x27ed   :  { %v10646_v56 = vpop.permute.xlu0 %10645 }
0x27ee   :  { %v10648_v34 = vunpack.i.h.bf16 %v10646_v56  ;;  %v10647_v57 = vunpack.i.l.bf16 %v10646_v56  ;;  %v10964_v56 = vld [vmem:[%s12535_s3 + $0x20] sm:$0xff] }
0x27f0   :  { %v10311_v27 = vpack.c.bf16 %v10648_v34, %v10647_v57 }
0x27f1   :  { %v10651_v58 = vpop.permute.xlu0 %10650 }
0x27f2   :  { %v10653_v59 = vunpack.i.h.bf16 %v10651_v58  ;;  %v10652_v54 = vunpack.i.l.bf16 %v10651_v58  ;;  %10313 = vmatprep.subr.msk.bf16.mxu1 %vm11186_vm2, %v10311_v27 }
0x27f3   :  { %10316 = vmatpush3.bf16.xpose.msk.msra.mxu1 %vm11186_vm2, %v10311_v27 }
0x27f4   :  { %v10321_v61 = vpack.c.bf16 %v10653_v59, %v10652_v54 }
0x27f5   :  { %v6098_v14 = vpop.permute.xlu0 %6097 }
0x27f6   :  { %10323 = vmatprep.subr.msk.bf16.mxu1 %vm11186_vm2, %v10321_v61 }
0x27f9   :  { %v10656_v62 = vpop.permute.xlu0 %10655 }
0x27fa   :  { %v10658_v63 = vunpack.i.h.bf16 %v10656_v62  ;;  %v10657_v2 = vunpack.i.l.bf16 %v10656_v62  ;;  %9821 = vmatmul.mubr.msk.f32.vlgmr.msra.gmra.mrb[48].mxu1 %vm221_vm1, %v12043_v60 }
0x27fb   :  { %10326 = vmatpush3.bf16.xpose.msk.msra.mxu1 %vm11186_vm2, %v10321_v61  ;;  %9834 = vmatprep.mubr.msk.f32.mxu1 %vm221_vm1, %v6096_v13 }
0x27fc   :  { %v10331_v48 = vpack.c.bf16 %v10658_v63, %v10657_v2 }
0x27fd   :  { %v6458_v3 = vpop.permute.xlu0 %6457 }
0x27fe   :  { %10333 = vmatprep.subr.msk.bf16.mxu1 %vm11186_vm2, %v10331_v48 }
0x2801   :  { %v6460_v4 = vpop.permute.xlu0 %6459 }
0x2802   :  { %9835 = vmatmul.mubr.msk.f32.vlgmr.msra.gmra.mrb[50].mxu1 %vm221_vm1, %v6098_v14 }
0x2803   :  { %10336 = vmatpush3.bf16.xpose.msk.msra.mxu1 %vm11186_vm2, %v10331_v48  ;;  %9858 = vmatprep.mubr.msk.f32.mxu1 %vm221_vm1, %v6458_v3 }
0x280a   :  { %9859 = vmatmul.mubr.msk.f32.vlgmr.msra.gmra.mrb[52].mxu1 %vm221_vm1, %v6460_v4 }
0x28cd   :  { %v9822_v6 = vpop.f32.mrb[48].mxu1 }
0x28ce   :  { %v5983_v0 = vadd.f32 %v10959_v1, %v9822_v6  ;;  %v5977_v10 = vpop.f32.mrb[49].mxu1 }
0x28cf   :  { %v5978_v16 = vadd.f32 %v10960_v15, %v5977_v10 }
0x28d0   :  { %v5989_v17 = vsel %vm305_vm3, %v5983_v0, -inf }
0x28d1   :  { %5990 = vmax.xlane.f32.xlu1 %v5989_v17  ;;  %v5986_v18 = vsel %vm305_vm3, %v5978_v16, -inf }
0x28d2   :  { %5987 = vmax.xlane.f32.xlu0 %v5986_v18 }
0x28d5   :  { %v9836_v5 = vpop.f32.mrb[50].mxu1 }
0x28d6   :  { %v6177_v7 = vpop.f32.mrb[51].mxu1  ;;  %v6183_v24 = vadd.f32 %v10962_v36, %v9836_v5 }
0x28d7   :  { %v6178_v22 = vadd.f32 %v10961_v37, %v6177_v7 }
0x28d8   :  { %v6189_v33 = vsel %vm305_vm3, %v6183_v24, -inf }
0x28d9   :  { %v6186_v20 = vsel %vm305_vm3, %v6178_v22, -inf }
0x28da   :  { %6187 = vmax.xlane.f32.xlu0 %v6186_v20 }
0x28dd   :  { %v9860_v28 = vpop.f32.mrb[52].mxu1 }
0x28de   :  { %v6539_v8 = vpop.f32.mrb[53].mxu1  ;;  %6190 = vmax.xlane.f32.xlu0 %v6189_v33  ;;  %v6545_v52 = vadd.f32 %v10963_v40, %v9860_v28 }
0x28df   :  { %v6540_v34 = vadd.f32 %v10964_v56, %v6539_v8 }
0x28e1   :  { %v6548_v57 = vsel %vm305_vm3, %v6540_v34, -inf }
0x295e   :  { %v5991_v30 = vpop.xlane.xlu1 %5990 }
0x295f   :  { %v5993_v19 = vsub.f32 %v5983_v0, %v5991_v30  ;;  %v5988_v49 = vpop.xlane.xlu0 %5987 }
0x2960   :  { %v5992_v32 = vsub.f32 %v5978_v16, %v5988_v49 }
0x2961   :  { %v5996_v35 = vmul.f32 1.442695, %v5993_v19 }
0x2962   :  { %v5994_v55 = vmul.f32 1.442695, %v5992_v32 }
0x2963   :  { %10883 = vpow2.f32 %v5996_v35  ;;  %v8869_v35 = vld [vmem:[%s12447_s14 + $0x28] sm:$0xff] }
0x2964   :  { %10885 = vpow2.f32 %v5994_v55  ;;  %v8868_v55 = vld [vmem:[%s12447_s14 + $0x20] sm:$0xff] }
0x2967   :  { %v6188_v23 = vpop.xlane.xlu0 %6187 }
0x2968   :  { %v6192_v26 = vsub.f32 %v6178_v22, %v6188_v23 }
0x296a   :  { %v6194_v38 = vmul.f32 1.442695, %v6192_v26 }
0x296b   :  { %v6191_v25 = vpop.xlane.xlu0 %6190 }
0x296c   :  { %10887 = vpow2.f32 %v6194_v38  ;;  %v6193_v39 = vsub.f32 %v6183_v24, %v6191_v25 }
0x296d   :  { %v10884_v21 = vpop.eup %10883 }
0x296e   :  { %v10886_v41 = vpop.eup %10885  ;;  %v6196_v42 = vmul.f32 1.442695, %v6193_v39  ;;  %v6001_v43 = vsel %vm305_vm3, %v10884_v21, 0.0 }
0x296f   :  { %6002 = vadd.xlane.f32.xlu0 %v6001_v43  ;;  %v5998_v44 = vsel %vm305_vm3, %v10886_v41, 0.0 }
0x2970   :  { %10889 = vpow2.f32 %v6196_v42  ;;  %5999 = vadd.xlane.f32.xlu1 %v5998_v44 }
0x2976   :  { %v10888_v45 = vpop.eup %10887 }
0x2977   :  { %v6198_v46 = vsel %vm305_vm3, %v10888_v45, 0.0 }
0x2978   :  { %6199 = vadd.xlane.f32.xlu1 %v6198_v46 }
0x297a   :  { %v10890_v47 = vpop.eup %10889 }
0x297b   :  { %v6201_v11 = vsel %vm305_vm3, %v10890_v47, 0.0 }
0x297c   :  { %6202 = vadd.xlane.f32.xlu0 %v6201_v11  ;;  %v10965_v11 = vld [vmem:[%s12535_s3 + $0x30] sm:$0xff] }
0x2989   :  { %10660 = vrot.lane.b32.xlu1 %v12053_v53, %s12527_s6 }
0x298d   :  { %10670 = vrot.lane.b32.xlu1 %v12053_v53, %s12528_s9 }
0x2991   :  { %6740 = vrot.lane.b32.xlu1 %v12045_v9, %s12529_s8  ;;  %v6551_v9 = vsel %vm305_vm3, %v6545_v52, -inf }
0x2992   :  { %10665 = vrot.lane.b32.xlu0 %v12053_v53, %s12530_s28 }
0x2996   :  { %6742 = vrot.lane.b32.xlu0 %v12043_v60, %s12529_s8 }
0x29b5   :  { %6549 = vmax.xlane.f32.xlu1 %v6548_v57  ;;  %6552 = vmax.xlane.f32.xlu0 %v6551_v9 }
0x29fc   :  { %v6003_v58 = vpop.xlane.xlu0 %6002 }
0x29fd   :  { %v6000_v27 = vpop.xlane.xlu1 %5999 }
0x29fe   :  { %10891 = vrcp.f32 %v6000_v27 }
0x29ff   :  { %10893 = vrcp.f32 %v6003_v58 }
0x2a05   :  { %v6200_v60 = vpop.xlane.xlu1 %6199 }
0x2a06   :  { %10895 = vrcp.f32 %v6200_v60  ;;  %v8870_v60 = vld [vmem:[%s12447_s14 + $0x30] sm:$0xff] }
0x2a08   :  { %v10892_v59 = vpop.eup %10891 }
0x2a09   :  { %v10661_v54 = vpop.permute.xlu1 %10660  ;;  %v6203_v61 = vpop.xlane.xlu0 %6202  ;;  %v6006_v14 = vmul.f32 %v10892_v59, %v10886_v41 }
0x2a0a   :  { %v10663_v62 = vunpack.i.h.bf16 %v10661_v54  ;;  %v10662_v13 = vunpack.i.l.bf16 %v10661_v54  ;;  %10897 = vrcp.f32 %v6203_v61  ;;  %v10894_v2 = vpop.eup %10893 }
0x2a0b   :  { %9827 = vmatprep.mubr.msk.f32.mxu0 %vm305_vm3, %v6006_v14  ;;  %v6007_v15 = vmul.f32 %v10894_v2, %v10884_v21 }
0x2a0c   :  { %v10317_v63 = vpack.c.bf16 %v10663_v62, %v10662_v13 }
0x2a0d   :  { %v10671_v48 = vpop.permute.xlu1 %10670  ;;  %v10666_v3 = vpop.permute.xlu0 %10665 }
0x2a0e   :  { %v10673_v4 = vunpack.i.h.bf16 %v10671_v48  ;;  %v10672_v6 = vunpack.i.l.bf16 %v10671_v48  ;;  %v10668_v1 = vunpack.i.h.bf16 %v10666_v3  ;;  %v10667_v0 = vunpack.i.l.bf16 %v10666_v3  ;;  %10318 = vmatprep.subr.bf16.mxu0 %v10317_v63 }
0x2a0f   :  { %10320 = vmatpush3.bf16.msra.mxu0 %v10317_v63 }
0x2a10   :  { %v10896_v10 = vpop.eup %10895  ;;  %v10341_v16 = vpack.c.bf16 %v10673_v4, %v10672_v6  ;;  %v10327_v17 = vpack.c.bf16 %v10668_v1, %v10667_v0 }
0x2a11   :  { %v6741_v18 = vpop.permute.xlu1 %6740  ;;  %v6206_v5 = vmul.f32 %v10896_v10, %v10888_v45  ;;  %v6743_v22 = vpop.permute.xlu0 %6742 }
0x2a12   :  { %9828 = vmatmul.mubr.msk.f32.vlgmr.msra.gmra.mrb[48].mxu0 %vm305_vm3, %v6007_v15  ;;  %10328 = vmatprep.subr.bf16.mxu0 %v10327_v17 }
0x2a13   :  { %10343 = vmatprep.subr.msk.bf16.mxu1 %vm11186_vm2, %v10341_v16  ;;  %9877 = vmatprep.mubr.msk.f32.mxu1 %vm221_vm1, %v6741_v18  ;;  %v8871_v18 = vld [vmem:[%s12447_s14 + $0x38] sm:$0xff] }
0x2a14   :  { %v10898_v7 = vpop.eup %10897  ;;  %10330 = vmatpush3.bf16.msra.mxu0 %v10327_v17  ;;  %9841 = vmatprep.mubr.msk.f32.mxu0 %vm305_vm3, %v6206_v5 }
0x2a15   :  { %v6207_v37 = vmul.f32 %v10898_v7, %v10890_v47  ;;  %10346 = vmatpush3.bf16.xpose.msk.msra.mxu1 %vm11186_vm2, %v10341_v16  ;;  %9844 = vmatprep.subr.mxu0 %v8869_v35 }
0x2a17   :  { %9842 = vmatmul.mubr.msk.f32.vlgmr.msra.gmra.mrb[50].mxu0 %vm305_vm3, %v6207_v37 }
0x2a18   :  { %9845 = vmatpush3.msra.mxu0 %v8869_v35  ;;  %v8908_v35 = vld [vmem:[%s12449_s16 + $0x38] sm:$0xff] }
0x2a19   :  { %9849 = vmatprep.subr.mxu0 %v8868_v55 }
0x2a1c   :  { %9878 = vmatmul.mubr.msk.f32.vlgmr.msra.gmra.mrb[54].mxu1 %vm221_vm1, %v6743_v22  ;;  %v8911_v22 = vld [vmem:[%s12450_s17 + $0x20] sm:$0xff] }
0x2a42   :  { %v6550_v36 = vpop.xlane.xlu1 %6549  ;;  %v6553_v24 = vpop.xlane.xlu0 %6552 }
0x2a43   :  { %v6554_v20 = vsub.f32 %v6540_v34, %v6550_v36  ;;  %v6555_v28 = vsub.f32 %v6545_v52, %v6553_v24  ;;  %v10966_v52 = vld [vmem:[%s12535_s3 + $0x38] sm:$0xff]  ;;  %v8912_v36 = vld [vmem:[%s12450_s17 + $0x28] sm:$0xff] }
0x2a44   :  { %v10359_v24 = vpack.c.bf16 %v8912_v36, %v8911_v22 }
0x2a45   :  { %v6556_v33 = vmul.f32 1.442695, %v6554_v20  ;;  %v6558_v8 = vmul.f32 1.442695, %v6555_v28  ;;  %v8913_v20 = vld [vmem:[%s12450_s17 + $0x30] sm:$0xff]  ;;  %v8914_v28 = vld [vmem:[%s12450_s17 + $0x38] sm:$0xff] }
0x2a47   :  { %10899 = vpow2.f32 %v6556_v33 }
0x2a48   :  { %10901 = vpow2.f32 %v6558_v8 }
0x2a51   :  { %v10900_v30 = vpop.eup %10899 }
0x2a52   :  { %v10902_v19 = vpop.eup %10901  ;;  %v6560_v49 = vsel %vm305_vm3, %v10900_v30, 0.0 }
0x2a53   :  { %6561 = vadd.xlane.f32.xlu0 %v6560_v49  ;;  %v6563_v32 = vsel %vm305_vm3, %v10902_v19, 0.0  ;;  %v8906_v49 = vld [vmem:[%s12449_s16 + $0x28] sm:$0xff] }
0x2a54   :  { %6564 = vadd.xlane.f32.xlu1 %v6563_v32 }
0x2a69   :  { %10675 = vrot.lane.b32.xlu0 %v12053_v53, %s12531_s25 }
0x2ae0   :  { %v6562_v23 = vpop.xlane.xlu0 %6561 }
0x2ae1   :  { %v6565_v39 = vpop.xlane.xlu1 %6564  ;;  %10903 = vrcp.f32 %v6562_v23 }
0x2ae2   :  { %10905 = vrcp.f32 %v6565_v39 }
0x2ae4   :  { %v10676_v38 = vpop.permute.xlu0 %10675 }
0x2ae5   :  { %v9829_v26 = vpop.f32.mrb[48].mxu0  ;;  %v10678_v21 = vunpack.i.h.bf16 %v10676_v38  ;;  %v10677_v41 = vunpack.i.l.bf16 %v10676_v38 }
0x2ae6   :  { %v6086_v25 = vpop.f32.mrb[49].mxu0 }
0x2ae7   :  { %v10337_v44 = vpack.c.bf16 %v10678_v21, %v10677_v41 }
0x2aea   :  { %v9843_v42 = vpop.f32.mrb[50].mxu0 }
0x2aeb   :  { %v6286_v43 = vpop.f32.mrb[51].mxu0  ;;  %v10904_v47 = vpop.eup %10903 }
0x2aec   :  { %9846 = vmatprep.mubr.msk.f32.mxu0 %vm221_vm1, %v6286_v43  ;;  %v10906_v57 = vpop.eup %10905  ;;  %v6568_v9 = vmul.f32 %v10904_v47, %v10900_v30  ;;  %v10363_v30 = vpack.c.bf16 %v8914_v28, %v8913_v20 }
0x2aed   :  { %9847 = vmatmul.mubr.msk.f32.vlgmr.msra.gmra.mrb[52].mxu0 %vm221_vm1, %v9843_v42  ;;  %v6569_v27 = vmul.f32 %v10906_v57, %v10902_v19  ;;  %v8905_v19 = vld [vmem:[%s12449_s16 + $0x20] sm:$0xff] }
0x2aee   :  { %9850 = vmatpush3.msra.mxu0 %v8868_v55  ;;  %9851 = vmatprep.mubr.msk.f32.mxu0 %vm221_vm1, %v6086_v25  ;;  %v10351_v32 = vpack.c.bf16 %v8906_v49, %v8905_v19  ;;  %v8904_v57 = vld [vmem:[%s12448_s15 + $0x1] ss:$0 sm:$0xff] }
0x2aef   :  { %v9879_v45 = vpop.f32.mrb[54].mxu1  ;;  %10338 = vmatprep.subr.bf16.mxu0 %v10337_v44 }
0x2af0   :  { %v6822_v46 = vpop.f32.mrb[55].mxu1  ;;  %v6828_v56 = vadd.f32 %v10966_v52, %v9879_v45  ;;  %10352 = vmatprep.subr.bf16.mxu1 %v10351_v32 }
0x2af1   :  { %v6823_v40 = vadd.f32 %v10965_v11, %v6822_v46  ;;  %10354 = vmatpush3.bf16.msra.mxu1 %v10351_v32 }
0x2af2   :  { %v6834_v58 = vsel %vm305_vm3, %v6828_v56, -inf }
0x2af3   :  { %v6831_v34 = vsel %vm305_vm3, %v6823_v40, -inf }
0x2af4   :  { %6832 = vmax.xlane.f32.xlu1 %v6831_v34 }
0x2af5   :  { %9852 = vmatmul.mubr.msk.f32.vlgmr.msra.gmra.mrb[52].mxu0 %vm221_vm1, %v9829_v26 }
0x2af6   :  { %10340 = vmatpush3.bf16.msra.mxu0 %v10337_v44  ;;  %9865 = vmatprep.mubr.msk.f32.mxu0 %vm305_vm3, %v6568_v9 }
0x2af7   :  { %9868 = vmatprep.subr.mxu0 %v8870_v60 }
0x2af8   :  { %6835 = vmax.xlane.f32.xlu1 %v6834_v58 }
0x2af9   :  { %9866 = vmatmul.mubr.msk.f32.vlgmr.msra.gmra.mrb[54].mxu0 %vm305_vm3, %v6569_v27 }
0x2afa   :  { %9869 = vmatpush3.msra.mxu0 %v8870_v60 }
0x2b81   :  { %v6833_v59 = vpop.xlane.xlu1 %6832 }
0x2b82   :  { %v6837_v54 = vsub.f32 %v6823_v40, %v6833_v59 }
0x2b84   :  { %v6839_v62 = vmul.f32 1.442695, %v6837_v54 }
0x2b85   :  { %v6836_v61 = vpop.xlane.xlu1 %6835 }
0x2b86   :  { %v6838_v14 = vsub.f32 %v6828_v56, %v6836_v61 }
0x2b88   :  { %v6841_v13 = vmul.f32 1.442695, %v6838_v14 }
0x2b8a   :  { %10907 = vpow2.f32 %v6841_v13 }
0x2b8b   :  { %10909 = vpow2.f32 %v6839_v62 }
0x2b94   :  { %v10908_v63 = vpop.eup %10907 }
0x2b95   :  { %v6846_v2 = vsel %vm305_vm3, %v10908_v63, 0.0  ;;  %v10910_v48 = vpop.eup %10909 }
0x2b96   :  { %6847 = vadd.xlane.f32.xlu1 %v6846_v2  ;;  %v6843_v3 = vsel %vm305_vm3, %v10910_v48, 0.0 }
0x2b9a   :  { %6844 = vadd.xlane.f32.xlu1 %v6843_v3 }
0x2bab   :  { %10680 = vrot.lane.b32.xlu1 %v12053_v53, %s12532_s4  ;;  %s12540_s4 = sld [smem:[#allocation19_spill]] }
0x2bcc   :  { %v9867_v4 = vpop.f32.mrb[54].mxu0 }
0x2bcd   :  { %v6648_v6 = vpop.f32.mrb[55].mxu0 }
0x2bce   :  { %9870 = vmatprep.mubr.msk.f32.mxu0 %vm221_vm1, %v6648_v6 }
0x2bcf   :  { %9871 = vmatmul.mubr.msk.f32.vlgmr.msra.gmra.mrb[52].mxu0 %vm221_vm1, %v9867_v4 }
0x2c23   :  { %v6848_v1 = vpop.xlane.xlu1 %6847 }
0x2c24   :  { %10911 = vrcp.f32 %v6848_v1 }
0x2c27   :  { %v6845_v0 = vpop.xlane.xlu1 %6844 }
0x2c28   :  { %10913 = vrcp.f32 %v6845_v0 }
0x2c2b   :  { %v10681_v10 = vpop.permute.xlu1 %10680 }
0x2c2c   :  { %v10683_v15 = vunpack.i.h.bf16 %v10681_v10  ;;  %v10682_v16 = vunpack.i.l.bf16 %v10681_v10  ;;  %v12261_v10 = vld [vmem:[%s12536_s24 + $0x8] sm:$0xff] }
0x2c2e   :  { %v10347_v17 = vpack.c.bf16 %v10683_v15, %v10682_v16  ;;  %v10912_v53 = vpop.eup %10911 }
0x2c2f   :  { %v6852_v37 = vmul.f32 %v10912_v53, %v10908_v63 }
0x2c30   :  { %10348 = vmatprep.subr.bf16.mxu0 %v10347_v17 }
0x2c31   :  { %10350 = vmatpush3.bf16.msra.mxu0 %v10347_v17  ;;  %v12267_v17 = vld [vmem:[%s12536_s24] sm:$0xff] }
0x2c32   :  { %v10914_v5 = vpop.eup %10913  ;;  %9887 = vmatprep.subr.mxu0 %v8871_v18 }
0x2c33   :  { %v6851_v7 = vmul.f32 %v10914_v5, %v10910_v48 }
0x2c35   :  { %9884 = vmatprep.mubr.msk.f32.mxu0 %vm305_vm3, %v6851_v7 }
0x2c36   :  { %9885 = vmatmul.mubr.msk.f32.vlgmr.msra.gmra.mrb[56].mxu0 %vm305_vm3, %v6852_v37 }
0x2c37   :  { %9888 = vmatpush3.msra.mxu0 %v8871_v18 }
0x2c38   :  { %10360 = vmatprep.subr.bf16.mxu0 %v10359_v24 }
0x2d09   :  { %v9886_v33 = vpop.f32.mrb[56].mxu0 }
0x2d0a   :  { %v6931_v8 = vpop.f32.mrb[57].mxu0 }
0x2d0b   :  { %9889 = vmatprep.mubr.msk.f32.mxu0 %vm221_vm1, %v6931_v8 }
0x2d0c   :  { %9890 = vmatmul.mubr.msk.f32.vlgmr.msra.gmra.mrb[52].mxu0 %vm221_vm1, %v9886_v33 }
0x2d0d   :  { %10362 = vmatpush3.bf16.msra.mxu0 %v10359_v24  ;;  %9911 = vmatprep.mubr.msk.f32.mxu0 %vm104_vm0, %v11795_v51  ;;  %v8907_v51 = vld [vmem:[%s12449_s16 + $0x30] sm:$0xff] }
0x2d0e   :  { %10364 = vmatprep.subr.bf16.mxu0 %v10363_v30 }
0x2d11   :  { %10366 = vmatpush3.bf16.msra.mxu0 %v10363_v30 }
0x2d14   :  { %9912 = vmatmul.mubr.msk.f32.vlgmr.msra.gmra.mrb[58].mxu0 %vm104_vm0, %v11800_v50  ;;  %v10355_v50 = vpack.c.bf16 %v8908_v35, %v8907_v51 }
0x2d16   :  { %10356 = vmatprep.subr.bf16.mxu1 %v10355_v50 }
0x2d17   :  { %10358 = vmatpush3.bf16.msra.mxu1 %v10355_v50 }
0x2ddf   :  { %v9891_v55 = vpop.f32.mrb[52].mxu0 }
0x2de0   :  { %v12202_v23 = vadd.f32 %v9891_v55, %v12013_v29  ;;  %v7012_v26 = vpop.f32.mrb[53].mxu0 }
0x2de1   :  { %v12205_v38 = vadd.f32 %v7012_v26, %v12016_v12 }
0x2de2   :  { %v7027_v25 = vmul.f32 %v12202_v23, %v12202_v23 }
0x2de3   :  { %v7026_v39 = vmul.f32 %v12205_v38, %v12205_v38 }
0x2de4   :  { %v7031_v21 = vsel %vm104_vm0, %v7027_v25, 0.0 }
0x2de5   :  { %7032 = vadd.xlane.f32.xlu1 %v7031_v21  ;;  %v7028_v41 = vsel %vm104_vm0, %v7026_v39, 0.0 }
0x2de6   :  { %7029 = vadd.xlane.f32.xlu0 %v7028_v41 }
0x2de7   :  { %v9913_v42 = vpop.f32.mrb[58].mxu0 }
0x2de8   :  { %v7205_v43 = vpop.f32.mrb[59].mxu0 }
0x2de9   :  { %v10367_v29 = vpack.c.bf16 %v9913_v42, %v7205_v43  ;;  %v12213_v44 = vpack.i.bf16 %v9913_v42, %v7205_v43 }
0x2deb   :  { %10369 = vmatprep.subr.msk.bf16.mxu1 %vm11186_vm2, %v10367_v29 }
0x2dfc   :  { %10685 = vrot.lane.b32.xlu0 %v12213_v44, %s12524_s2 }
0x2e72   :  { %v7033_v12 = vpop.xlane.xlu1 %7032 }
0x2e73   :  { %v7035_v45 = vmul.f32 0.03125, %v7033_v12  ;;  %v7030_v46 = vpop.xlane.xlu0 %7029 }
0x2e74   :  { %v7034_v47 = vmul.f32 0.03125, %v7030_v46 }
0x2e75   :  { %v7037_v11 = vadd.f32 1e-06, %v7035_v45 }
0x2e76   :  { %v7036_v40 = vadd.f32 1e-06, %v7034_v47 }
0x2e77   :  { %10915 = vrsqrt.f32 %v7037_v11  ;;  %v10686_v56 = vpop.permute.xlu0 %10685 }
0x2e78   :  { %10917 = vrsqrt.f32 %v7036_v40  ;;  %v10688_v58 = vunpack.i.h.bf16 %v10686_v56  ;;  %v10687_v60 = vunpack.i.l.bf16 %v10686_v56 }
0x2e7a   :  { %v10377_v61 = vpack.c.bf16 %v10688_v58, %v10687_v60 }
0x2e81   :  { %v10916_v52 = vpop.eup %10915 }
0x2e82   :  { %v10918_v34 = vpop.eup %10917  ;;  %v7041_v9 = vmul.f32 %v10916_v52, %v12202_v23 }
0x2e83   :  { %v7040_v27 = vmul.f32 %v10918_v34, %v12205_v38 }
0x2e84   :  { %v7047_v54 = vmul.f32 %v8904_v57, %v7041_v9 }
0x2e85   :  { %v7046_v59 = vmul.f32 %v8904_v57, %v7040_v27 }
0x2e87   :  { %9900 = vmatprep.mubr.msk.f32.mxu1 %vm104_vm0, %v7046_v59 }
0x2e88   :  { %9901 = vmatmul.mubr.msk.f32.vlgmr.msra.gmra.mrb[56].mxu1 %vm104_vm0, %v7047_v54 }
0x2e89   :  { %10372 = vmatpush3.bf16.xpose.msk.msra.mxu1 %vm11186_vm2, %v10367_v29 }
0x2e8a   :  { %10379 = vmatprep.subr.msk.bf16.mxu1 %vm11186_vm2, %v10377_v61 }
0x2f5b   :  { %v12230_v14 = vpop.f32.mrb[56].mxu1 }
0x2f5c   :  { %7417 = vrot.lane.b32.xlu0 %v12230_v14, %s12524_s2  ;;  %v12234_v62 = vpop.f32.mrb[57].mxu1 }
0x2f5d   :  { %7415 = vrot.lane.b32.xlu1 %v12234_v62, %s12524_s2  ;;  %9918 = vmatprep.mubr.msk.f32.mxu1 %vm221_vm1, %v12234_v62 }
0x2f5e   :  { %9919 = vmatmul.mubr.msk.f32.vlgmr.msra.gmra.mrb[58].mxu1 %vm221_vm1, %v12230_v14 }
0x2f5f   :  { %10382 = vmatpush3.bf16.xpose.msk.msra.mxu1 %vm11186_vm2, %v10377_v61 }
0x2f60   :  { %10690 = vrot.lane.b32.xlu0 %v12213_v44, %s12525_s30 }
0x2f64   :  { %7777 = vrot.lane.b32.xlu0 %v12234_v62, %s12525_s30 }
0x2f68   :  { %7779 = vrot.lane.b32.xlu0 %v12230_v14, %s12525_s30 }
0x2fce   :  { %v7418_v13 = vpop.permute.xlu0 %7417 }
0x2fcf   :  { %v7416_v63 = vpop.permute.xlu1 %7415 }
0x2fd0   :  { %9932 = vmatprep.mubr.msk.f32.mxu1 %vm221_vm1, %v7416_v63 }
0x2fd1   :  { %9933 = vmatmul.mubr.msk.f32.vlgmr.msra.gmra.mrb[60].mxu1 %vm221_vm1, %v7418_v13 }
0x2fd2   :  { %v10691_v2 = vpop.permute.xlu0 %10690 }
0x2fd3   :  { %v10693_v48 = vunpack.i.h.bf16 %v10691_v2  ;;  %v10692_v3 = vunpack.i.l.bf16 %v10691_v2 }
0x2fd5   :  { %v10387_v4 = vpack.c.bf16 %v10693_v48, %v10692_v3 }
0x2fd6   :  { %v7778_v6 = vpop.permute.xlu0 %7777 }
0x2fd7   :  { %10389 = vmatprep.subr.msk.bf16.mxu1 %vm11186_vm2, %v10387_v4  ;;  %9956 = vmatprep.mubr.msk.f32.mxu1 %vm221_vm1, %v7778_v6 }
0x2fd8   :  { %10392 = vmatpush3.bf16.xpose.msk.msra.mxu1 %vm11186_vm2, %v10387_v4 }
0x2fda   :  { %v7780_v1 = vpop.permute.xlu0 %7779 }
0x2fdf   :  { %9957 = vmatmul.mubr.msk.f32.vlgmr.msra.gmra.mrb[62].mxu1 %vm221_vm1, %v7780_v1 }
0x3031   :  { %v9920_v0 = vpop.f32.mrb[58].mxu1 }
0x3032   :  { %v7303_v15 = vadd.f32 %v12261_v10, %v9920_v0  ;;  %v7297_v16 = vpop.f32.mrb[59].mxu1 }
0x3033   :  { %v7298_v18 = vadd.f32 %v12267_v17, %v7297_v16 }
0x3034   :  { %v7309_v53 = vsel %vm305_vm3, %v7303_v15, -inf }
0x3035   :  { %7310 = vmax.xlane.f32.xlu0 %v7309_v53  ;;  %v7306_v5 = vsel %vm305_vm3, %v7298_v18, -inf }
0x3036   :  { %7307 = vmax.xlane.f32.xlu1 %v7306_v5 }
0x30a4   :  { %v9934_v7 = vpop.f32.mrb[60].mxu1 }
0x30a5   :  { %v7503_v37 = vadd.f32 %v12261_v10, %v9934_v7  ;;  %v7497_v22 = vpop.f32.mrb[61].mxu1 }
0x30a6   :  { %v7498_v36 = vadd.f32 %v12267_v17, %v7497_v22 }
0x30a7   :  { %v7509_v24 = vsel %vm305_vm3, %v7503_v37, -inf }
0x30a8   :  { %7510 = vmax.xlane.f32.xlu1 %v7509_v24  ;;  %v7506_v20 = vsel %vm305_vm3, %v7498_v36, -inf }
0x30a9   :  { %7507 = vmax.xlane.f32.xlu0 %v7506_v20 }
0x30b2   :  { %v9958_v28 = vpop.f32.mrb[62].mxu1 }
0x30b3   :  { %v7859_v33 = vpop.f32.mrb[63].mxu1  ;;  %v7865_v56 = vadd.f32 %v12261_v10, %v9958_v28 }
0x30b4   :  { %v7860_v52 = vadd.f32 %v12267_v17, %v7859_v33 }
0x30b5   :  { %v7871_v57 = vsel %vm305_vm3, %v7865_v56, -inf }
0x30b6   :  { %v7868_v34 = vsel %vm305_vm3, %v7860_v52, -inf }
0x30c2   :  { %v7311_v8 = vpop.xlane.xlu0 %7310 }
0x30c3   :  { %v7313_v30 = vsub.f32 %v7303_v15, %v7311_v8  ;;  %v7308_v19 = vpop.xlane.xlu1 %7307  ;;  %v8918_v8 = vld [vmem:[%s12451_s18 + $0x28] sm:$0xff] }
0x30c4   :  { %v7312_v49 = vsub.f32 %v7298_v18, %v7308_v19 }
0x30c5   :  { %v7316_v32 = vmul.f32 1.442695, %v7313_v30  ;;  %v8917_v30 = vld [vmem:[%s12451_s18 + $0x20] sm:$0xff] }
0x30c6   :  { %v7314_v51 = vmul.f32 1.442695, %v7312_v49 }
0x30c7   :  { %10919 = vpow2.f32 %v7316_v32 }
0x30c8   :  { %10921 = vpow2.f32 %v7314_v51 }
0x30d1   :  { %v10920_v35 = vpop.eup %10919 }
0x30d2   :  { %v10922_v50 = vpop.eup %10921  ;;  %v7321_v55 = vsel %vm305_vm3, %v10920_v35, 0.0 }
0x30d3   :  { %7322 = vadd.xlane.f32.xlu1 %v7321_v55  ;;  %v7318_v26 = vsel %vm305_vm3, %v10922_v50, 0.0 }
0x30d4   :  { %7319 = vadd.xlane.f32.xlu0 %v7318_v26 }
0x3135   :  { %v7511_v25 = vpop.xlane.xlu1 %7510 }
0x3136   :  { %v7513_v39 = vsub.f32 %v7503_v37, %v7511_v25  ;;  %v7508_v21 = vpop.xlane.xlu0 %7507 }
0x3137   :  { %v7512_v41 = vsub.f32 %v7498_v36, %v7508_v21 }
0x3138   :  { %v7516_v42 = vmul.f32 1.442695, %v7513_v39 }
0x3139   :  { %v7514_v43 = vmul.f32 1.442695, %v7512_v41 }
0x313a   :  { %10923 = vpow2.f32 %v7516_v42 }
0x313b   :  { %10925 = vpow2.f32 %v7514_v43 }
0x3144   :  { %v10924_v29 = vpop.eup %10923 }
0x3145   :  { %v10926_v12 = vpop.eup %10925  ;;  %v7521_v45 = vsel %vm305_vm3, %v10924_v29, 0.0 }
0x3146   :  { %7522 = vadd.xlane.f32.xlu1 %v7521_v45  ;;  %v7518_v46 = vsel %vm305_vm3, %v10926_v12, 0.0 }
0x3147   :  { %7519 = vadd.xlane.f32.xlu0 %v7518_v46 }
0x3157   :  { %10700 = vrot.lane.b32.xlu1 %v12213_v44, %s12534_s10 }
0x315b   :  { %10705 = vrot.lane.b32.xlu1 %v12213_v44, %s12529_s8 }
0x315d   :  { %10695 = vrot.lane.b32.xlu0 %v12213_v44, %s12523_s1 }
0x315f   :  { %8062 = vrot.lane.b32.xlu1 %v12230_v14, %s12529_s8 }
0x3160   :  { %v7323_v9 = vpop.xlane.xlu1 %7322 }
0x3161   :  { %8060 = vrot.lane.b32.xlu0 %v12234_v62, %s12529_s8  ;;  %v7320_v47 = vpop.xlane.xlu0 %7319 }
0x3162   :  { %10927 = vrcp.f32 %v7320_v47  ;;  %v8919_v47 = vld [vmem:[%s12451_s18 + $0x30] sm:$0xff] }
0x3163   :  { %10929 = vrcp.f32 %v7323_v9 }
0x316c   :  { %v10928_v11 = vpop.eup %10927 }
0x316d   :  { %v7326_v40 = vmul.f32 %v10928_v11, %v10922_v50  ;;  %v10930_v2 = vpop.eup %10929 }
0x316e   :  { %v7327_v0 = vmul.f32 %v10930_v2, %v10920_v35 }
0x316f   :  { %9925 = vmatprep.mubr.msk.f32.mxu0 %vm305_vm3, %v7326_v40 }
0x3180   :  { %7869 = vmax.xlane.f32.xlu0 %v7868_v34 }
0x3183   :  { %7872 = vmax.xlane.f32.xlu1 %v7871_v57 }
0x3194   :  { %10710 = vrot.lane.b32.xlu1 %v12213_v44, %s12526_s0 }
0x3198   :  { %10715 = vrot.lane.b32.xlu1 %v12213_v44, %s12528_s9 }
0x31d3   :  { %v7523_v27 = vpop.xlane.xlu1 %7522 }
0x31d4   :  { %v7520_v58 = vpop.xlane.xlu0 %7519 }
0x31d5   :  { %10931 = vrcp.f32 %v7520_v58 }
0x31d6   :  { %10933 = vrcp.f32 %v7523_v27 }
0x31d7   :  { %v10701_v60 = vpop.permute.xlu1 %10700 }
0x31d8   :  { %v10696_v59 = vpop.permute.xlu0 %10695  ;;  %v10703_v54 = vunpack.i.h.bf16 %v10701_v60  ;;  %v10702_v61 = vunpack.i.l.bf16 %v10701_v60 }
0x31d9   :  { %v10698_v14 = vunpack.i.h.bf16 %v10696_v59  ;;  %v10697_v62 = vunpack.i.l.bf16 %v10696_v59 }
0x31da   :  { %v10383_v6 = vpack.c.bf16 %v10703_v54, %v10702_v61 }
0x31db   :  { %v10373_v13 = vpack.c.bf16 %v10698_v14, %v10697_v62  ;;  %v10706_v63 = vpop.permute.xlu1 %10705 }
0x31dc   :  { %v10708_v48 = vunpack.i.h.bf16 %v10706_v63  ;;  %v10707_v3 = vunpack.i.l.bf16 %v10706_v63  ;;  %v8061_v4 = vpop.permute.xlu0 %8060  ;;  %v8920_v63 = vld [vmem:[%s12451_s18 + $0x38] sm:$0xff] }
0x31dd   :  { %10374 = vmatprep.subr.bf16.mxu0 %v10373_v13  ;;  %9975 = vmatprep.mubr.msk.f32.mxu1 %vm221_vm1, %v8061_v4 }
0x31de   :  { %v10397_v44 = vpack.c.bf16 %v10708_v48, %v10707_v3  ;;  %10376 = vmatpush3.bf16.msra.mxu0 %v10373_v13 }
0x31df   :  { %v10932_v1 = vpop.eup %10931  ;;  %10384 = vmatprep.subr.bf16.mxu0 %v10383_v6  ;;  %v8063_v53 = vpop.permute.xlu1 %8062 }
0x31e0   :  { %v10934_v15 = vpop.eup %10933  ;;  %10399 = vmatprep.subr.msk.bf16.mxu1 %vm11186_vm2, %v10397_v44  ;;  %v7526_v16 = vmul.f32 %v10932_v1, %v10926_v12 }
0x31e1   :  { %9926 = vmatmul.mubr.msk.f32.vlgmr.msra.gmra.mrb[60].mxu0 %vm305_vm3, %v7327_v0  ;;  %10402 = vmatpush3.bf16.xpose.msk.msra.mxu1 %vm11186_vm2, %v10397_v44  ;;  %v7527_v18 = vmul.f32 %v10934_v15, %v10924_v29 }
0x31e2   :  { %10386 = vmatpush3.bf16.msra.mxu0 %v10383_v6  ;;  %9939 = vmatprep.mubr.msk.f32.mxu0 %vm305_vm3, %v7526_v16 }
0x31e3   :  { %9942 = vmatprep.subr.mxu0 %v8918_v8 }
0x31e5   :  { %9940 = vmatmul.mubr.msk.f32.vlgmr.msra.gmra.mrb[62].mxu0 %vm305_vm3, %v7527_v18 }
0x31e6   :  { %9943 = vmatpush3.msra.mxu0 %v8918_v8  ;;  %v8962_v8 = vld [vmem:[%s12537_s5 + $0x50] sm:$0xff] }
0x31e7   :  { %9947 = vmatprep.subr.mxu0 %v8917_v30 }
0x31e8   :  { %9976 = vmatmul.mubr.msk.f32.vlgmr.msra.gmra.mrb[64].mxu1 %vm221_vm1, %v8063_v53 }
0x320d   :  { %v7870_v5 = vpop.xlane.xlu0 %7869 }
0x320e   :  { %v7874_v7 = vsub.f32 %v7860_v52, %v7870_v5 }
0x3210   :  { %v7876_v37 = vmul.f32 1.442695, %v7874_v7  ;;  %v7873_v22 = vpop.xlane.xlu1 %7872 }
0x3211   :  { %v7875_v36 = vsub.f32 %v7865_v56, %v7873_v22 }
0x3212   :  { %10935 = vpow2.f32 %v7876_v37 }
0x3213   :  { %v7878_v24 = vmul.f32 1.442695, %v7875_v36  ;;  %v8956_v36 = vld [vmem:[%s12539_s12 + $0x30] sm:$0xff] }
0x3214   :  { %v10711_v49 = vpop.permute.xlu1 %10710 }
0x3215   :  { %10937 = vpow2.f32 %v7878_v24  ;;  %v10713_v50 = vunpack.i.h.bf16 %v10711_v49  ;;  %v10712_v55 = vunpack.i.l.bf16 %v10711_v49 }
0x3217   :  { %v10393_v39 = vpack.c.bf16 %v10713_v50, %v10712_v55 }
0x3218   :  { %v10716_v45 = vpop.permute.xlu1 %10715 }
0x3219   :  { %v10718_v11 = vunpack.i.h.bf16 %v10716_v45  ;;  %v10717_v40 = vunpack.i.l.bf16 %v10716_v45 }
0x321c   :  { %v10936_v20 = vpop.eup %10935 }
0x321d   :  { %v7880_v31 = vsel %vm305_vm3, %v10936_v20, 0.0 }
0x321e   :  { %7881 = vadd.xlane.f32.xlu0 %v7880_v31 }
0x321f   :  { %v10938_v28 = vpop.eup %10937 }
0x3220   :  { %v7883_v33 = vsel %vm305_vm3, %v10938_v28, 0.0 }
0x3222   :  { %7884 = vadd.xlane.f32.xlu0 %v7883_v33  ;;  %v8961_v33 = vld [vmem:[%s12537_s5 + $0x48] sm:$0xff] }
0x32ab   :  { %v7882_v19 = vpop.xlane.xlu0 %7881 }
0x32ac   :  { %10939 = vrcp.f32 %v7882_v19  ;;  %v8963_v19 = vld [vmem:[%s12537_s5 + $0x58] sm:$0xff] }
0x32ad   :  { %v10419_v49 = vpack.c.bf16 %v8963_v19, %v8962_v8 }
0x32af   :  { %v7885_v51 = vpop.xlane.xlu0 %7884 }
0x32b0   :  { %10941 = vrcp.f32 %v7885_v51  ;;  %v8965_v51 = vld [vmem:[%s12537_s5 + $0x68] sm:$0xff] }
0x32b4   :  { %v9927_v32 = vpop.f32.mrb[60].mxu0 }
0x32b5   :  { %v7406_v35 = vpop.f32.mrb[61].mxu0 }
0x32b6   :  { %v10940_v12 = vpop.eup %10939 }
0x32b7   :  { %v7888_v56 = vmul.f32 %v10940_v12, %v10936_v20  ;;  %v8957_v20 = vld [vmem:[%s12539_s12 + $0x38] sm:$0xff] }
0x32b8   :  { %v9941_v26 = vpop.f32.mrb[62].mxu0  ;;  %v10411_v31 = vpack.c.bf16 %v8957_v20, %v8956_v36 }
0x32b9   :  { %v7606_v25 = vpop.f32.mrb[63].mxu0 }
0x32ba   :  { %9944 = vmatprep.mubr.msk.f32.mxu0 %vm221_vm1, %v7606_v25  ;;  %v10942_v46 = vpop.eup %10941 }
0x32bb   :  { %9945 = vmatmul.mubr.msk.f32.vlgmr.msra.gmra.mrb[64].mxu0 %vm221_vm1, %v9941_v26  ;;  %v9977_v21 = vpop.f32.mrb[64].mxu1 }
0x32bc   :  { %9948 = vmatpush3.msra.mxu0 %v8917_v30  ;;  %9949 = vmatprep.mubr.msk.f32.mxu0 %vm221_vm1, %v7406_v35  ;;  %v8142_v41 = vpop.f32.mrb[65].mxu1  ;;  %v8148_v43 = vadd.f32 %v12261_v10, %v9977_v21  ;;  %v7889_v10 = vmul.f32 %v10942_v46, %v10938_v28  ;;  %v8960_v28 = vld [vmem:[%s12537_s5 + $0x40] sm:$0xff] }
0x32bd   :  { %10394 = vmatprep.subr.bf16.mxu0 %v10393_v39  ;;  %v8143_v42 = vadd.f32 %v12267_v17, %v8142_v41  ;;  %v10403_v17 = vpack.c.bf16 %v10718_v11, %v10717_v40  ;;  %v10415_v30 = vpack.c.bf16 %v8961_v33, %v8960_v28  ;;  %v8967_v11 = vld [vmem:[%s12537_s5 + $0x78] sm:$0xff] }
0x32be   :  { %v8154_v52 = vsel %vm305_vm3, %v8148_v43, -inf }
0x32bf   :  { %v8151_v29 = vsel %vm305_vm3, %v8143_v42, -inf }
0x32c0   :  { %8152 = vmax.xlane.f32.xlu0 %v8151_v29 }
0x32c3   :  { %9950 = vmatmul.mubr.msk.f32.vlgmr.msra.gmra.mrb[64].mxu0 %vm221_vm1, %v9927_v32  ;;  %v8964_v32 = vld [vmem:[%s12537_s5 + $0x60] sm:$0xff] }
0x32c4   :  { %10396 = vmatpush3.bf16.msra.mxu0 %v10393_v39  ;;  %8155 = vmax.xlane.f32.xlu0 %v8154_v52  ;;  %v10423_v35 = vpack.c.bf16 %v8965_v51, %v8964_v32 }
0x32c5   :  { %9963 = vmatprep.mubr.msk.f32.mxu0 %vm305_vm3, %v7888_v56  ;;  %9966 = vmatprep.subr.mxu0 %v8919_v47 }
0x32c7   :  { %9964 = vmatmul.mubr.msk.f32.vlgmr.msra.gmra.mrb[66].mxu0 %vm305_vm3, %v7889_v10 }
0x32c8   :  { %9967 = vmatpush3.msra.mxu0 %v8919_v47  ;;  %v8966_v47 = vld [vmem:[%s12537_s5 + $0x70] sm:$0xff] }
0x32c9   :  { %10404 = vmatprep.subr.bf16.mxu0 %v10403_v17  ;;  %v10427_v40 = vpack.c.bf16 %v8967_v11, %v8966_v47 }
0x334d   :  { %v8153_v34 = vpop.xlane.xlu0 %8152 }
0x334e   :  { %v8157_v57 = vsub.f32 %v8143_v42, %v8153_v34 }
0x3350   :  { %v8159_v9 = vmul.f32 1.442695, %v8157_v57 }
0x3351   :  { %v8156_v27 = vpop.xlane.xlu0 %8155 }
0x3352   :  { %10943 = vpow2.f32 %v8159_v9  ;;  %v8158_v58 = vsub.f32 %v8148_v43, %v8156_v27  ;;  %v8953_v43 = vld [vmem:[%s12538_s21 + $0x1] ss:$0 sm:$0xff] }
0x3354   :  { %v8161_v60 = vmul.f32 1.442695, %v8158_v58 }
0x3356   :  { %10945 = vpow2.f32 %v8161_v60 }
0x335c   :  { %v10944_v59 = vpop.eup %10943 }
0x335d   :  { %v8163_v54 = vsel %vm305_vm3, %v10944_v59, 0.0 }
0x335e   :  { %8164 = vadd.xlane.f32.xlu0 %v8163_v54 }
0x3360   :  { %v10946_v61 = vpop.eup %10945 }
0x3361   :  { %v8166_v14 = vsel %vm305_vm3, %v10946_v61, 0.0 }
0x3362   :  { %8167 = vadd.xlane.f32.xlu0 %v8166_v14  ;;  %v8574_v14 = vld [vmem:[%s12540_s4 + $0x8] sm:$0xff] }
0x339a   :  { %v9965_v62 = vpop.f32.mrb[66].mxu0 }
0x339b   :  { %v7968_v13 = vpop.f32.mrb[67].mxu0 }
0x339c   :  { %9968 = vmatprep.mubr.msk.f32.mxu0 %vm221_vm1, %v7968_v13 }
0x339d   :  { %9969 = vmatmul.mubr.msk.f32.vlgmr.msra.gmra.mrb[64].mxu0 %vm221_vm1, %v9965_v62  ;;  %v8575_v62 = vld [vmem:[%s12540_s4 + $0x10] sm:$0xff] }
0x339e   :  { %10406 = vmatpush3.bf16.msra.mxu0 %v10403_v17 }
0x339f   :  { %9985 = vmatprep.subr.mxu0 %v8920_v63 }
0x33eb   :  { %v8165_v2 = vpop.xlane.xlu0 %8164 }
0x33ec   :  { %10947 = vrcp.f32 %v8165_v2 }
0x33ef   :  { %v8168_v48 = vpop.xlane.xlu0 %8167 }
0x33f0   :  { %10949 = vrcp.f32 %v8168_v48 }
0x33f6   :  { %v10948_v3 = vpop.eup %10947 }
0x33f7   :  { %v8171_v4 = vmul.f32 %v10948_v3, %v10944_v59 }
0x33f9   :  { %9982 = vmatprep.mubr.msk.f32.mxu0 %vm305_vm3, %v8171_v4 }
0x33fa   :  { %v10950_v6 = vpop.eup %10949 }
0x33fb   :  { %v8172_v44 = vmul.f32 %v10950_v6, %v10946_v61  ;;  %v8573_v61 = vld [vmem:[%s12540_s4] sm:$0xff] }
0x33fc   :  { %v10431_v13 = vpack.c.bf16 %v8574_v14, %v8573_v61 }
0x33fd   :  { %9983 = vmatmul.mubr.msk.f32.vlgmr.msra.gmra.mrb[68].mxu0 %vm305_vm3, %v8172_v44 }
0x33fe   :  { %9986 = vmatpush3.msra.mxu0 %v8920_v63  ;;  %v8576_v63 = vld [vmem:[%s12540_s4 + $0x18] sm:$0xff] }
0x33ff   :  { %10416 = vmatprep.subr.bf16.mxu0 %v10415_v30  ;;  %v10435_v2 = vpack.c.bf16 %v8576_v63, %v8575_v62 }
0x34d0   :  { %v9984_v1 = vpop.f32.mrb[68].mxu0 }
0x34d1   :  { %v8251_v0 = vpop.f32.mrb[69].mxu0 }
0x34d2   :  { %9987 = vmatprep.mubr.msk.f32.mxu0 %vm221_vm1, %v8251_v0 }
0x34d3   :  { %9988 = vmatmul.mubr.msk.f32.vlgmr.msra.gmra.mrb[64].mxu0 %vm221_vm1, %v9984_v1 }
0x34d4   :  { %10418 = vmatpush3.bf16.msra.mxu0 %v10415_v30 }
0x34d5   :  { %10420 = vmatprep.subr.bf16.mxu0 %v10419_v49 }
0x34d8   :  { %10422 = vmatpush3.bf16.msra.mxu0 %v10419_v49 }
0x34d9   :  { %10424 = vmatprep.subr.bf16.mxu0 %v10423_v35 }
0x34dc   :  { %10426 = vmatpush3.bf16.msra.mxu0 %v10423_v35 }
0x34dd   :  { %10428 = vmatprep.subr.bf16.mxu0 %v10427_v40 }
0x34e0   :  { %10430 = vmatpush3.bf16.msra.mxu0 %v10427_v40 }
0x35a6   :  { %v9989_v15 = vpop.f32.mrb[64].mxu0 }
0x35a7   :  { %v12341_v16 = vadd.f32 %v9989_v15, %v12202_v23  ;;  %v8332_v18 = vpop.f32.mrb[65].mxu0  ;;  %v8954_v23 = vld [vmem:[%s12539_s12 + $0x20] sm:$0xff] }
0x35a8   :  { %v12344_v53 = vadd.f32 %v8332_v18, %v12205_v38  ;;  %v8955_v38 = vld [vmem:[%s12539_s12 + $0x28] sm:$0xff]  ;;  %v8970_v15 = vld [vmem:[%s12541_s26] ss:$0 sm:$0xff] }
0x35a9   :  { %v8347_v5 = vmul.f32 %v12341_v16, %v12341_v16  ;;  %v10407_v24 = vpack.c.bf16 %v8955_v38, %v8954_v23 }
0x35aa   :  { %v8346_v7 = vmul.f32 %v12344_v53, %v12344_v53 }
0x35ab   :  { %v8351_v37 = vsel %vm104_vm0, %v8347_v5, 0.0  ;;  %10408 = vmatprep.subr.bf16.mxu1 %v10407_v24 }
0x35ac   :  { %8352 = vadd.xlane.f32.xlu1 %v8351_v37  ;;  %v8348_v22 = vsel %vm104_vm0, %v8346_v7, 0.0  ;;  %10410 = vmatpush3.bf16.msra.mxu1 %v10407_v24  ;;  %v8971_v37 = vld [vmem:[%s12542_s11] ss:$0 sm:$0xff] }
0x35ad   :  { %8349 = vadd.xlane.f32.xlu0 %v8348_v22  ;;  %10412 = vmatprep.subr.bf16.mxu1 %v10411_v31 }
0x35b0   :  { %10414 = vmatpush3.bf16.msra.mxu1 %v10411_v31 }
0x35b1   :  { %10432 = vmatprep.subr.bf16.mxu1 %v10431_v13 }
0x3639   :  { %v8353_v50 = vpop.xlane.xlu1 %8352 }
0x363a   :  { %v8355_v55 = vmul.f32 0.03125, %v8353_v50  ;;  %v8350_v26 = vpop.xlane.xlu0 %8349 }
0x363b   :  { %v8354_v25 = vmul.f32 0.03125, %v8350_v26 }
0x363c   :  { %v8357_v39 = vadd.f32 1e-06, %v8355_v55 }
0x363d   :  { %v8356_v21 = vadd.f32 1e-06, %v8354_v25 }
0x363e   :  { %10951 = vrsqrt.f32 %v8357_v39 }
0x363f   :  { %10953 = vrsqrt.f32 %v8356_v21 }
0x3648   :  { %v10952_v41 = vpop.eup %10951 }
0x3649   :  { %v10954_v42 = vpop.eup %10953  ;;  %v8361_v29 = vmul.f32 %v10952_v41, %v12341_v16 }
0x364a   :  { %v8360_v12 = vmul.f32 %v10954_v42, %v12344_v53 }
0x364b   :  { %v8367_v46 = vmul.f32 %v8953_v43, %v8361_v29 }
0x364c   :  { %v8366_v45 = vmul.f32 %v8953_v43, %v8360_v12 }
0x364e   :  { %9998 = vmatprep.mubr.msk.f32.mxu1 %vm104_vm0, %v8366_v45 }
0x364f   :  { %9999 = vmatmul.mubr.msk.f32.vlgmr.msra.gmra.mrb[66].mxu1 %vm104_vm0, %v8367_v46 }
0x3650   :  { %10434 = vmatpush3.bf16.msra.mxu1 %v10431_v13 }
0x3651   :  { %10436 = vmatprep.subr.bf16.mxu1 %v10435_v2 }
0x3654   :  { %10438 = vmatpush3.bf16.msra.mxu1 %v10435_v2 }
0x3722   :  { %v10000_v52 = vpop.f32.mrb[66].mxu1 }
0x3723   :  { %v8445_v56 = vpop.f32.mrb[67].mxu1  ;;  %v8455_v17 = vmax.f32 %v10000_v52, 0.0 }
0x3724   :  { %v8454_v10 = vmax.f32 %v8445_v56, 0.0 }
0x3726   :  { %10017 = vmatprep.mubr.msk.f32.mxu0 %vm1463_vm4, %v8454_v10 }
0x3727   :  { %10018 = vmatmul.mubr.msk.f32.vlgmr.msra.gmra.mrb[70].mxu0 %vm1463_vm4, %v8455_v17 }
0x37fa   :  { %v10019_v34 = vpop.f32.mrb[70].mxu0 }
0x37fb   :  { %v8537_v57 = vpop.f32.mrb[71].mxu0  ;;  %v8547_v9 = vadd.f32 %v10019_v34, %v12341_v16 }
0x37fc   :  { %v8546_v27 = vadd.f32 %v8537_v57, %v12344_v53 }
0x37fd   :  { %v8550_v60 = vmul.f32 %v8547_v9, %v8547_v9 }
0x37fe   :  { %v8549_v58 = vmul.f32 %v8546_v27, %v8546_v27 }
0x37ff   :  { %v8554_v54 = vsel %vm104_vm0, %v8550_v60, 0.0 }
0x3800   :  { %v8551_v59 = vsel %vm104_vm0, %v8549_v58, 0.0 }
0x3801   :  { %8552 = vadd.xlane.f32.xlu0 %v8551_v59 }
0x3805   :  { %8555 = vadd.xlane.f32.xlu0 %v8554_v54 }
0x388e   :  { %v8553_v48 = vpop.xlane.xlu0 %8552 }
0x388f   :  { %v8557_v3 = vmul.f32 0.03125, %v8553_v48 }
0x3891   :  { %v8559_v4 = vadd.f32 1e-06, %v8557_v3 }
0x3892   :  { %v8556_v6 = vpop.xlane.xlu0 %8555 }
0x3893   :  { %10955 = vrsqrt.f32 %v8559_v4  ;;  %v8558_v44 = vmul.f32 0.03125, %v8556_v6 }
0x3895   :  { %v8560_v1 = vadd.f32 1e-06, %v8558_v44 }
0x3897   :  { %10957 = vrsqrt.f32 %v8560_v1 }
0x389d   :  { %v10956_v0 = vpop.eup %10955 }
0x389e   :  { %v8563_v16 = vmul.f32 %v10956_v0, %v8546_v27 }
0x38a0   :  { %v8571_v18 = vmul.f32 %v8970_v15, %v8563_v16 }
0x38a1   :  { %v10958_v53 = vpop.eup %10957 }
0x38a2   :  { %v8564_v5 = vmul.f32 %v10958_v53, %v8547_v9  ;;  %10028 = vmatprep.mubr.msk.f32.mxu1 %vm104_vm0, %v8571_v18 }
0x38a4   :  { %v8572_v7 = vmul.f32 %v8970_v15, %v8564_v5 }
0x38a6   :  { %10029 = vmatmul.mubr.msk.f32.vlgmr.msra.gmra.mrb[68].mxu1 %vm104_vm0, %v8572_v7 }
0x3979   :  { %v10030_v22 = vpop.f32.mrb[68].mxu1 }
0x397a   :  { %v8662_v23 = vadd.f32 %v10030_v22, %v8971_v37  ;;  %v8656_v38 = vpop.f32.mrb[69].mxu1 }
0x397b   :  { %v8657_v36 = vadd.f32 %v8971_v37, %v8656_v38 }
0x397c   :  { %8666 = vst [vmem:[#allocation2 + $0x8] sm:$0xff] %v8662_v23 }
0x397d   :  { %8665 = vst [vmem:[#allocation2] sm:$0xff] %v8657_v36 }
0x397e   :  { %10980 = shalt.err (!%p10977_p4)
}
0x397f   :  { %s12543_s3 = sld [smem:[#allocation21_spill]] }
0x3985   :  { %s10981_s15 = scalar_lea.hbm %s12543_s3, 256 }
0x3986   :  { %p10982_p5 = scmp.ne.s32.totalorder %s12543_s3, %s10981_s15  ;;  %p10985_p6 = scmp.lt.u32.totalorder %s10981_s15, %s12543_s3 }
0x3988   :  { %p10987_p7 = pnand %p10985_p6, %p10982_p5 }
0x398a   :  { %10990 = shalt.err (!%p10987_p7)
}
0x398b   :  { %s11005_s0 = smov 128   ;;  %s11006_s9 = smov 8  }
0x398c   :  { %8678 = dma.vmem_to_hbm [thread:$0]  %s8673_s29, 256, %s12543_s3, [#allocation3], %s11005_s0, %s11005_s0, %s11006_s9  }
0x398d   :  { %10991 = dma.done.wait [#allocation3], 256  }
0x398e   :  { %10992 = vsyncadd [#allocation3], 4294967040 }
0x398f   :  { %8682 = vsyncpa [#allocation3], 1 }

</bundles_post_ra>
